<compile_context>
chip_gen: v6e
topology: v6e:2x2x1
jax: 0.10.0
libtpu: 0.0.40
codegen_flags: <defaults>
</compile_context>

<pallas_src>
import jax
import jax.numpy as jnp
from jax import lax
from jax.experimental import pallas as pl
from jax.experimental.pallas import tpu as pltpu


# ----------------------------------------------------------------------------
# small helpers
# ----------------------------------------------------------------------------
def _round_up(x, m):
    return (x + m - 1) // m * m


def _clamp_vmem(nbytes):
    nbytes = int(nbytes * 1.3) + (2 << 20)
    return max(16 << 20, min(nbytes, 96 << 20))


def _row_to_col(row):
    """(1, n) -> (n, 1) lane->sublane relayout via a masked lane reduce.

    Avoids relying on exotic reshapes/transposes of tiny vectors; costs only
    n*n VPU ops (n = batch block, <= a few tens).
    """
    n = row.shape[1]
    r = lax.broadcasted_iota(jnp.int32, (n, n), 0)
    c = lax.broadcasted_iota(jnp.int32, (n, n), 1)
    sq = jnp.broadcast_to(row, (n, n))
    return jnp.sum(jnp.where(r == c, sq, 0.0), axis=1, keepdims=True)


# ----------------------------------------------------------------------------
# Kernel 1: bidirectional GRU, grid-tiled over time.
#   grid = (n_t,)  [arbitrary]; fwd direction walks chunks 0..n_t-1, bwd walks
#   n_t-1..0 (separate input/output streams), hidden states carried in VMEM
#   scratch across grid steps.
# ----------------------------------------------------------------------------
def bigru_kernel(x_f_ref, x_b_ref, len_ref,
                 wih_f_ref, wih_b_ref, whh_f_ref, whh_b_ref,
                 bx_f_ref, bx_b_ref, bhn_f_ref, bhn_b_ref,
                 out_f_ref, out_b_ref, last_ref,
                 h_f_scr, h_b_scr, xg_f_scr, xg_b_scr):
    t_chunk, Br, H = out_f_ref.shape
    H3 = 3 * H
    ti = pl.program_id(0)
    n_t = pl.num_programs(0)

    @pl.when(ti == 0)
    def _():
        h_f_scr[...] = jnp.zeros(h_f_scr.shape, h_f_scr.dtype)
        h_b_scr[...] = jnp.zeros(h_b_scr.shape, h_b_scr.dtype)

    lens = len_ref[...]                                   # (Br, 1) int32

    # ---- Hoisted per-chunk input projection: one (t_chunk*Br, E) @ (E, 3H)
    #      bf16 MXU matmul per direction; merged r/z biases baked in. ----
    xg_f_scr[...] = jnp.dot(x_f_ref[...], wih_f_ref[...],
                            preferred_element_type=jnp.float32) + bx_f_ref[...]
    xg_b_scr[...] = jnp.dot(x_b_ref[...], wih_b_ref[...],
                            preferred_element_type=jnp.float32) + bx_b_ref[...]

    # Loop-invariant loads hoisted out of the recurrence.
    whh_f = whh_f_ref[...]                                 # bf16 (H, 3H)
    whh_b = whh_b_ref[...]
    bhn_f = bhn_f_ref[...]                                 # f32 (1, H)
    bhn_b = bhn_b_ref[...]

    t0_f = ti * t_chunk                                    # abs start of fwd chunk
    t0_b = (n_t - 1 - ti) * t_chunk                        # abs start of bwd chunk

    def cell(xg_t, h, whh, bhn):
        # One fused bf16 (Br, H) @ (H, 3H) hidden matmul per direction per step.
        hg = jnp.dot(h.astype(whh.dtype), whh, preferred_element_type=jnp.float32)
        r = jax.nn.sigmoid(xg_t[:, 0:H] + hg[:, 0:H])
        z = jax.nn.sigmoid(xg_t[:, H:2 * H] + hg[:, H:2 * H])
        n = jnp.tanh(xg_t[:, 2 * H:H3] + r * (hg[:, 2 * H:H3] + bhn))
        return (1.0 - z) * n + z * h

    def step(tt, carry):
        h_f, h_b = carry
        tt_b = t_chunk - 1 - tt
        row_f = pl.multiple_of(tt * Br, 8)                 # sublane-aligned rows
        row_b = pl.multiple_of(tt_b * Br, 8)
        xg_f = xg_f_scr[pl.ds(row_f, Br), :]               # (Br, 3H) fwd gates
        xg_b = xg_b_scr[pl.ds(row_b, Br), :]               # (Br, 3H) bwd gates
        h_f_new = cell(xg_f, h_f, whh_f, bhn_f)
        h_b_new = cell(xg_b, h_b, whh_b, bhn_b)
        m_f = (t0_f + tt) < lens                           # (Br, 1) bool
        m_b = (t0_b + tt_b) < lens
        # Full-lane-width per-step stores into the per-direction output blocks.
        out_f_ref[tt] = jnp.where(m_f, h_f_new, 0.0)
        out_b_ref[tt_b] = jnp.where(m_b, h_b_new, 0.0)
        # Length-masked state carry (vselect, NaN-safe).
        return jnp.where(m_f, h_f_new, h_f), jnp.where(m_b, h_b_new, h_b)

    # vreg-pressure-aware unroll (per review): full unroll only for small H.
    if H <= 64:
        unroll = min(t_chunk, 8)
    elif H <= 160:
        unroll = 4
    else:
        unroll = 2
    h_f, h_b = lax.fori_loop(0, t_chunk, step, (h_f_scr[...], h_b_scr[...]),
                             unroll=unroll)
    h_f_scr[...] = h_f
    h_b_scr[...] = h_b

    @pl.when(ti == n_t - 1)
    def _():
        last_ref[:, 0:H] = h_f                             # fwd h at t = len-1
        last_ref[:, H:2 * H] = h_b                         # bwd h at t = 0


def _gru_vmem_limit(t_chunk, Br, E, H):
    row_block = t_chunk * Br
    x_bytes = 2 * 2 * row_block * E * 2                    # 2 dirs, dbuf, bf16
    out_bytes = 2 * 2 * t_chunk * Br * H * 4 + 2 * Br * 2 * H * 4
    w_bytes = 2 * (2 * E * 3 * H * 2 + 2 * H * 3 * H * 2
                   + 2 * 3 * H * 4 + 2 * H * 4 + Br * 4)
    scr_bytes = 2 * Br * H * 4 + 2 * row_block * 3 * H * 4
    return _clamp_vmem(x_bytes + out_bytes + w_bytes + scr_bytes)


def run_bigru(emb, lengths, params, *, t_chunk):
    """emb: (T, Br, E) bf16 with T % t_chunk == 0 and Br % 8 == 0.
    Returns (hidden_fwd (T, Br, H) f32, hidden_bwd (T, Br, H) f32,
             last (Br, 2H) f32 = [h_fwd | h_bwd])."""
    T, Br, E = emb.shape
    H = params["w_hh_f"].shape[0]
    assert T % t_chunk == 0 and Br % 8 == 0
    n_t = T // t_chunk
    row_block = t_chunk * Br

    x2d = emb.reshape(T * Br, E).astype(jnp.bfloat16)      # metadata-only reshape
    lens = lengths.reshape(Br, 1).astype(jnp.int32)

    const = lambda *_: None  # noqa: E731  (placeholder, replaced below)
    in_specs = [
        pl.BlockSpec((row_block, E), lambda t: (t, 0)),                        # x fwd
        pl.BlockSpec((row_block, E), lambda t, n=n_t: (n - 1 - t, 0)),         # x bwd
        pl.BlockSpec((Br, 1), lambda t: (0, 0)),                               # lengths
        pl.BlockSpec((E, 3 * H), lambda t: (0, 0)),                            # W_ih fwd
        pl.BlockSpec((E, 3 * H), lambda t: (0, 0)),                            # W_ih bwd
        pl.BlockSpec((H, 3 * H), lambda t: (0, 0)),                            # W_hh fwd
        pl.BlockSpec((H, 3 * H), lambda t: (0, 0)),                            # W_hh bwd
        pl.BlockSpec((1, 3 * H), lambda t: (0, 0)),                            # b_x fwd
        pl.BlockSpec((1, 3 * H), lambda t: (0, 0)),                            # b_x bwd
        pl.BlockSpec((1, H), lambda t: (0, 0)),                                # b_hn fwd
        pl.BlockSpec((1, H), lambda t: (0, 0)),                                # b_hn bwd
    ]
    out_specs = [
        pl.BlockSpec((t_chunk, Br, H), lambda t: (t, 0, 0)),                   # fwd seq
        pl.BlockSpec((t_chunk, Br, H), lambda t, n=n_t: (n - 1 - t, 0, 0)),    # bwd seq
        pl.BlockSpec((Br, 2 * H), lambda t: (0, 0)),                           # last h
    ]
    out_shape = (jax.ShapeDtypeStruct((T, Br, H), jnp.float32),
                 jax.ShapeDtypeStruct((T, Br, H), jnp.float32),
                 jax.ShapeDtypeStruct((Br, 2 * H), jnp.float32))

    grid_spec = pltpu.PrefetchScalarGridSpec(
        num_scalar_prefetch=0,
        grid=(n_t,),
        in_specs=in_specs,
        out_specs=out_specs,
        scratch_shapes=[pltpu.VMEM((Br, H), jnp.float32),            # h fwd carry
                        pltpu.VMEM((Br, H), jnp.float32),            # h bwd carry
                        pltpu.VMEM((row_block, 3 * H), jnp.float32),  # fwd gates
                        pltpu.VMEM((row_block, 3 * H), jnp.float32)], # bwd gates
    )
    return pl.pallas_call(
        bigru_kernel,
        out_shape=out_shape,
        grid_spec=grid_spec,
        compiler_params=pltpu.CompilerParams(
            dimension_semantics=("arbitrary",),
            vmem_limit_bytes=_gru_vmem_limit(t_chunk, Br, E, H)),
    )(x2d, x2d, lens,
      params["w_ih_f"], params["w_ih_b"],
      params["w_hh_f"], params["w_hh_b"],
      params["b_x_f"], params["b_x_b"],
      params["b_hn_f"], params["b_hn_b"])


# ----------------------------------------------------------------------------
# Kernel 2: T-chunked bilinear attention over the time-major doc slabs with a
#           flash-style online softmax, plus bilinear answer scoring.
#   grid = (n_b, n_t)  [parallel, arbitrary]
# ----------------------------------------------------------------------------
def attention_kernel(doc_f_ref, doc_b_ref, q_ref, a1_ref, a2_ref,
                     w_attn_t_ref, w_ans_t_ref, b_attn_ref, t_valid_ref,
                     out_ref,
                     vf_scr, vb_scr, m_scr, l_scr, accf_scr, accb_scr):
    t_block, Bb, H = doc_f_ref.shape
    ti = pl.program_id(1)

    @pl.when(ti == 0)
    def _():
        # v = W_attn @ q, cached per batch block (one small bf16 MXU matmul).
        qv = jnp.dot(q_ref[...].astype(w_attn_t_ref.dtype), w_attn_t_ref[...],
                     preferred_element_type=jnp.float32)            # (Bb, 2H)
        vf_scr[...] = qv[:, 0:H]
        vb_scr[...] = qv[:, H:2 * H]
        m_scr[...] = jnp.full(m_scr.shape, -jnp.inf, m_scr.dtype)
        l_scr[...] = jnp.zeros(l_scr.shape, l_scr.dtype)
        accf_scr[...] = jnp.zeros(accf_scr.shape, accf_scr.dtype)
        accb_scr[...] = jnp.zeros(accb_scr.shape, accb_scr.dtype)

    doc_f = doc_f_ref[...]                                          # (t_block, Bb, H)
    doc_b = doc_b_ref[...]

    # Bilinear scores via VPU multiply + lane (XLU) reduce (no per-batch
    # 1-column MXU matmuls):  s[t, b] = doc[t, b, :] . v[b, :] + bias
    s = (jnp.sum(doc_f * vf_scr[...][None, :, :], axis=-1)
         + jnp.sum(doc_b * vb_scr[...][None, :, :], axis=-1)
         + b_attn_ref[0])                                           # (t_block, Bb)

    # Exclude host-side time padding (beyond the torch doc length) from the
    # softmax.  Within-doc padded positions keep score == bias, as in torch.
    t_abs = ti * t_block + lax.broadcasted_iota(jnp.int32, (t_block, Bb), 0)
    s = jnp.where(t_abs < t_valid_ref[0], s, -1e30)

    # Online softmax over the document/time axis (sublane reduces).
    m_prev = m_scr[...]                                             # (1, Bb)
    m_new = jnp.maximum(m_prev, jnp.max(s, axis=0, keepdims=True))
    alpha = jnp.exp(m_prev - m_new)                                 # (1, Bb)
    p = jnp.exp(s - m_new)                                          # (t_block, Bb)
    l_scr[...] = alpha * l_scr[...] + jnp.sum(p, axis=0, keepdims=True)
    alpha_c = _row_to_col(alpha)                                    # (Bb, 1)
    accf_scr[...] = alpha_c * accf_scr[...] + jnp.sum(p[:, :, None] * doc_f, axis=0)
    accb_scr[...] = alpha_c * accb_scr[...] + jnp.sum(p[:, :, None] * doc_b, axis=0)
    m_scr[...] = m_new

    @pl.when(ti == pl.num_programs(1) - 1)
    def _():
        inv_l = _row_to_col(pl.reciprocal(l_scr[...], approx=True))  # (Bb, 1)
        dr = jnp.concatenate([accf_scr[...], accb_scr[...]], axis=1) * inv_l  # (Bb, 2H)
        # Fused bilinear (no bias) answer scoring: one (2Bb, 2H) @ (2H, 2H) matmul.
        a12 = jnp.concatenate([a1_ref[...], a2_ref[...]], axis=0)    # (2Bb, 2H)
        u = jnp.dot(a12.astype(w_ans_t_ref.dtype), w_ans_t_ref[...],
                    preferred_element_type=jnp.float32)              # (2Bb, 2H)
        s1 = jnp.sum(dr * u[0:Bb, :], axis=-1, keepdims=True)        # (Bb, 1)
        s2 = jnp.sum(dr * u[Bb:2 * Bb, :], axis=-1, keepdims=True)
        out_ref[...] = jnp.concatenate([s1, s2], axis=1)             # (Bb, 2)


def _attn_vmem_limit(t_block, Bb, H):
    H2 = 2 * H
    doc_bytes = 2 * 2 * t_block * Bb * H * 4
    qa_bytes = 2 * 3 * Bb * H2 * 4
    w_bytes = 2 * 2 * H2 * H2 * 2
    scr_bytes = (4 * Bb * H + 2 * Bb) * 4
    out_bytes = 2 * Bb * 2 * 4
    return _clamp_vmem(doc_bytes + qa_bytes + w_bytes + scr_bytes + out_bytes)


def _pick_attn_block(T_pad, requested, Bb, H):
    if requested is None:
        per_t = 2 * 2 * Bb * H * 4                      # two slabs, double-buffered
        requested = max(8, (4 << 20) // max(per_t, 1))
    requested = max(1, min(int(requested), T_pad))
    best = 1
    for d in range(1, T_pad + 1):                       # largest divisor <= requested
        if T_pad % d == 0 and d <= requested:
            best = d
    return best


def run_attention(doc_f, doc_b, q_hidden, a1_hidden, a2_hidden, t_valid, params,
                  *, t_block=None, batch_block=8):
    """doc_f / doc_b: (T_pad, Bp, H) f32 time-major direction slabs."""
    T_pad, Bp, H = doc_f.shape
    H2 = 2 * H
    Bb = batch_block
    assert Bb % 8 == 0 and Bp % Bb == 0
    t_block = _pick_attn_block(T_pad, t_block, Bb, H)
    n_b, n_t = Bp // Bb, T_pad // t_block
    t_valid_arr = jnp.full((1,), t_valid, dtype=jnp.int32)

    grid_spec = pltpu.PrefetchScalarGridSpec(
        num_scalar_prefetch=0,
        grid=(n_b, n_t),
        in_specs=[
            pl.BlockSpec((t_block, Bb, H), lambda b, t: (t, b, 0)),   # doc fwd slab
            pl.BlockSpec((t_block, Bb, H), lambda b, t: (t, b, 0)),   # doc bwd slab
            pl.BlockSpec((Bb, H2), lambda b, t: (b, 0)),              # question
            pl.BlockSpec((Bb, H2), lambda b, t: (b, 0)),              # answer 1
            pl.BlockSpec((Bb, H2), lambda b, t: (b, 0)),              # answer 2
            pl.BlockSpec((H2, H2), lambda b, t: (0, 0)),              # W_attn^T
            pl.BlockSpec((H2, H2), lambda b, t: (0, 0)),              # W_ans^T
            pl.BlockSpec(memory_space=pltpu.MemorySpace.SMEM),        # attn bias
            pl.BlockSpec(memory_space=pltpu.MemorySpace.SMEM),        # valid doc len
        ],
        out_specs=pl.BlockSpec((Bb, 2), lambda b, t: (b, 0)),
        scratch_shapes=[pltpu.VMEM((Bb, H), jnp.float32),   # v (fwd half)
                        pltpu.VMEM((Bb, H), jnp.float32),   # v (bwd half)
                        pltpu.VMEM((1, Bb), jnp.float32),   # running max
                        pltpu.VMEM((1, Bb), jnp.float32),   # running sum
                        pltpu.VMEM((Bb, H), jnp.float32),   # weighted doc acc (fwd)
                        pltpu.VMEM((Bb, H), jnp.float32)],  # weighted doc acc (bwd)
    )
    return pl.pallas_call(
        attention_kernel,
        out_shape=jax.ShapeDtypeStruct((Bp, 2), jnp.float32),
        grid_spec=grid_spec,
        compiler_params=pltpu.CompilerParams(
            dimension_semantics=("parallel", "arbitrary"),
            vmem_limit_bytes=_attn_vmem_limit(t_block, Bb, H)),
    )(doc_f, doc_b, q_hidden, a1_hidden, a2_hidden,
      params["w_attn_t"], params["w_ans_t"], params["b_attn"], t_valid_arr)


# ----------------------------------------------------------------------------
# Full forward pass (glue in plain JAX, compute in the Pallas kernels above).
# ----------------------------------------------------------------------------
def _pad_time(tokens, t_max):
    T, _ = tokens.shape
    if T == t_max:
        return tokens
    return jnp.pad(tokens, ((0, t_max - T), (0, 0)), constant_values=1)   # pad idx 1


def _pad_batch(tokens, lengths, bp):
    T, B = tokens.shape
    if bp == B:
        return tokens, lengths
    tok = jnp.pad(tokens, ((0, 0), (0, bp - B)), constant_values=1)       # pad idx 1
    lng = jnp.pad(lengths, (0, bp - B), constant_values=0)                # length 0
    return tok, lng


def _pick_gru_chunk(T, requested, Br, E, H):
    if requested is None:
        per_t = Br * (2 * 2 * E * 2 + 2 * 2 * H * 4 + 2 * 3 * H * 4)
        requested = max(8, (8 << 20) // max(per_t, 1))
    return max(1, min(int(requested), T))


def att_reader_forward(batch, params, *, gru_t_chunk=None, attn_t_block=None,
                       batch_block=8):
    assert batch_block % 8 == 0
    emb_table = params["emb_table"]                       # (V, E) bf16
    E = emb_table.shape[1]
    H = params["w_hh_f"].shape[0]
    B = batch["document"].shape[1]
    Bp = _round_up(max(B, batch_block), batch_block)      # sublane-aligned batch

    # --- document: full contextualized per-direction (T, Bp, H) sequences ---
    T_doc = batch["document"].shape[0]
    doc_chunk = _pick_gru_chunk(T_doc, gru_t_chunk, Bp, E, H)
    T_doc_pad = _round_up(T_doc, doc_chunk)
    doc_tok, doc_len = _pad_batch(_pad_time(batch["document"], T_doc_pad),
                                  batch["document_len"], Bp)
    doc_f, doc_b, _ = run_bigru(emb_table[doc_tok], doc_len, params,
                                t_chunk=doc_chunk)

    # --- question + both answers in ONE GRU launch (weights loaded once) ---
    T_qa = max(batch["question"].shape[0],
               batch["answer1"].shape[0], batch["answer2"].shape[0])
    qa_chunk = _pick_gru_chunk(T_qa, gru_t_chunk, 3 * Bp, E, H)
    T_qa_pad = _round_up(T_qa, qa_chunk)
    toks, lens = [], []
    for name in ("question", "answer1", "answer2"):
        tok, lng = _pad_batch(_pad_time(batch[name], T_qa_pad),
                              batch[name + "_len"], Bp)
        toks.append(tok)
        lens.append(lng)
    qa_tok = jnp.concatenate(toks, axis=1)                # (T_qa_pad, 3*Bp)
    qa_len = jnp.concatenate(lens, axis=0)                # (3*Bp,)
    _, _, qa_last = run_bigru(emb_table[qa_tok], qa_len, params, t_chunk=qa_chunk)
    q_hidden = qa_last[0:Bp]                              # (Bp, 2H)
    a1_hidden = qa_last[Bp:2 * Bp]
    a2_hidden = qa_last[2 * Bp:3 * Bp]

    # dropout == identity in eval mode.
    # Attention consumes the time-major doc slabs directly (no host transpose).
    scores = run_attention(doc_f, doc_b, q_hidden, a1_hidden, a2_hidden,
                           T_doc, params, t_block=attn_t_block,
                           batch_block=batch_block)       # (Bp, 2)
    return scores[:B]


# ----------------------------------------------------------------------------
# Deterministic parameter / input construction.
# ----------------------------------------------------------------------------
def make_params(key, dict_size, E, H):
    ks = jax.random.split(key, 6)
    scale = 0.1
    bf = jnp.bfloat16

    emb_table = jax.random.normal(ks[0], (dict_size, E), jnp.float32) * scale
    emb_table = emb_table.at[1].set(0.0)                  # padding_idx=1

    def gru_dir(k):
        k1, k2, k3, k4 = jax.random.split(k, 4)
        w_ih = jax.random.normal(k1, (3, E, H), jnp.float32) * scale   # gates [r, z, n]
        w_hh = jax.random.normal(k2, (3, H, H), jnp.float32) * scale
        b_ih = jax.random.normal(k3, (3, H), jnp.float32) * scale
        b_hh = jax.random.normal(k4, (3, H), jnp.float32) * scale
        # columns [r | z | n]; r/z input+hidden biases merged, n keeps only b_ih
        # (b_hh_n must stay inside the r* term of the GRU cell).
        w_x = jnp.concatenate([w_ih[0], w_ih[1], w_ih[2]], axis=1)            # (E, 3H)
        b_x = jnp.concatenate([b_ih[0] + b_hh[0], b_ih[1] + b_hh[1],
                               b_ih[2]])[None, :]                              # (1, 3H)
        w_h = jnp.concatenate([w_hh[0], w_hh[1], w_hh[2]], axis=1)            # (H, 3H)
        b_hn = b_hh[2][None, :]                                               # (1, H)
        return w_x, b_x, w_h, b_hn

    wx_f, bx_f, wh_f, bhn_f = gru_dir(ks[1])
    wx_b, bx_b, wh_b, bhn_b = gru_dir(ks[2])

    H2 = 2 * H
    w_attn = jax.random.normal(ks[3], (H2, H2), jnp.float32) * scale   # Bilinear W[0]
    b_attn = jax.random.normal(ks[4], (1,), jnp.float32) * scale
    w_ans = jax.random.normal(ks[5], (H2, H2), jnp.float32) * scale    # no bias

    return dict(
        emb_table=emb_table.astype(bf),
        w_ih_f=wx_f.astype(bf), w_ih_b=wx_b.astype(bf),
        w_hh_f=wh_f.astype(bf), w_hh_b=wh_b.astype(bf),
        b_x_f=bx_f, b_x_b=bx_b, b_hn_f=bhn_f, b_hn_b=bhn_b,
        w_attn_t=w_attn.T.astype(bf), b_attn=b_attn, w_ans_t=w_ans.T.astype(bf),
    )


def make_tokens(key, T, B, dict_size, lengths):
    toks = jax.random.randint(key, (T, B), 2, dict_size, dtype=jnp.int32)
    pos = jnp.arange(T, dtype=jnp.int32)[:, None]                       # (T, 1)
    return jnp.where(pos < lengths[None, :], toks, 1)                   # pad idx 1


if __name__ == "__main__":
    dict_size, E, H = 50, 32, 32
    B, T_doc, T_q, T_a = 4, 16, 8, 8

    key = jax.random.PRNGKey(0)
    k_par, k_doc, k_q, k_a1, k_a2 = jax.random.split(key, 5)
    params = make_params(k_par, dict_size, E, H)

    doc_len = jnp.array([16, 12, 9, 5], dtype=jnp.int32)
    q_len = jnp.array([8, 6, 7, 4], dtype=jnp.int32)
    a1_len = jnp.array([3, 5, 2, 8], dtype=jnp.int32)
    a2_len = jnp.array([4, 4, 6, 3], dtype=jnp.int32)

    batch = dict(
        document=make_tokens(k_doc, T_doc, B, dict_size, doc_len), document_len=doc_len,
        question=make_tokens(k_q, T_q, B, dict_size, q_len), question_len=q_len,
        answer1=make_tokens(k_a1, T_a, B, dict_size, a1_len), answer1_len=a1_len,
        answer2=make_tokens(k_a2, T_a, B, dict_size, a2_len), answer2_len=a2_len,
    )

    # gru_t_chunk=8 -> two GRU time chunks (exercises the carried-h grid);
    # attn_t_block=8 -> two attention chunks (exercises the online softmax).
    scores = att_reader_forward(batch, params, gru_t_chunk=8, attn_t_block=8,
                                batch_block=8)            # (B, 2)
    scores = jax.block_until_ready(scores)
    assert scores.shape == (B, 2)
    assert bool(jnp.all(jnp.isfinite(scores)))
    print("KERNEL_OK")
</pallas_src>

<mosaic_0001>
module attributes {stable_mosaic.version = 11 : i64} {
  func.func @bigru_kernel(%arg0: i32, %arg1: memref<64x32xbf16, #tpu.memory_space<vmem>>, %arg2: memref<64x32xbf16, #tpu.memory_space<vmem>>, %arg3: memref<8x1xi32, #tpu.memory_space<vmem>>, %arg4: memref<32x96xbf16, #tpu.memory_space<vmem>>, %arg5: memref<32x96xbf16, #tpu.memory_space<vmem>>, %arg6: memref<32x96xbf16, #tpu.memory_space<vmem>>, %arg7: memref<32x96xbf16, #tpu.memory_space<vmem>>, %arg8: memref<1x96xf32, #tpu.memory_space<vmem>>, %arg9: memref<1x96xf32, #tpu.memory_space<vmem>>, %arg10: memref<1x32xf32, #tpu.memory_space<vmem>>, %arg11: memref<1x32xf32, #tpu.memory_space<vmem>>, %arg12: memref<8x8x32xf32, #tpu.memory_space<vmem>>, %arg13: memref<8x8x32xf32, #tpu.memory_space<vmem>>, %arg14: memref<8x64xf32, #tpu.memory_space<vmem>>, %arg15: memref<8x32xf32, #tpu.memory_space<vmem>>, %arg16: memref<8x32xf32, #tpu.memory_space<vmem>>, %arg17: memref<64x96xf32, #tpu.memory_space<vmem>>, %arg18: memref<64x96xf32, #tpu.memory_space<vmem>>) attributes {dimension_semantics = [#tpu.dimension_semantics<arbitrary>], iteration_bounds = array<i64: 2>, scalar_prefetch = 0 : i64, scratch_operands = 4 : i64, tpu.core_type = #tpu.core_type<tc>, window_params = [{transform_indices = @transform_0, window_bounds = array<i64: 64, 32>}, {transform_indices = @transform_1, window_bounds = array<i64: 64, 32>}, {pipeline_mode = #tpu.pipeline_mode<synchronous>, transform_indices = @transform_2, window_bounds = array<i64: 8, 1>}, {pipeline_mode = #tpu.pipeline_mode<synchronous>, transform_indices = @transform_3, window_bounds = array<i64: 32, 96>}, {pipeline_mode = #tpu.pipeline_mode<synchronous>, transform_indices = @transform_4, window_bounds = array<i64: 32, 96>}, {pipeline_mode = #tpu.pipeline_mode<synchronous>, transform_indices = @transform_5, window_bounds = array<i64: 32, 96>}, {pipeline_mode = #tpu.pipeline_mode<synchronous>, transform_indices = @transform_6, window_bounds = array<i64: 32, 96>}, {pipeline_mode = #tpu.pipeline_mode<synchronous>, transform_indices = @transform_7, window_bounds = array<i64: 1, 96>}, {pipeline_mode = #tpu.pipeline_mode<synchronous>, transform_indices = @transform_8, window_bounds = array<i64: 1, 96>}, {pipeline_mode = #tpu.pipeline_mode<synchronous>, transform_indices = @transform_9, window_bounds = array<i64: 1, 32>}, {pipeline_mode = #tpu.pipeline_mode<synchronous>, transform_indices = @transform_10, window_bounds = array<i64: 1, 32>}, {transform_indices = @transform_11, window_bounds = array<i64: 8, 8, 32>}, {transform_indices = @transform_12, window_bounds = array<i64: 8, 8, 32>}, {pipeline_mode = #tpu.pipeline_mode<synchronous>, transform_indices = @transform_13, window_bounds = array<i64: 8, 64>}]} {
    %c0_i32 = arith.constant 0 : i32
    %0 = arith.cmpi eq, %arg0, %c0_i32 : i32
    %1 = arith.extui %0 : i1 to i32
    %c0_i32_0 = arith.constant 0 : i32
    %2 = arith.cmpi ne, %1, %c0_i32_0 : i32
    scf.if %2 {
      %cst_193 = arith.constant 0.000000e+00 : f32
      %808 = vector.broadcast %cst_193 : f32 to vector<8x32xf32>
      %c0_194 = arith.constant 0 : index
      %c0_195 = arith.constant 0 : index
      %809 = vector.load %arg15[%c0_194, %c0_195] : memref<8x32xf32, #tpu.memory_space<vmem>>, vector<8x32xf32>
      tpu.vector_store %arg15[%c0_194, %c0_195], %808 {strides = array<i32>} : memref<8x32xf32, #tpu.memory_space<vmem>>, vector<8x32xf32>,
      %cst_196 = arith.constant 0.000000e+00 : f32
      %810 = vector.broadcast %cst_196 : f32 to vector<8x32xf32>
      %c0_197 = arith.constant 0 : index
      %c0_198 = arith.constant 0 : index
      %811 = vector.load %arg16[%c0_197, %c0_198] : memref<8x32xf32, #tpu.memory_space<vmem>>, vector<8x32xf32>
      tpu.vector_store %arg16[%c0_197, %c0_198], %810 {strides = array<i32>} : memref<8x32xf32, #tpu.memory_space<vmem>>, vector<8x32xf32>,
    } else {
    }
    %c0 = arith.constant 0 : index
    %c0_1 = arith.constant 0 : index
    %3 = vector.load %arg3[%c0, %c0_1] : memref<8x1xi32, #tpu.memory_space<vmem>>, vector<8x1xi32>
    %c0_2 = arith.constant 0 : index
    %c0_3 = arith.constant 0 : index
    %4 = vector.load %arg1[%c0_2, %c0_3] : memref<64x32xbf16, #tpu.memory_space<vmem>>, vector<64x32xbf16>
    %c0_4 = arith.constant 0 : index
    %c0_5 = arith.constant 0 : index
    %5 = vector.load %arg4[%c0_4, %c0_5] : memref<32x96xbf16, #tpu.memory_space<vmem>>, vector<32x96xbf16>
    %cst = arith.constant dense<0.000000e+00> : vector<64x96xf32>
    %6 = tpu.matmul %4, %5, %cst {dimension_numbers = #tpu.dot_dimension_numbers<[1], [0], [0], [1], [0, 0, 1, 1], [], []>} : vector<64x32xbf16>, vector<32x96xbf16>, vector<64x96xf32> -> vector<64x96xf32>
    %c0_6 = arith.constant 0 : index
    %c0_7 = arith.constant 0 : index
    %7 = vector.load %arg8[%c0_6, %c0_7] : memref<1x96xf32, #tpu.memory_space<vmem>>, vector<1x96xf32>
    %8 = vector.broadcast %7 : vector<1x96xf32> to vector<64x96xf32>
    %9 = arith.addf %6, %8 : vector<64x96xf32>
    %c0_8 = arith.constant 0 : index
    %c0_9 = arith.constant 0 : index
    %10 = vector.load %arg17[%c0_8, %c0_9] : memref<64x96xf32, #tpu.memory_space<vmem>>, vector<64x96xf32>
    tpu.vector_store %arg17[%c0_8, %c0_9], %9 {strides = array<i32>} : memref<64x96xf32, #tpu.memory_space<vmem>>, vector<64x96xf32>,
    %c0_10 = arith.constant 0 : index
    %c0_11 = arith.constant 0 : index
    %11 = vector.load %arg2[%c0_10, %c0_11] : memref<64x32xbf16, #tpu.memory_space<vmem>>, vector<64x32xbf16>
    %c0_12 = arith.constant 0 : index
    %c0_13 = arith.constant 0 : index
    %12 = vector.load %arg5[%c0_12, %c0_13] : memref<32x96xbf16, #tpu.memory_space<vmem>>, vector<32x96xbf16>
    %cst_14 = arith.constant dense<0.000000e+00> : vector<64x96xf32>
    %13 = tpu.matmul %11, %12, %cst_14 {dimension_numbers = #tpu.dot_dimension_numbers<[1], [0], [0], [1], [0, 0, 1, 1], [], []>} : vector<64x32xbf16>, vector<32x96xbf16>, vector<64x96xf32> -> vector<64x96xf32>
    %c0_15 = arith.constant 0 : index
    %c0_16 = arith.constant 0 : index
    %14 = vector.load %arg9[%c0_15, %c0_16] : memref<1x96xf32, #tpu.memory_space<vmem>>, vector<1x96xf32>
    %15 = vector.broadcast %14 : vector<1x96xf32> to vector<64x96xf32>
    %16 = arith.addf %13, %15 : vector<64x96xf32>
    %c0_17 = arith.constant 0 : index
    %c0_18 = arith.constant 0 : index
    %17 = vector.load %arg18[%c0_17, %c0_18] : memref<64x96xf32, #tpu.memory_space<vmem>>, vector<64x96xf32>
    tpu.vector_store %arg18[%c0_17, %c0_18], %16 {strides = array<i32>} : memref<64x96xf32, #tpu.memory_space<vmem>>, vector<64x96xf32>,
    %c0_19 = arith.constant 0 : index
    %c0_20 = arith.constant 0 : index
    %18 = vector.load %arg6[%c0_19, %c0_20] : memref<32x96xbf16, #tpu.memory_space<vmem>>, vector<32x96xbf16>
    %c0_21 = arith.constant 0 : index
    %c0_22 = arith.constant 0 : index
    %19 = vector.load %arg7[%c0_21, %c0_22] : memref<32x96xbf16, #tpu.memory_space<vmem>>, vector<32x96xbf16>
    %c0_23 = arith.constant 0 : index
    %c0_24 = arith.constant 0 : index
    %20 = vector.load %arg10[%c0_23, %c0_24] : memref<1x32xf32, #tpu.memory_space<vmem>>, vector<1x32xf32>
    %c0_25 = arith.constant 0 : index
    %c0_26 = arith.constant 0 : index
    %21 = vector.load %arg11[%c0_25, %c0_26] : memref<1x32xf32, #tpu.memory_space<vmem>>, vector<1x32xf32>
    %c8_i32 = arith.constant 8 : i32
    %22 = arith.muli %arg0, %c8_i32 : i32
    %c1_i32 = arith.constant 1 : i32
    %23 = arith.subi %c1_i32, %arg0 : i32
    %c8_i32_27 = arith.constant 8 : i32
    %24 = arith.muli %23, %c8_i32_27 : i32
    %c0_28 = arith.constant 0 : index
    %c0_29 = arith.constant 0 : index
    %25 = vector.load %arg15[%c0_28, %c0_29] : memref<8x32xf32, #tpu.memory_space<vmem>>, vector<8x32xf32>
    %c0_30 = arith.constant 0 : index
    %c0_31 = arith.constant 0 : index
    %26 = vector.load %arg16[%c0_30, %c0_31] : memref<8x32xf32, #tpu.memory_space<vmem>>, vector<8x32xf32>
    %c0_i32_32 = arith.constant 0 : i32
    %c7_i32 = arith.constant 7 : i32
    %27 = arith.subi %c7_i32, %c0_i32_32 : i32
    %c8_i32_33 = arith.constant 8 : i32
    %28 = arith.muli %c0_i32_32, %c8_i32_33 : i32
    %29 = tpu.assume_multiple %28, 8 : i32
    %c8_i32_34 = arith.constant 8 : i32
    %30 = arith.muli %27, %c8_i32_34 : i32
    %31 = tpu.assume_multiple %30, 8 : i32
    %32 = arith.index_cast %29 : i32 to index
    %c0_35 = arith.constant 0 : index
    %33 = vector.load %arg17[%32, %c0_35] : memref<64x96xf32, #tpu.memory_space<vmem>>, vector<8x96xf32>
    %34 = arith.index_cast %31 : i32 to index
    %c0_36 = arith.constant 0 : index
    %35 = vector.load %arg18[%34, %c0_36] : memref<64x96xf32, #tpu.memory_space<vmem>>, vector<8x96xf32>
    %36 = arith.truncf %25 : vector<8x32xf32> to vector<8x32xbf16>
    %cst_37 = arith.constant dense<0.000000e+00> : vector<8x96xf32>
    %37 = tpu.matmul %36, %18, %cst_37 {dimension_numbers = #tpu.dot_dimension_numbers<[1], [0], [0], [1], [0, 0, 1, 1], [], []>} : vector<8x32xbf16>, vector<32x96xbf16>, vector<8x96xf32> -> vector<8x96xf32>
    %38 = vector.extract_strided_slice %33 {offsets = [0, 0], sizes = [8, 32], strides = [1, 1]} : vector<8x96xf32> to vector<8x32xf32>
    %39 = vector.extract_strided_slice %37 {offsets = [0, 0], sizes = [8, 32], strides = [1, 1]} : vector<8x96xf32> to vector<8x32xf32>
    %40 = arith.addf %38, %39 : vector<8x32xf32>
    %41 = arith.negf %40 : vector<8x32xf32>
    %42 = math.exp %41 : vector<8x32xf32>
    %cst_38 = arith.constant 1.000000e+00 : f32
    %43 = vector.broadcast %cst_38 : f32 to vector<8x32xf32>
    %44 = arith.addf %43, %42 : vector<8x32xf32>
    %45 = arith.divf %43, %44 : vector<8x32xf32>
    %46 = vector.extract_strided_slice %33 {offsets = [0, 32], sizes = [8, 32], strides = [1, 1]} : vector<8x96xf32> to vector<8x32xf32>
    %47 = vector.extract_strided_slice %37 {offsets = [0, 32], sizes = [8, 32], strides = [1, 1]} : vector<8x96xf32> to vector<8x32xf32>
    %48 = arith.addf %46, %47 : vector<8x32xf32>
    %49 = arith.negf %48 : vector<8x32xf32>
    %50 = math.exp %49 : vector<8x32xf32>
    %cst_39 = arith.constant 1.000000e+00 : f32
    %51 = vector.broadcast %cst_39 : f32 to vector<8x32xf32>
    %52 = arith.addf %51, %50 : vector<8x32xf32>
    %53 = arith.divf %51, %52 : vector<8x32xf32>
    %54 = vector.extract_strided_slice %33 {offsets = [0, 64], sizes = [8, 32], strides = [1, 1]} : vector<8x96xf32> to vector<8x32xf32>
    %55 = vector.extract_strided_slice %37 {offsets = [0, 64], sizes = [8, 32], strides = [1, 1]} : vector<8x96xf32> to vector<8x32xf32>
    %56 = vector.broadcast %20 : vector<1x32xf32> to vector<8x32xf32>
    %57 = arith.addf %55, %56 : vector<8x32xf32>
    %58 = arith.mulf %45, %57 : vector<8x32xf32>
    %59 = arith.addf %54, %58 : vector<8x32xf32>
    %60 = math.tanh %59 : vector<8x32xf32>
    %cst_40 = arith.constant 1.000000e+00 : f32
    %61 = vector.broadcast %cst_40 : f32 to vector<8x32xf32>
    %62 = arith.subf %61, %53 : vector<8x32xf32>
    %63 = arith.mulf %62, %60 : vector<8x32xf32>
    %64 = arith.mulf %53, %25 : vector<8x32xf32>
    %65 = arith.addf %63, %64 : vector<8x32xf32>
    %66 = arith.truncf %26 : vector<8x32xf32> to vector<8x32xbf16>
    %cst_41 = arith.constant dense<0.000000e+00> : vector<8x96xf32>
    %67 = tpu.matmul %66, %19, %cst_41 {dimension_numbers = #tpu.dot_dimension_numbers<[1], [0], [0], [1], [0, 0, 1, 1], [], []>} : vector<8x32xbf16>, vector<32x96xbf16>, vector<8x96xf32> -> vector<8x96xf32>
    %68 = vector.extract_strided_slice %35 {offsets = [0, 0], sizes = [8, 32], strides = [1, 1]} : vector<8x96xf32> to vector<8x32xf32>
    %69 = vector.extract_strided_slice %67 {offsets = [0, 0], sizes = [8, 32], strides = [1, 1]} : vector<8x96xf32> to vector<8x32xf32>
    %70 = arith.addf %68, %69 : vector<8x32xf32>
    %71 = arith.negf %70 : vector<8x32xf32>
    %72 = math.exp %71 : vector<8x32xf32>
    %cst_42 = arith.constant 1.000000e+00 : f32
    %73 = vector.broadcast %cst_42 : f32 to vector<8x32xf32>
    %74 = arith.addf %73, %72 : vector<8x32xf32>
    %75 = arith.divf %73, %74 : vector<8x32xf32>
    %76 = vector.extract_strided_slice %35 {offsets = [0, 32], sizes = [8, 32], strides = [1, 1]} : vector<8x96xf32> to vector<8x32xf32>
    %77 = vector.extract_strided_slice %67 {offsets = [0, 32], sizes = [8, 32], strides = [1, 1]} : vector<8x96xf32> to vector<8x32xf32>
    %78 = arith.addf %76, %77 : vector<8x32xf32>
    %79 = arith.negf %78 : vector<8x32xf32>
    %80 = math.exp %79 : vector<8x32xf32>
    %cst_43 = arith.constant 1.000000e+00 : f32
    %81 = vector.broadcast %cst_43 : f32 to vector<8x32xf32>
    %82 = arith.addf %81, %80 : vector<8x32xf32>
    %83 = arith.divf %81, %82 : vector<8x32xf32>
    %84 = vector.extract_strided_slice %35 {offsets = [0, 64], sizes = [8, 32], strides = [1, 1]} : vector<8x96xf32> to vector<8x32xf32>
    %85 = vector.extract_strided_slice %67 {offsets = [0, 64], sizes = [8, 32], strides = [1, 1]} : vector<8x96xf32> to vector<8x32xf32>
    %86 = vector.broadcast %21 : vector<1x32xf32> to vector<8x32xf32>
    %87 = arith.addf %85, %86 : vector<8x32xf32>
    %88 = arith.mulf %75, %87 : vector<8x32xf32>
    %89 = arith.addf %84, %88 : vector<8x32xf32>
    %90 = math.tanh %89 : vector<8x32xf32>
    %cst_44 = arith.constant 1.000000e+00 : f32
    %91 = vector.broadcast %cst_44 : f32 to vector<8x32xf32>
    %92 = arith.subf %91, %83 : vector<8x32xf32>
    %93 = arith.mulf %92, %90 : vector<8x32xf32>
    %94 = arith.mulf %83, %26 : vector<8x32xf32>
    %95 = arith.addf %93, %94 : vector<8x32xf32>
    %96 = arith.addi %22, %c0_i32_32 : i32
    %97 = vector.broadcast %96 : i32 to vector<8x1xi32>
    %98 = arith.cmpi slt, %97, %3 : vector<8x1xi32>
    %99 = arith.addi %24, %27 : i32
    %100 = vector.broadcast %99 : i32 to vector<8x1xi32>
    %101 = arith.cmpi slt, %100, %3 : vector<8x1xi32>
    %cst_45 = arith.constant 0.000000e+00 : f32
    %102 = vector.shape_cast %98 : vector<8x1xi1> to vector<8x1xi1>
    %103 = vector.broadcast %102 : vector<8x1xi1> to vector<8x32xi1>
    %104 = vector.broadcast %cst_45 : f32 to vector<8x32xf32>
    %105 = arith.select %103, %65, %104 : vector<8x32xi1>, vector<8x32xf32>
    %106 = arith.index_cast %c0_i32_32 : i32 to index
    %c0_46 = arith.constant 0 : index
    %c0_47 = arith.constant 0 : index
    %107 = vector.load %arg12[%106, %c0_46, %c0_47] : memref<8x8x32xf32, #tpu.memory_space<vmem>>, vector<1x8x32xf32>
    %108 = vector.shape_cast %107 : vector<1x8x32xf32> to vector<8x32xf32>
    %109 = vector.shape_cast %105 : vector<8x32xf32> to vector<1x8x32xf32>
    tpu.vector_store %arg12[%106, %c0_46, %c0_47], %109 {strides = array<i32>} : memref<8x8x32xf32, #tpu.memory_space<vmem>>, vector<1x8x32xf32>,
    %cst_48 = arith.constant 0.000000e+00 : f32
    %110 = vector.shape_cast %101 : vector<8x1xi1> to vector<8x1xi1>
    %111 = vector.broadcast %110 : vector<8x1xi1> to vector<8x32xi1>
    %112 = vector.broadcast %cst_48 : f32 to vector<8x32xf32>
    %113 = arith.select %111, %95, %112 : vector<8x32xi1>, vector<8x32xf32>
    %114 = arith.index_cast %27 : i32 to index
    %c0_49 = arith.constant 0 : index
    %c0_50 = arith.constant 0 : index
    %115 = vector.load %arg13[%114, %c0_49, %c0_50] : memref<8x8x32xf32, #tpu.memory_space<vmem>>, vector<1x8x32xf32>
    %116 = vector.shape_cast %115 : vector<1x8x32xf32> to vector<8x32xf32>
    %117 = vector.shape_cast %113 : vector<8x32xf32> to vector<1x8x32xf32>
    tpu.vector_store %arg13[%114, %c0_49, %c0_50], %117 {strides = array<i32>} : memref<8x8x32xf32, #tpu.memory_space<vmem>>, vector<1x8x32xf32>,
    %118 = vector.shape_cast %98 : vector<8x1xi1> to vector<8x1xi1>
    %119 = vector.broadcast %118 : vector<8x1xi1> to vector<8x32xi1>
    %120 = arith.select %119, %65, %25 : vector<8x32xi1>, vector<8x32xf32>
    %121 = vector.shape_cast %101 : vector<8x1xi1> to vector<8x1xi1>
    %122 = vector.broadcast %121 : vector<8x1xi1> to vector<8x32xi1>
    %123 = arith.select %122, %95, %26 : vector<8x32xi1>, vector<8x32xf32>
    %c1_i32_51 = arith.constant 1 : i32
    %c7_i32_52 = arith.constant 7 : i32
    %124 = arith.subi %c7_i32_52, %c1_i32_51 : i32
    %c8_i32_53 = arith.constant 8 : i32
    %125 = arith.muli %c1_i32_51, %c8_i32_53 : i32
    %126 = tpu.assume_multiple %125, 8 : i32
    %c8_i32_54 = arith.constant 8 : i32
    %127 = arith.muli %124, %c8_i32_54 : i32
    %128 = tpu.assume_multiple %127, 8 : i32
    %129 = arith.index_cast %126 : i32 to index
    %c0_55 = arith.constant 0 : index
    %130 = vector.load %arg17[%129, %c0_55] : memref<64x96xf32, #tpu.memory_space<vmem>>, vector<8x96xf32>
    %131 = arith.index_cast %128 : i32 to index
    %c0_56 = arith.constant 0 : index
    %132 = vector.load %arg18[%131, %c0_56] : memref<64x96xf32, #tpu.memory_space<vmem>>, vector<8x96xf32>
    %133 = arith.truncf %120 : vector<8x32xf32> to vector<8x32xbf16>
    %cst_57 = arith.constant dense<0.000000e+00> : vector<8x96xf32>
    %134 = tpu.matmul %133, %18, %cst_57 {dimension_numbers = #tpu.dot_dimension_numbers<[1], [0], [0], [1], [0, 0, 1, 1], [], []>} : vector<8x32xbf16>, vector<32x96xbf16>, vector<8x96xf32> -> vector<8x96xf32>
    %135 = vector.extract_strided_slice %130 {offsets = [0, 0], sizes = [8, 32], strides = [1, 1]} : vector<8x96xf32> to vector<8x32xf32>
    %136 = vector.extract_strided_slice %134 {offsets = [0, 0], sizes = [8, 32], strides = [1, 1]} : vector<8x96xf32> to vector<8x32xf32>
    %137 = arith.addf %135, %136 : vector<8x32xf32>
    %138 = arith.negf %137 : vector<8x32xf32>
    %139 = math.exp %138 : vector<8x32xf32>
    %cst_58 = arith.constant 1.000000e+00 : f32
    %140 = vector.broadcast %cst_58 : f32 to vector<8x32xf32>
    %141 = arith.addf %140, %139 : vector<8x32xf32>
    %142 = arith.divf %140, %141 : vector<8x32xf32>
    %143 = vector.extract_strided_slice %130 {offsets = [0, 32], sizes = [8, 32], strides = [1, 1]} : vector<8x96xf32> to vector<8x32xf32>
    %144 = vector.extract_strided_slice %134 {offsets = [0, 32], sizes = [8, 32], strides = [1, 1]} : vector<8x96xf32> to vector<8x32xf32>
    %145 = arith.addf %143, %144 : vector<8x32xf32>
    %146 = arith.negf %145 : vector<8x32xf32>
    %147 = math.exp %146 : vector<8x32xf32>
    %cst_59 = arith.constant 1.000000e+00 : f32
    %148 = vector.broadcast %cst_59 : f32 to vector<8x32xf32>
    %149 = arith.addf %148, %147 : vector<8x32xf32>
    %150 = arith.divf %148, %149 : vector<8x32xf32>
    %151 = vector.extract_strided_slice %130 {offsets = [0, 64], sizes = [8, 32], strides = [1, 1]} : vector<8x96xf32> to vector<8x32xf32>
    %152 = vector.extract_strided_slice %134 {offsets = [0, 64], sizes = [8, 32], strides = [1, 1]} : vector<8x96xf32> to vector<8x32xf32>
    %153 = vector.broadcast %20 : vector<1x32xf32> to vector<8x32xf32>
    %154 = arith.addf %152, %153 : vector<8x32xf32>
    %155 = arith.mulf %142, %154 : vector<8x32xf32>
    %156 = arith.addf %151, %155 : vector<8x32xf32>
    %157 = math.tanh %156 : vector<8x32xf32>
    %cst_60 = arith.constant 1.000000e+00 : f32
    %158 = vector.broadcast %cst_60 : f32 to vector<8x32xf32>
    %159 = arith.subf %158, %150 : vector<8x32xf32>
    %160 = arith.mulf %159, %157 : vector<8x32xf32>
    %161 = arith.mulf %150, %120 : vector<8x32xf32>
    %162 = arith.addf %160, %161 : vector<8x32xf32>
    %163 = arith.truncf %123 : vector<8x32xf32> to vector<8x32xbf16>
    %cst_61 = arith.constant dense<0.000000e+00> : vector<8x96xf32>
    %164 = tpu.matmul %163, %19, %cst_61 {dimension_numbers = #tpu.dot_dimension_numbers<[1], [0], [0], [1], [0, 0, 1, 1], [], []>} : vector<8x32xbf16>, vector<32x96xbf16>, vector<8x96xf32> -> vector<8x96xf32>
    %165 = vector.extract_strided_slice %132 {offsets = [0, 0], sizes = [8, 32], strides = [1, 1]} : vector<8x96xf32> to vector<8x32xf32>
    %166 = vector.extract_strided_slice %164 {offsets = [0, 0], sizes = [8, 32], strides = [1, 1]} : vector<8x96xf32> to vector<8x32xf32>
    %167 = arith.addf %165, %166 : vector<8x32xf32>
    %168 = arith.negf %167 : vector<8x32xf32>
    %169 = math.exp %168 : vector<8x32xf32>
    %cst_62 = arith.constant 1.000000e+00 : f32
    %170 = vector.broadcast %cst_62 : f32 to vector<8x32xf32>
    %171 = arith.addf %170, %169 : vector<8x32xf32>
    %172 = arith.divf %170, %171 : vector<8x32xf32>
    %173 = vector.extract_strided_slice %132 {offsets = [0, 32], sizes = [8, 32], strides = [1, 1]} : vector<8x96xf32> to vector<8x32xf32>
    %174 = vector.extract_strided_slice %164 {offsets = [0, 32], sizes = [8, 32], strides = [1, 1]} : vector<8x96xf32> to vector<8x32xf32>
    %175 = arith.addf %173, %174 : vector<8x32xf32>
    %176 = arith.negf %175 : vector<8x32xf32>
    %177 = math.exp %176 : vector<8x32xf32>
    %cst_63 = arith.constant 1.000000e+00 : f32
    %178 = vector.broadcast %cst_63 : f32 to vector<8x32xf32>
    %179 = arith.addf %178, %177 : vector<8x32xf32>
    %180 = arith.divf %178, %179 : vector<8x32xf32>
    %181 = vector.extract_strided_slice %132 {offsets = [0, 64], sizes = [8, 32], strides = [1, 1]} : vector<8x96xf32> to vector<8x32xf32>
    %182 = vector.extract_strided_slice %164 {offsets = [0, 64], sizes = [8, 32], strides = [1, 1]} : vector<8x96xf32> to vector<8x32xf32>
    %183 = vector.broadcast %21 : vector<1x32xf32> to vector<8x32xf32>
    %184 = arith.addf %182, %183 : vector<8x32xf32>
    %185 = arith.mulf %172, %184 : vector<8x32xf32>
    %186 = arith.addf %181, %185 : vector<8x32xf32>
    %187 = math.tanh %186 : vector<8x32xf32>
    %cst_64 = arith.constant 1.000000e+00 : f32
    %188 = vector.broadcast %cst_64 : f32 to vector<8x32xf32>
    %189 = arith.subf %188, %180 : vector<8x32xf32>
    %190 = arith.mulf %189, %187 : vector<8x32xf32>
    %191 = arith.mulf %180, %123 : vector<8x32xf32>
    %192 = arith.addf %190, %191 : vector<8x32xf32>
    %193 = arith.addi %22, %c1_i32_51 : i32
    %194 = vector.broadcast %193 : i32 to vector<8x1xi32>
    %195 = arith.cmpi slt, %194, %3 : vector<8x1xi32>
    %196 = arith.addi %24, %124 : i32
    %197 = vector.broadcast %196 : i32 to vector<8x1xi32>
    %198 = arith.cmpi slt, %197, %3 : vector<8x1xi32>
    %cst_65 = arith.constant 0.000000e+00 : f32
    %199 = vector.shape_cast %195 : vector<8x1xi1> to vector<8x1xi1>
    %200 = vector.broadcast %199 : vector<8x1xi1> to vector<8x32xi1>
    %201 = vector.broadcast %cst_65 : f32 to vector<8x32xf32>
    %202 = arith.select %200, %162, %201 : vector<8x32xi1>, vector<8x32xf32>
    %203 = arith.index_cast %c1_i32_51 : i32 to index
    %c0_66 = arith.constant 0 : index
    %c0_67 = arith.constant 0 : index
    %204 = vector.load %arg12[%203, %c0_66, %c0_67] : memref<8x8x32xf32, #tpu.memory_space<vmem>>, vector<1x8x32xf32>
    %205 = vector.shape_cast %204 : vector<1x8x32xf32> to vector<8x32xf32>
    %206 = vector.shape_cast %202 : vector<8x32xf32> to vector<1x8x32xf32>
    tpu.vector_store %arg12[%203, %c0_66, %c0_67], %206 {strides = array<i32>} : memref<8x8x32xf32, #tpu.memory_space<vmem>>, vector<1x8x32xf32>,
    %cst_68 = arith.constant 0.000000e+00 : f32
    %207 = vector.shape_cast %198 : vector<8x1xi1> to vector<8x1xi1>
    %208 = vector.broadcast %207 : vector<8x1xi1> to vector<8x32xi1>
    %209 = vector.broadcast %cst_68 : f32 to vector<8x32xf32>
    %210 = arith.select %208, %192, %209 : vector<8x32xi1>, vector<8x32xf32>
    %211 = arith.index_cast %124 : i32 to index
    %c0_69 = arith.constant 0 : index
    %c0_70 = arith.constant 0 : index
    %212 = vector.load %arg13[%211, %c0_69, %c0_70] : memref<8x8x32xf32, #tpu.memory_space<vmem>>, vector<1x8x32xf32>
    %213 = vector.shape_cast %212 : vector<1x8x32xf32> to vector<8x32xf32>
    %214 = vector.shape_cast %210 : vector<8x32xf32> to vector<1x8x32xf32>
    tpu.vector_store %arg13[%211, %c0_69, %c0_70], %214 {strides = array<i32>} : memref<8x8x32xf32, #tpu.memory_space<vmem>>, vector<1x8x32xf32>,
    %215 = vector.shape_cast %195 : vector<8x1xi1> to vector<8x1xi1>
    %216 = vector.broadcast %215 : vector<8x1xi1> to vector<8x32xi1>
    %217 = arith.select %216, %162, %120 : vector<8x32xi1>, vector<8x32xf32>
    %218 = vector.shape_cast %198 : vector<8x1xi1> to vector<8x1xi1>
    %219 = vector.broadcast %218 : vector<8x1xi1> to vector<8x32xi1>
    %220 = arith.select %219, %192, %123 : vector<8x32xi1>, vector<8x32xf32>
    %c2_i32 = arith.constant 2 : i32
    %c7_i32_71 = arith.constant 7 : i32
    %221 = arith.subi %c7_i32_71, %c2_i32 : i32
    %c8_i32_72 = arith.constant 8 : i32
    %222 = arith.muli %c2_i32, %c8_i32_72 : i32
    %223 = tpu.assume_multiple %222, 8 : i32
    %c8_i32_73 = arith.constant 8 : i32
    %224 = arith.muli %221, %c8_i32_73 : i32
    %225 = tpu.assume_multiple %224, 8 : i32
    %226 = arith.index_cast %223 : i32 to index
    %c0_74 = arith.constant 0 : index
    %227 = vector.load %arg17[%226, %c0_74] : memref<64x96xf32, #tpu.memory_space<vmem>>, vector<8x96xf32>
    %228 = arith.index_cast %225 : i32 to index
    %c0_75 = arith.constant 0 : index
    %229 = vector.load %arg18[%228, %c0_75] : memref<64x96xf32, #tpu.memory_space<vmem>>, vector<8x96xf32>
    %230 = arith.truncf %217 : vector<8x32xf32> to vector<8x32xbf16>
    %cst_76 = arith.constant dense<0.000000e+00> : vector<8x96xf32>
    %231 = tpu.matmul %230, %18, %cst_76 {dimension_numbers = #tpu.dot_dimension_numbers<[1], [0], [0], [1], [0, 0, 1, 1], [], []>} : vector<8x32xbf16>, vector<32x96xbf16>, vector<8x96xf32> -> vector<8x96xf32>
    %232 = vector.extract_strided_slice %227 {offsets = [0, 0], sizes = [8, 32], strides = [1, 1]} : vector<8x96xf32> to vector<8x32xf32>
    %233 = vector.extract_strided_slice %231 {offsets = [0, 0], sizes = [8, 32], strides = [1, 1]} : vector<8x96xf32> to vector<8x32xf32>
    %234 = arith.addf %232, %233 : vector<8x32xf32>
    %235 = arith.negf %234 : vector<8x32xf32>
    %236 = math.exp %235 : vector<8x32xf32>
    %cst_77 = arith.constant 1.000000e+00 : f32
    %237 = vector.broadcast %cst_77 : f32 to vector<8x32xf32>
    %238 = arith.addf %237, %236 : vector<8x32xf32>
    %239 = arith.divf %237, %238 : vector<8x32xf32>
    %240 = vector.extract_strided_slice %227 {offsets = [0, 32], sizes = [8, 32], strides = [1, 1]} : vector<8x96xf32> to vector<8x32xf32>
    %241 = vector.extract_strided_slice %231 {offsets = [0, 32], sizes = [8, 32], strides = [1, 1]} : vector<8x96xf32> to vector<8x32xf32>
    %242 = arith.addf %240, %241 : vector<8x32xf32>
    %243 = arith.negf %242 : vector<8x32xf32>
    %244 = math.exp %243 : vector<8x32xf32>
    %cst_78 = arith.constant 1.000000e+00 : f32
    %245 = vector.broadcast %cst_78 : f32 to vector<8x32xf32>
    %246 = arith.addf %245, %244 : vector<8x32xf32>
    %247 = arith.divf %245, %246 : vector<8x32xf32>
    %248 = vector.extract_strided_slice %227 {offsets = [0, 64], sizes = [8, 32], strides = [1, 1]} : vector<8x96xf32> to vector<8x32xf32>
    %249 = vector.extract_strided_slice %231 {offsets = [0, 64], sizes = [8, 32], strides = [1, 1]} : vector<8x96xf32> to vector<8x32xf32>
    %250 = vector.broadcast %20 : vector<1x32xf32> to vector<8x32xf32>
    %251 = arith.addf %249, %250 : vector<8x32xf32>
    %252 = arith.mulf %239, %251 : vector<8x32xf32>
    %253 = arith.addf %248, %252 : vector<8x32xf32>
    %254 = math.tanh %253 : vector<8x32xf32>
    %cst_79 = arith.constant 1.000000e+00 : f32
    %255 = vector.broadcast %cst_79 : f32 to vector<8x32xf32>
    %256 = arith.subf %255, %247 : vector<8x32xf32>
    %257 = arith.mulf %256, %254 : vector<8x32xf32>
    %258 = arith.mulf %247, %217 : vector<8x32xf32>
    %259 = arith.addf %257, %258 : vector<8x32xf32>
    %260 = arith.truncf %220 : vector<8x32xf32> to vector<8x32xbf16>
    %cst_80 = arith.constant dense<0.000000e+00> : vector<8x96xf32>
    %261 = tpu.matmul %260, %19, %cst_80 {dimension_numbers = #tpu.dot_dimension_numbers<[1], [0], [0], [1], [0, 0, 1, 1], [], []>} : vector<8x32xbf16>, vector<32x96xbf16>, vector<8x96xf32> -> vector<8x96xf32>
    %262 = vector.extract_strided_slice %229 {offsets = [0, 0], sizes = [8, 32], strides = [1, 1]} : vector<8x96xf32> to vector<8x32xf32>
    %263 = vector.extract_strided_slice %261 {offsets = [0, 0], sizes = [8, 32], strides = [1, 1]} : vector<8x96xf32> to vector<8x32xf32>
    %264 = arith.addf %262, %263 : vector<8x32xf32>
    %265 = arith.negf %264 : vector<8x32xf32>
    %266 = math.exp %265 : vector<8x32xf32>
    %cst_81 = arith.constant 1.000000e+00 : f32
    %267 = vector.broadcast %cst_81 : f32 to vector<8x32xf32>
    %268 = arith.addf %267, %266 : vector<8x32xf32>
    %269 = arith.divf %267, %268 : vector<8x32xf32>
    %270 = vector.extract_strided_slice %229 {offsets = [0, 32], sizes = [8, 32], strides = [1, 1]} : vector<8x96xf32> to vector<8x32xf32>
    %271 = vector.extract_strided_slice %261 {offsets = [0, 32], sizes = [8, 32], strides = [1, 1]} : vector<8x96xf32> to vector<8x32xf32>
    %272 = arith.addf %270, %271 : vector<8x32xf32>
    %273 = arith.negf %272 : vector<8x32xf32>
    %274 = math.exp %273 : vector<8x32xf32>
    %cst_82 = arith.constant 1.000000e+00 : f32
    %275 = vector.broadcast %cst_82 : f32 to vector<8x32xf32>
    %276 = arith.addf %275, %274 : vector<8x32xf32>
    %277 = arith.divf %275, %276 : vector<8x32xf32>
    %278 = vector.extract_strided_slice %229 {offsets = [0, 64], sizes = [8, 32], strides = [1, 1]} : vector<8x96xf32> to vector<8x32xf32>
    %279 = vector.extract_strided_slice %261 {offsets = [0, 64], sizes = [8, 32], strides = [1, 1]} : vector<8x96xf32> to vector<8x32xf32>
    %280 = vector.broadcast %21 : vector<1x32xf32> to vector<8x32xf32>
    %281 = arith.addf %279, %280 : vector<8x32xf32>
    %282 = arith.mulf %269, %281 : vector<8x32xf32>
    %283 = arith.addf %278, %282 : vector<8x32xf32>
    %284 = math.tanh %283 : vector<8x32xf32>
    %cst_83 = arith.constant 1.000000e+00 : f32
    %285 = vector.broadcast %cst_83 : f32 to vector<8x32xf32>
    %286 = arith.subf %285, %277 : vector<8x32xf32>
    %287 = arith.mulf %286, %284 : vector<8x32xf32>
    %288 = arith.mulf %277, %220 : vector<8x32xf32>
    %289 = arith.addf %287, %288 : vector<8x32xf32>
    %290 = arith.addi %22, %c2_i32 : i32
    %291 = vector.broadcast %290 : i32 to vector<8x1xi32>
    %292 = arith.cmpi slt, %291, %3 : vector<8x1xi32>
    %293 = arith.addi %24, %221 : i32
    %294 = vector.broadcast %293 : i32 to vector<8x1xi32>
    %295 = arith.cmpi slt, %294, %3 : vector<8x1xi32>
    %cst_84 = arith.constant 0.000000e+00 : f32
    %296 = vector.shape_cast %292 : vector<8x1xi1> to vector<8x1xi1>
    %297 = vector.broadcast %296 : vector<8x1xi1> to vector<8x32xi1>
    %298 = vector.broadcast %cst_84 : f32 to vector<8x32xf32>
    %299 = arith.select %297, %259, %298 : vector<8x32xi1>, vector<8x32xf32>
    %300 = arith.index_cast %c2_i32 : i32 to index
    %c0_85 = arith.constant 0 : index
    %c0_86 = arith.constant 0 : index
    %301 = vector.load %arg12[%300, %c0_85, %c0_86] : memref<8x8x32xf32, #tpu.memory_space<vmem>>, vector<1x8x32xf32>
    %302 = vector.shape_cast %301 : vector<1x8x32xf32> to vector<8x32xf32>
    %303 = vector.shape_cast %299 : vector<8x32xf32> to vector<1x8x32xf32>
    tpu.vector_store %arg12[%300, %c0_85, %c0_86], %303 {strides = array<i32>} : memref<8x8x32xf32, #tpu.memory_space<vmem>>, vector<1x8x32xf32>,
    %cst_87 = arith.constant 0.000000e+00 : f32
    %304 = vector.shape_cast %295 : vector<8x1xi1> to vector<8x1xi1>
    %305 = vector.broadcast %304 : vector<8x1xi1> to vector<8x32xi1>
    %306 = vector.broadcast %cst_87 : f32 to vector<8x32xf32>
    %307 = arith.select %305, %289, %306 : vector<8x32xi1>, vector<8x32xf32>
    %308 = arith.index_cast %221 : i32 to index
    %c0_88 = arith.constant 0 : index
    %c0_89 = arith.constant 0 : index
    %309 = vector.load %arg13[%308, %c0_88, %c0_89] : memref<8x8x32xf32, #tpu.memory_space<vmem>>, vector<1x8x32xf32>
    %310 = vector.shape_cast %309 : vector<1x8x32xf32> to vector<8x32xf32>
    %311 = vector.shape_cast %307 : vector<8x32xf32> to vector<1x8x32xf32>
    tpu.vector_store %arg13[%308, %c0_88, %c0_89], %311 {strides = array<i32>} : memref<8x8x32xf32, #tpu.memory_space<vmem>>, vector<1x8x32xf32>,
    %312 = vector.shape_cast %292 : vector<8x1xi1> to vector<8x1xi1>
    %313 = vector.broadcast %312 : vector<8x1xi1> to vector<8x32xi1>
    %314 = arith.select %313, %259, %217 : vector<8x32xi1>, vector<8x32xf32>
    %315 = vector.shape_cast %295 : vector<8x1xi1> to vector<8x1xi1>
    %316 = vector.broadcast %315 : vector<8x1xi1> to vector<8x32xi1>
    %317 = arith.select %316, %289, %220 : vector<8x32xi1>, vector<8x32xf32>
    %c3_i32 = arith.constant 3 : i32
    %c7_i32_90 = arith.constant 7 : i32
    %318 = arith.subi %c7_i32_90, %c3_i32 : i32
    %c8_i32_91 = arith.constant 8 : i32
    %319 = arith.muli %c3_i32, %c8_i32_91 : i32
    %320 = tpu.assume_multiple %319, 8 : i32
    %c8_i32_92 = arith.constant 8 : i32
    %321 = arith.muli %318, %c8_i32_92 : i32
    %322 = tpu.assume_multiple %321, 8 : i32
    %323 = arith.index_cast %320 : i32 to index
    %c0_93 = arith.constant 0 : index
    %324 = vector.load %arg17[%323, %c0_93] : memref<64x96xf32, #tpu.memory_space<vmem>>, vector<8x96xf32>
    %325 = arith.index_cast %322 : i32 to index
    %c0_94 = arith.constant 0 : index
    %326 = vector.load %arg18[%325, %c0_94] : memref<64x96xf32, #tpu.memory_space<vmem>>, vector<8x96xf32>
    %327 = arith.truncf %314 : vector<8x32xf32> to vector<8x32xbf16>
    %cst_95 = arith.constant dense<0.000000e+00> : vector<8x96xf32>
    %328 = tpu.matmul %327, %18, %cst_95 {dimension_numbers = #tpu.dot_dimension_numbers<[1], [0], [0], [1], [0, 0, 1, 1], [], []>} : vector<8x32xbf16>, vector<32x96xbf16>, vector<8x96xf32> -> vector<8x96xf32>
    %329 = vector.extract_strided_slice %324 {offsets = [0, 0], sizes = [8, 32], strides = [1, 1]} : vector<8x96xf32> to vector<8x32xf32>
    %330 = vector.extract_strided_slice %328 {offsets = [0, 0], sizes = [8, 32], strides = [1, 1]} : vector<8x96xf32> to vector<8x32xf32>
    %331 = arith.addf %329, %330 : vector<8x32xf32>
    %332 = arith.negf %331 : vector<8x32xf32>
    %333 = math.exp %332 : vector<8x32xf32>
    %cst_96 = arith.constant 1.000000e+00 : f32
    %334 = vector.broadcast %cst_96 : f32 to vector<8x32xf32>
    %335 = arith.addf %334, %333 : vector<8x32xf32>
    %336 = arith.divf %334, %335 : vector<8x32xf32>
    %337 = vector.extract_strided_slice %324 {offsets = [0, 32], sizes = [8, 32], strides = [1, 1]} : vector<8x96xf32> to vector<8x32xf32>
    %338 = vector.extract_strided_slice %328 {offsets = [0, 32], sizes = [8, 32], strides = [1, 1]} : vector<8x96xf32> to vector<8x32xf32>
    %339 = arith.addf %337, %338 : vector<8x32xf32>
    %340 = arith.negf %339 : vector<8x32xf32>
    %341 = math.exp %340 : vector<8x32xf32>
    %cst_97 = arith.constant 1.000000e+00 : f32
    %342 = vector.broadcast %cst_97 : f32 to vector<8x32xf32>
    %343 = arith.addf %342, %341 : vector<8x32xf32>
    %344 = arith.divf %342, %343 : vector<8x32xf32>
    %345 = vector.extract_strided_slice %324 {offsets = [0, 64], sizes = [8, 32], strides = [1, 1]} : vector<8x96xf32> to vector<8x32xf32>
    %346 = vector.extract_strided_slice %328 {offsets = [0, 64], sizes = [8, 32], strides = [1, 1]} : vector<8x96xf32> to vector<8x32xf32>
    %347 = vector.broadcast %20 : vector<1x32xf32> to vector<8x32xf32>
    %348 = arith.addf %346, %347 : vector<8x32xf32>
    %349 = arith.mulf %336, %348 : vector<8x32xf32>
    %350 = arith.addf %345, %349 : vector<8x32xf32>
    %351 = math.tanh %350 : vector<8x32xf32>
    %cst_98 = arith.constant 1.000000e+00 : f32
    %352 = vector.broadcast %cst_98 : f32 to vector<8x32xf32>
    %353 = arith.subf %352, %344 : vector<8x32xf32>
    %354 = arith.mulf %353, %351 : vector<8x32xf32>
    %355 = arith.mulf %344, %314 : vector<8x32xf32>
    %356 = arith.addf %354, %355 : vector<8x32xf32>
    %357 = arith.truncf %317 : vector<8x32xf32> to vector<8x32xbf16>
    %cst_99 = arith.constant dense<0.000000e+00> : vector<8x96xf32>
    %358 = tpu.matmul %357, %19, %cst_99 {dimension_numbers = #tpu.dot_dimension_numbers<[1], [0], [0], [1], [0, 0, 1, 1], [], []>} : vector<8x32xbf16>, vector<32x96xbf16>, vector<8x96xf32> -> vector<8x96xf32>
    %359 = vector.extract_strided_slice %326 {offsets = [0, 0], sizes = [8, 32], strides = [1, 1]} : vector<8x96xf32> to vector<8x32xf32>
    %360 = vector.extract_strided_slice %358 {offsets = [0, 0], sizes = [8, 32], strides = [1, 1]} : vector<8x96xf32> to vector<8x32xf32>
    %361 = arith.addf %359, %360 : vector<8x32xf32>
    %362 = arith.negf %361 : vector<8x32xf32>
    %363 = math.exp %362 : vector<8x32xf32>
    %cst_100 = arith.constant 1.000000e+00 : f32
    %364 = vector.broadcast %cst_100 : f32 to vector<8x32xf32>
    %365 = arith.addf %364, %363 : vector<8x32xf32>
    %366 = arith.divf %364, %365 : vector<8x32xf32>
    %367 = vector.extract_strided_slice %326 {offsets = [0, 32], sizes = [8, 32], strides = [1, 1]} : vector<8x96xf32> to vector<8x32xf32>
    %368 = vector.extract_strided_slice %358 {offsets = [0, 32], sizes = [8, 32], strides = [1, 1]} : vector<8x96xf32> to vector<8x32xf32>
    %369 = arith.addf %367, %368 : vector<8x32xf32>
    %370 = arith.negf %369 : vector<8x32xf32>
    %371 = math.exp %370 : vector<8x32xf32>
    %cst_101 = arith.constant 1.000000e+00 : f32
    %372 = vector.broadcast %cst_101 : f32 to vector<8x32xf32>
    %373 = arith.addf %372, %371 : vector<8x32xf32>
    %374 = arith.divf %372, %373 : vector<8x32xf32>
    %375 = vector.extract_strided_slice %326 {offsets = [0, 64], sizes = [8, 32], strides = [1, 1]} : vector<8x96xf32> to vector<8x32xf32>
    %376 = vector.extract_strided_slice %358 {offsets = [0, 64], sizes = [8, 32], strides = [1, 1]} : vector<8x96xf32> to vector<8x32xf32>
    %377 = vector.broadcast %21 : vector<1x32xf32> to vector<8x32xf32>
    %378 = arith.addf %376, %377 : vector<8x32xf32>
    %379 = arith.mulf %366, %378 : vector<8x32xf32>
    %380 = arith.addf %375, %379 : vector<8x32xf32>
    %381 = math.tanh %380 : vector<8x32xf32>
    %cst_102 = arith.constant 1.000000e+00 : f32
    %382 = vector.broadcast %cst_102 : f32 to vector<8x32xf32>
    %383 = arith.subf %382, %374 : vector<8x32xf32>
    %384 = arith.mulf %383, %381 : vector<8x32xf32>
    %385 = arith.mulf %374, %317 : vector<8x32xf32>
    %386 = arith.addf %384, %385 : vector<8x32xf32>
    %387 = arith.addi %22, %c3_i32 : i32
    %388 = vector.broadcast %387 : i32 to vector<8x1xi32>
    %389 = arith.cmpi slt, %388, %3 : vector<8x1xi32>
    %390 = arith.addi %24, %318 : i32
    %391 = vector.broadcast %390 : i32 to vector<8x1xi32>
    %392 = arith.cmpi slt, %391, %3 : vector<8x1xi32>
    %cst_103 = arith.constant 0.000000e+00 : f32
    %393 = vector.shape_cast %389 : vector<8x1xi1> to vector<8x1xi1>
    %394 = vector.broadcast %393 : vector<8x1xi1> to vector<8x32xi1>
    %395 = vector.broadcast %cst_103 : f32 to vector<8x32xf32>
    %396 = arith.select %394, %356, %395 : vector<8x32xi1>, vector<8x32xf32>
    %397 = arith.index_cast %c3_i32 : i32 to index
    %c0_104 = arith.constant 0 : index
    %c0_105 = arith.constant 0 : index
    %398 = vector.load %arg12[%397, %c0_104, %c0_105] : memref<8x8x32xf32, #tpu.memory_space<vmem>>, vector<1x8x32xf32>
    %399 = vector.shape_cast %398 : vector<1x8x32xf32> to vector<8x32xf32>
    %400 = vector.shape_cast %396 : vector<8x32xf32> to vector<1x8x32xf32>
    tpu.vector_store %arg12[%397, %c0_104, %c0_105], %400 {strides = array<i32>} : memref<8x8x32xf32, #tpu.memory_space<vmem>>, vector<1x8x32xf32>,
    %cst_106 = arith.constant 0.000000e+00 : f32
    %401 = vector.shape_cast %392 : vector<8x1xi1> to vector<8x1xi1>
    %402 = vector.broadcast %401 : vector<8x1xi1> to vector<8x32xi1>
    %403 = vector.broadcast %cst_106 : f32 to vector<8x32xf32>
    %404 = arith.select %402, %386, %403 : vector<8x32xi1>, vector<8x32xf32>
    %405 = arith.index_cast %318 : i32 to index
    %c0_107 = arith.constant 0 : index
    %c0_108 = arith.constant 0 : index
    %406 = vector.load %arg13[%405, %c0_107, %c0_108] : memref<8x8x32xf32, #tpu.memory_space<vmem>>, vector<1x8x32xf32>
    %407 = vector.shape_cast %406 : vector<1x8x32xf32> to vector<8x32xf32>
    %408 = vector.shape_cast %404 : vector<8x32xf32> to vector<1x8x32xf32>
    tpu.vector_store %arg13[%405, %c0_107, %c0_108], %408 {strides = array<i32>} : memref<8x8x32xf32, #tpu.memory_space<vmem>>, vector<1x8x32xf32>,
    %409 = vector.shape_cast %389 : vector<8x1xi1> to vector<8x1xi1>
    %410 = vector.broadcast %409 : vector<8x1xi1> to vector<8x32xi1>
    %411 = arith.select %410, %356, %314 : vector<8x32xi1>, vector<8x32xf32>
    %412 = vector.shape_cast %392 : vector<8x1xi1> to vector<8x1xi1>
    %413 = vector.broadcast %412 : vector<8x1xi1> to vector<8x32xi1>
    %414 = arith.select %413, %386, %317 : vector<8x32xi1>, vector<8x32xf32>
    %c4_i32 = arith.constant 4 : i32
    %c7_i32_109 = arith.constant 7 : i32
    %415 = arith.subi %c7_i32_109, %c4_i32 : i32
    %c8_i32_110 = arith.constant 8 : i32
    %416 = arith.muli %c4_i32, %c8_i32_110 : i32
    %417 = tpu.assume_multiple %416, 8 : i32
    %c8_i32_111 = arith.constant 8 : i32
    %418 = arith.muli %415, %c8_i32_111 : i32
    %419 = tpu.assume_multiple %418, 8 : i32
    %420 = arith.index_cast %417 : i32 to index
    %c0_112 = arith.constant 0 : index
    %421 = vector.load %arg17[%420, %c0_112] : memref<64x96xf32, #tpu.memory_space<vmem>>, vector<8x96xf32>
    %422 = arith.index_cast %419 : i32 to index
    %c0_113 = arith.constant 0 : index
    %423 = vector.load %arg18[%422, %c0_113] : memref<64x96xf32, #tpu.memory_space<vmem>>, vector<8x96xf32>
    %424 = arith.truncf %411 : vector<8x32xf32> to vector<8x32xbf16>
    %cst_114 = arith.constant dense<0.000000e+00> : vector<8x96xf32>
    %425 = tpu.matmul %424, %18, %cst_114 {dimension_numbers = #tpu.dot_dimension_numbers<[1], [0], [0], [1], [0, 0, 1, 1], [], []>} : vector<8x32xbf16>, vector<32x96xbf16>, vector<8x96xf32> -> vector<8x96xf32>
    %426 = vector.extract_strided_slice %421 {offsets = [0, 0], sizes = [8, 32], strides = [1, 1]} : vector<8x96xf32> to vector<8x32xf32>
    %427 = vector.extract_strided_slice %425 {offsets = [0, 0], sizes = [8, 32], strides = [1, 1]} : vector<8x96xf32> to vector<8x32xf32>
    %428 = arith.addf %426, %427 : vector<8x32xf32>
    %429 = arith.negf %428 : vector<8x32xf32>
    %430 = math.exp %429 : vector<8x32xf32>
    %cst_115 = arith.constant 1.000000e+00 : f32
    %431 = vector.broadcast %cst_115 : f32 to vector<8x32xf32>
    %432 = arith.addf %431, %430 : vector<8x32xf32>
    %433 = arith.divf %431, %432 : vector<8x32xf32>
    %434 = vector.extract_strided_slice %421 {offsets = [0, 32], sizes = [8, 32], strides = [1, 1]} : vector<8x96xf32> to vector<8x32xf32>
    %435 = vector.extract_strided_slice %425 {offsets = [0, 32], sizes = [8, 32], strides = [1, 1]} : vector<8x96xf32> to vector<8x32xf32>
    %436 = arith.addf %434, %435 : vector<8x32xf32>
    %437 = arith.negf %436 : vector<8x32xf32>
    %438 = math.exp %437 : vector<8x32xf32>
    %cst_116 = arith.constant 1.000000e+00 : f32
    %439 = vector.broadcast %cst_116 : f32 to vector<8x32xf32>
    %440 = arith.addf %439, %438 : vector<8x32xf32>
    %441 = arith.divf %439, %440 : vector<8x32xf32>
    %442 = vector.extract_strided_slice %421 {offsets = [0, 64], sizes = [8, 32], strides = [1, 1]} : vector<8x96xf32> to vector<8x32xf32>
    %443 = vector.extract_strided_slice %425 {offsets = [0, 64], sizes = [8, 32], strides = [1, 1]} : vector<8x96xf32> to vector<8x32xf32>
    %444 = vector.broadcast %20 : vector<1x32xf32> to vector<8x32xf32>
    %445 = arith.addf %443, %444 : vector<8x32xf32>
    %446 = arith.mulf %433, %445 : vector<8x32xf32>
    %447 = arith.addf %442, %446 : vector<8x32xf32>
    %448 = math.tanh %447 : vector<8x32xf32>
    %cst_117 = arith.constant 1.000000e+00 : f32
    %449 = vector.broadcast %cst_117 : f32 to vector<8x32xf32>
    %450 = arith.subf %449, %441 : vector<8x32xf32>
    %451 = arith.mulf %450, %448 : vector<8x32xf32>
    %452 = arith.mulf %441, %411 : vector<8x32xf32>
    %453 = arith.addf %451, %452 : vector<8x32xf32>
    %454 = arith.truncf %414 : vector<8x32xf32> to vector<8x32xbf16>
    %cst_118 = arith.constant dense<0.000000e+00> : vector<8x96xf32>
    %455 = tpu.matmul %454, %19, %cst_118 {dimension_numbers = #tpu.dot_dimension_numbers<[1], [0], [0], [1], [0, 0, 1, 1], [], []>} : vector<8x32xbf16>, vector<32x96xbf16>, vector<8x96xf32> -> vector<8x96xf32>
    %456 = vector.extract_strided_slice %423 {offsets = [0, 0], sizes = [8, 32], strides = [1, 1]} : vector<8x96xf32> to vector<8x32xf32>
    %457 = vector.extract_strided_slice %455 {offsets = [0, 0], sizes = [8, 32], strides = [1, 1]} : vector<8x96xf32> to vector<8x32xf32>
    %458 = arith.addf %456, %457 : vector<8x32xf32>
    %459 = arith.negf %458 : vector<8x32xf32>
    %460 = math.exp %459 : vector<8x32xf32>
    %cst_119 = arith.constant 1.000000e+00 : f32
    %461 = vector.broadcast %cst_119 : f32 to vector<8x32xf32>
    %462 = arith.addf %461, %460 : vector<8x32xf32>
    %463 = arith.divf %461, %462 : vector<8x32xf32>
    %464 = vector.extract_strided_slice %423 {offsets = [0, 32], sizes = [8, 32], strides = [1, 1]} : vector<8x96xf32> to vector<8x32xf32>
    %465 = vector.extract_strided_slice %455 {offsets = [0, 32], sizes = [8, 32], strides = [1, 1]} : vector<8x96xf32> to vector<8x32xf32>
    %466 = arith.addf %464, %465 : vector<8x32xf32>
    %467 = arith.negf %466 : vector<8x32xf32>
    %468 = math.exp %467 : vector<8x32xf32>
    %cst_120 = arith.constant 1.000000e+00 : f32
    %469 = vector.broadcast %cst_120 : f32 to vector<8x32xf32>
    %470 = arith.addf %469, %468 : vector<8x32xf32>
    %471 = arith.divf %469, %470 : vector<8x32xf32>
    %472 = vector.extract_strided_slice %423 {offsets = [0, 64], sizes = [8, 32], strides = [1, 1]} : vector<8x96xf32> to vector<8x32xf32>
    %473 = vector.extract_strided_slice %455 {offsets = [0, 64], sizes = [8, 32], strides = [1, 1]} : vector<8x96xf32> to vector<8x32xf32>
    %474 = vector.broadcast %21 : vector<1x32xf32> to vector<8x32xf32>
    %475 = arith.addf %473, %474 : vector<8x32xf32>
    %476 = arith.mulf %463, %475 : vector<8x32xf32>
    %477 = arith.addf %472, %476 : vector<8x32xf32>
    %478 = math.tanh %477 : vector<8x32xf32>
    %cst_121 = arith.constant 1.000000e+00 : f32
    %479 = vector.broadcast %cst_121 : f32 to vector<8x32xf32>
    %480 = arith.subf %479, %471 : vector<8x32xf32>
    %481 = arith.mulf %480, %478 : vector<8x32xf32>
    %482 = arith.mulf %471, %414 : vector<8x32xf32>
    %483 = arith.addf %481, %482 : vector<8x32xf32>
    %484 = arith.addi %22, %c4_i32 : i32
    %485 = vector.broadcast %484 : i32 to vector<8x1xi32>
    %486 = arith.cmpi slt, %485, %3 : vector<8x1xi32>
    %487 = arith.addi %24, %415 : i32
    %488 = vector.broadcast %487 : i32 to vector<8x1xi32>
    %489 = arith.cmpi slt, %488, %3 : vector<8x1xi32>
    %cst_122 = arith.constant 0.000000e+00 : f32
    %490 = vector.shape_cast %486 : vector<8x1xi1> to vector<8x1xi1>
    %491 = vector.broadcast %490 : vector<8x1xi1> to vector<8x32xi1>
    %492 = vector.broadcast %cst_122 : f32 to vector<8x32xf32>
    %493 = arith.select %491, %453, %492 : vector<8x32xi1>, vector<8x32xf32>
    %494 = arith.index_cast %c4_i32 : i32 to index
    %c0_123 = arith.constant 0 : index
    %c0_124 = arith.constant 0 : index
    %495 = vector.load %arg12[%494, %c0_123, %c0_124] : memref<8x8x32xf32, #tpu.memory_space<vmem>>, vector<1x8x32xf32>
    %496 = vector.shape_cast %495 : vector<1x8x32xf32> to vector<8x32xf32>
    %497 = vector.shape_cast %493 : vector<8x32xf32> to vector<1x8x32xf32>
    tpu.vector_store %arg12[%494, %c0_123, %c0_124], %497 {strides = array<i32>} : memref<8x8x32xf32, #tpu.memory_space<vmem>>, vector<1x8x32xf32>,
    %cst_125 = arith.constant 0.000000e+00 : f32
    %498 = vector.shape_cast %489 : vector<8x1xi1> to vector<8x1xi1>
    %499 = vector.broadcast %498 : vector<8x1xi1> to vector<8x32xi1>
    %500 = vector.broadcast %cst_125 : f32 to vector<8x32xf32>
    %501 = arith.select %499, %483, %500 : vector<8x32xi1>, vector<8x32xf32>
    %502 = arith.index_cast %415 : i32 to index
    %c0_126 = arith.constant 0 : index
    %c0_127 = arith.constant 0 : index
    %503 = vector.load %arg13[%502, %c0_126, %c0_127] : memref<8x8x32xf32, #tpu.memory_space<vmem>>, vector<1x8x32xf32>
    %504 = vector.shape_cast %503 : vector<1x8x32xf32> to vector<8x32xf32>
    %505 = vector.shape_cast %501 : vector<8x32xf32> to vector<1x8x32xf32>
    tpu.vector_store %arg13[%502, %c0_126, %c0_127], %505 {strides = array<i32>} : memref<8x8x32xf32, #tpu.memory_space<vmem>>, vector<1x8x32xf32>,
    %506 = vector.shape_cast %486 : vector<8x1xi1> to vector<8x1xi1>
    %507 = vector.broadcast %506 : vector<8x1xi1> to vector<8x32xi1>
    %508 = arith.select %507, %453, %411 : vector<8x32xi1>, vector<8x32xf32>
    %509 = vector.shape_cast %489 : vector<8x1xi1> to vector<8x1xi1>
    %510 = vector.broadcast %509 : vector<8x1xi1> to vector<8x32xi1>
    %511 = arith.select %510, %483, %414 : vector<8x32xi1>, vector<8x32xf32>
    %c5_i32 = arith.constant 5 : i32
    %c7_i32_128 = arith.constant 7 : i32
    %512 = arith.subi %c7_i32_128, %c5_i32 : i32
    %c8_i32_129 = arith.constant 8 : i32
    %513 = arith.muli %c5_i32, %c8_i32_129 : i32
    %514 = tpu.assume_multiple %513, 8 : i32
    %c8_i32_130 = arith.constant 8 : i32
    %515 = arith.muli %512, %c8_i32_130 : i32
    %516 = tpu.assume_multiple %515, 8 : i32
    %517 = arith.index_cast %514 : i32 to index
    %c0_131 = arith.constant 0 : index
    %518 = vector.load %arg17[%517, %c0_131] : memref<64x96xf32, #tpu.memory_space<vmem>>, vector<8x96xf32>
    %519 = arith.index_cast %516 : i32 to index
    %c0_132 = arith.constant 0 : index
    %520 = vector.load %arg18[%519, %c0_132] : memref<64x96xf32, #tpu.memory_space<vmem>>, vector<8x96xf32>
    %521 = arith.truncf %508 : vector<8x32xf32> to vector<8x32xbf16>
    %cst_133 = arith.constant dense<0.000000e+00> : vector<8x96xf32>
    %522 = tpu.matmul %521, %18, %cst_133 {dimension_numbers = #tpu.dot_dimension_numbers<[1], [0], [0], [1], [0, 0, 1, 1], [], []>} : vector<8x32xbf16>, vector<32x96xbf16>, vector<8x96xf32> -> vector<8x96xf32>
    %523 = vector.extract_strided_slice %518 {offsets = [0, 0], sizes = [8, 32], strides = [1, 1]} : vector<8x96xf32> to vector<8x32xf32>
    %524 = vector.extract_strided_slice %522 {offsets = [0, 0], sizes = [8, 32], strides = [1, 1]} : vector<8x96xf32> to vector<8x32xf32>
    %525 = arith.addf %523, %524 : vector<8x32xf32>
    %526 = arith.negf %525 : vector<8x32xf32>
    %527 = math.exp %526 : vector<8x32xf32>
    %cst_134 = arith.constant 1.000000e+00 : f32
    %528 = vector.broadcast %cst_134 : f32 to vector<8x32xf32>
    %529 = arith.addf %528, %527 : vector<8x32xf32>
    %530 = arith.divf %528, %529 : vector<8x32xf32>
    %531 = vector.extract_strided_slice %518 {offsets = [0, 32], sizes = [8, 32], strides = [1, 1]} : vector<8x96xf32> to vector<8x32xf32>
    %532 = vector.extract_strided_slice %522 {offsets = [0, 32], sizes = [8, 32], strides = [1, 1]} : vector<8x96xf32> to vector<8x32xf32>
    %533 = arith.addf %531, %532 : vector<8x32xf32>
    %534 = arith.negf %533 : vector<8x32xf32>
    %535 = math.exp %534 : vector<8x32xf32>
    %cst_135 = arith.constant 1.000000e+00 : f32
    %536 = vector.broadcast %cst_135 : f32 to vector<8x32xf32>
    %537 = arith.addf %536, %535 : vector<8x32xf32>
    %538 = arith.divf %536, %537 : vector<8x32xf32>
    %539 = vector.extract_strided_slice %518 {offsets = [0, 64], sizes = [8, 32], strides = [1, 1]} : vector<8x96xf32> to vector<8x32xf32>
    %540 = vector.extract_strided_slice %522 {offsets = [0, 64], sizes = [8, 32], strides = [1, 1]} : vector<8x96xf32> to vector<8x32xf32>
    %541 = vector.broadcast %20 : vector<1x32xf32> to vector<8x32xf32>
    %542 = arith.addf %540, %541 : vector<8x32xf32>
    %543 = arith.mulf %530, %542 : vector<8x32xf32>
    %544 = arith.addf %539, %543 : vector<8x32xf32>
    %545 = math.tanh %544 : vector<8x32xf32>
    %cst_136 = arith.constant 1.000000e+00 : f32
    %546 = vector.broadcast %cst_136 : f32 to vector<8x32xf32>
    %547 = arith.subf %546, %538 : vector<8x32xf32>
    %548 = arith.mulf %547, %545 : vector<8x32xf32>
    %549 = arith.mulf %538, %508 : vector<8x32xf32>
    %550 = arith.addf %548, %549 : vector<8x32xf32>
    %551 = arith.truncf %511 : vector<8x32xf32> to vector<8x32xbf16>
    %cst_137 = arith.constant dense<0.000000e+00> : vector<8x96xf32>
    %552 = tpu.matmul %551, %19, %cst_137 {dimension_numbers = #tpu.dot_dimension_numbers<[1], [0], [0], [1], [0, 0, 1, 1], [], []>} : vector<8x32xbf16>, vector<32x96xbf16>, vector<8x96xf32> -> vector<8x96xf32>
    %553 = vector.extract_strided_slice %520 {offsets = [0, 0], sizes = [8, 32], strides = [1, 1]} : vector<8x96xf32> to vector<8x32xf32>
    %554 = vector.extract_strided_slice %552 {offsets = [0, 0], sizes = [8, 32], strides = [1, 1]} : vector<8x96xf32> to vector<8x32xf32>
    %555 = arith.addf %553, %554 : vector<8x32xf32>
    %556 = arith.negf %555 : vector<8x32xf32>
    %557 = math.exp %556 : vector<8x32xf32>
    %cst_138 = arith.constant 1.000000e+00 : f32
    %558 = vector.broadcast %cst_138 : f32 to vector<8x32xf32>
    %559 = arith.addf %558, %557 : vector<8x32xf32>
    %560 = arith.divf %558, %559 : vector<8x32xf32>
    %561 = vector.extract_strided_slice %520 {offsets = [0, 32], sizes = [8, 32], strides = [1, 1]} : vector<8x96xf32> to vector<8x32xf32>
    %562 = vector.extract_strided_slice %552 {offsets = [0, 32], sizes = [8, 32], strides = [1, 1]} : vector<8x96xf32> to vector<8x32xf32>
    %563 = arith.addf %561, %562 : vector<8x32xf32>
    %564 = arith.negf %563 : vector<8x32xf32>
    %565 = math.exp %564 : vector<8x32xf32>
    %cst_139 = arith.constant 1.000000e+00 : f32
    %566 = vector.broadcast %cst_139 : f32 to vector<8x32xf32>
    %567 = arith.addf %566, %565 : vector<8x32xf32>
    %568 = arith.divf %566, %567 : vector<8x32xf32>
    %569 = vector.extract_strided_slice %520 {offsets = [0, 64], sizes = [8, 32], strides = [1, 1]} : vector<8x96xf32> to vector<8x32xf32>
    %570 = vector.extract_strided_slice %552 {offsets = [0, 64], sizes = [8, 32], strides = [1, 1]} : vector<8x96xf32> to vector<8x32xf32>
    %571 = vector.broadcast %21 : vector<1x32xf32> to vector<8x32xf32>
    %572 = arith.addf %570, %571 : vector<8x32xf32>
    %573 = arith.mulf %560, %572 : vector<8x32xf32>
    %574 = arith.addf %569, %573 : vector<8x32xf32>
    %575 = math.tanh %574 : vector<8x32xf32>
    %cst_140 = arith.constant 1.000000e+00 : f32
    %576 = vector.broadcast %cst_140 : f32 to vector<8x32xf32>
    %577 = arith.subf %576, %568 : vector<8x32xf32>
    %578 = arith.mulf %577, %575 : vector<8x32xf32>
    %579 = arith.mulf %568, %511 : vector<8x32xf32>
    %580 = arith.addf %578, %579 : vector<8x32xf32>
    %581 = arith.addi %22, %c5_i32 : i32
    %582 = vector.broadcast %581 : i32 to vector<8x1xi32>
    %583 = arith.cmpi slt, %582, %3 : vector<8x1xi32>
    %584 = arith.addi %24, %512 : i32
    %585 = vector.broadcast %584 : i32 to vector<8x1xi32>
    %586 = arith.cmpi slt, %585, %3 : vector<8x1xi32>
    %cst_141 = arith.constant 0.000000e+00 : f32
    %587 = vector.shape_cast %583 : vector<8x1xi1> to vector<8x1xi1>
    %588 = vector.broadcast %587 : vector<8x1xi1> to vector<8x32xi1>
    %589 = vector.broadcast %cst_141 : f32 to vector<8x32xf32>
    %590 = arith.select %588, %550, %589 : vector<8x32xi1>, vector<8x32xf32>
    %591 = arith.index_cast %c5_i32 : i32 to index
    %c0_142 = arith.constant 0 : index
    %c0_143 = arith.constant 0 : index
    %592 = vector.load %arg12[%591, %c0_142, %c0_143] : memref<8x8x32xf32, #tpu.memory_space<vmem>>, vector<1x8x32xf32>
    %593 = vector.shape_cast %592 : vector<1x8x32xf32> to vector<8x32xf32>
    %594 = vector.shape_cast %590 : vector<8x32xf32> to vector<1x8x32xf32>
    tpu.vector_store %arg12[%591, %c0_142, %c0_143], %594 {strides = array<i32>} : memref<8x8x32xf32, #tpu.memory_space<vmem>>, vector<1x8x32xf32>,
    %cst_144 = arith.constant 0.000000e+00 : f32
    %595 = vector.shape_cast %586 : vector<8x1xi1> to vector<8x1xi1>
    %596 = vector.broadcast %595 : vector<8x1xi1> to vector<8x32xi1>
    %597 = vector.broadcast %cst_144 : f32 to vector<8x32xf32>
    %598 = arith.select %596, %580, %597 : vector<8x32xi1>, vector<8x32xf32>
    %599 = arith.index_cast %512 : i32 to index
    %c0_145 = arith.constant 0 : index
    %c0_146 = arith.constant 0 : index
    %600 = vector.load %arg13[%599, %c0_145, %c0_146] : memref<8x8x32xf32, #tpu.memory_space<vmem>>, vector<1x8x32xf32>
    %601 = vector.shape_cast %600 : vector<1x8x32xf32> to vector<8x32xf32>
    %602 = vector.shape_cast %598 : vector<8x32xf32> to vector<1x8x32xf32>
    tpu.vector_store %arg13[%599, %c0_145, %c0_146], %602 {strides = array<i32>} : memref<8x8x32xf32, #tpu.memory_space<vmem>>, vector<1x8x32xf32>,
    %603 = vector.shape_cast %583 : vector<8x1xi1> to vector<8x1xi1>
    %604 = vector.broadcast %603 : vector<8x1xi1> to vector<8x32xi1>
    %605 = arith.select %604, %550, %508 : vector<8x32xi1>, vector<8x32xf32>
    %606 = vector.shape_cast %586 : vector<8x1xi1> to vector<8x1xi1>
    %607 = vector.broadcast %606 : vector<8x1xi1> to vector<8x32xi1>
    %608 = arith.select %607, %580, %511 : vector<8x32xi1>, vector<8x32xf32>
    %c6_i32 = arith.constant 6 : i32
    %c7_i32_147 = arith.constant 7 : i32
    %609 = arith.subi %c7_i32_147, %c6_i32 : i32
    %c8_i32_148 = arith.constant 8 : i32
    %610 = arith.muli %c6_i32, %c8_i32_148 : i32
    %611 = tpu.assume_multiple %610, 8 : i32
    %c8_i32_149 = arith.constant 8 : i32
    %612 = arith.muli %609, %c8_i32_149 : i32
    %613 = tpu.assume_multiple %612, 8 : i32
    %614 = arith.index_cast %611 : i32 to index
    %c0_150 = arith.constant 0 : index
    %615 = vector.load %arg17[%614, %c0_150] : memref<64x96xf32, #tpu.memory_space<vmem>>, vector<8x96xf32>
    %616 = arith.index_cast %613 : i32 to index
    %c0_151 = arith.constant 0 : index
    %617 = vector.load %arg18[%616, %c0_151] : memref<64x96xf32, #tpu.memory_space<vmem>>, vector<8x96xf32>
    %618 = arith.truncf %605 : vector<8x32xf32> to vector<8x32xbf16>
    %cst_152 = arith.constant dense<0.000000e+00> : vector<8x96xf32>
    %619 = tpu.matmul %618, %18, %cst_152 {dimension_numbers = #tpu.dot_dimension_numbers<[1], [0], [0], [1], [0, 0, 1, 1], [], []>} : vector<8x32xbf16>, vector<32x96xbf16>, vector<8x96xf32> -> vector<8x96xf32>
    %620 = vector.extract_strided_slice %615 {offsets = [0, 0], sizes = [8, 32], strides = [1, 1]} : vector<8x96xf32> to vector<8x32xf32>
    %621 = vector.extract_strided_slice %619 {offsets = [0, 0], sizes = [8, 32], strides = [1, 1]} : vector<8x96xf32> to vector<8x32xf32>
    %622 = arith.addf %620, %621 : vector<8x32xf32>
    %623 = arith.negf %622 : vector<8x32xf32>
    %624 = math.exp %623 : vector<8x32xf32>
    %cst_153 = arith.constant 1.000000e+00 : f32
    %625 = vector.broadcast %cst_153 : f32 to vector<8x32xf32>
    %626 = arith.addf %625, %624 : vector<8x32xf32>
    %627 = arith.divf %625, %626 : vector<8x32xf32>
    %628 = vector.extract_strided_slice %615 {offsets = [0, 32], sizes = [8, 32], strides = [1, 1]} : vector<8x96xf32> to vector<8x32xf32>
    %629 = vector.extract_strided_slice %619 {offsets = [0, 32], sizes = [8, 32], strides = [1, 1]} : vector<8x96xf32> to vector<8x32xf32>
    %630 = arith.addf %628, %629 : vector<8x32xf32>
    %631 = arith.negf %630 : vector<8x32xf32>
    %632 = math.exp %631 : vector<8x32xf32>
    %cst_154 = arith.constant 1.000000e+00 : f32
    %633 = vector.broadcast %cst_154 : f32 to vector<8x32xf32>
    %634 = arith.addf %633, %632 : vector<8x32xf32>
    %635 = arith.divf %633, %634 : vector<8x32xf32>
    %636 = vector.extract_strided_slice %615 {offsets = [0, 64], sizes = [8, 32], strides = [1, 1]} : vector<8x96xf32> to vector<8x32xf32>
    %637 = vector.extract_strided_slice %619 {offsets = [0, 64], sizes = [8, 32], strides = [1, 1]} : vector<8x96xf32> to vector<8x32xf32>
    %638 = vector.broadcast %20 : vector<1x32xf32> to vector<8x32xf32>
    %639 = arith.addf %637, %638 : vector<8x32xf32>
    %640 = arith.mulf %627, %639 : vector<8x32xf32>
    %641 = arith.addf %636, %640 : vector<8x32xf32>
    %642 = math.tanh %641 : vector<8x32xf32>
    %cst_155 = arith.constant 1.000000e+00 : f32
    %643 = vector.broadcast %cst_155 : f32 to vector<8x32xf32>
    %644 = arith.subf %643, %635 : vector<8x32xf32>
    %645 = arith.mulf %644, %642 : vector<8x32xf32>
    %646 = arith.mulf %635, %605 : vector<8x32xf32>
    %647 = arith.addf %645, %646 : vector<8x32xf32>
    %648 = arith.truncf %608 : vector<8x32xf32> to vector<8x32xbf16>
    %cst_156 = arith.constant dense<0.000000e+00> : vector<8x96xf32>
    %649 = tpu.matmul %648, %19, %cst_156 {dimension_numbers = #tpu.dot_dimension_numbers<[1], [0], [0], [1], [0, 0, 1, 1], [], []>} : vector<8x32xbf16>, vector<32x96xbf16>, vector<8x96xf32> -> vector<8x96xf32>
    %650 = vector.extract_strided_slice %617 {offsets = [0, 0], sizes = [8, 32], strides = [1, 1]} : vector<8x96xf32> to vector<8x32xf32>
    %651 = vector.extract_strided_slice %649 {offsets = [0, 0], sizes = [8, 32], strides = [1, 1]} : vector<8x96xf32> to vector<8x32xf32>
    %652 = arith.addf %650, %651 : vector<8x32xf32>
    %653 = arith.negf %652 : vector<8x32xf32>
    %654 = math.exp %653 : vector<8x32xf32>
    %cst_157 = arith.constant 1.000000e+00 : f32
    %655 = vector.broadcast %cst_157 : f32 to vector<8x32xf32>
    %656 = arith.addf %655, %654 : vector<8x32xf32>
    %657 = arith.divf %655, %656 : vector<8x32xf32>
    %658 = vector.extract_strided_slice %617 {offsets = [0, 32], sizes = [8, 32], strides = [1, 1]} : vector<8x96xf32> to vector<8x32xf32>
    %659 = vector.extract_strided_slice %649 {offsets = [0, 32], sizes = [8, 32], strides = [1, 1]} : vector<8x96xf32> to vector<8x32xf32>
    %660 = arith.addf %658, %659 : vector<8x32xf32>
    %661 = arith.negf %660 : vector<8x32xf32>
    %662 = math.exp %661 : vector<8x32xf32>
    %cst_158 = arith.constant 1.000000e+00 : f32
    %663 = vector.broadcast %cst_158 : f32 to vector<8x32xf32>
    %664 = arith.addf %663, %662 : vector<8x32xf32>
    %665 = arith.divf %663, %664 : vector<8x32xf32>
    %666 = vector.extract_strided_slice %617 {offsets = [0, 64], sizes = [8, 32], strides = [1, 1]} : vector<8x96xf32> to vector<8x32xf32>
    %667 = vector.extract_strided_slice %649 {offsets = [0, 64], sizes = [8, 32], strides = [1, 1]} : vector<8x96xf32> to vector<8x32xf32>
    %668 = vector.broadcast %21 : vector<1x32xf32> to vector<8x32xf32>
    %669 = arith.addf %667, %668 : vector<8x32xf32>
    %670 = arith.mulf %657, %669 : vector<8x32xf32>
    %671 = arith.addf %666, %670 : vector<8x32xf32>
    %672 = math.tanh %671 : vector<8x32xf32>
    %cst_159 = arith.constant 1.000000e+00 : f32
    %673 = vector.broadcast %cst_159 : f32 to vector<8x32xf32>
    %674 = arith.subf %673, %665 : vector<8x32xf32>
    %675 = arith.mulf %674, %672 : vector<8x32xf32>
    %676 = arith.mulf %665, %608 : vector<8x32xf32>
    %677 = arith.addf %675, %676 : vector<8x32xf32>
    %678 = arith.addi %22, %c6_i32 : i32
    %679 = vector.broadcast %678 : i32 to vector<8x1xi32>
    %680 = arith.cmpi slt, %679, %3 : vector<8x1xi32>
    %681 = arith.addi %24, %609 : i32
    %682 = vector.broadcast %681 : i32 to vector<8x1xi32>
    %683 = arith.cmpi slt, %682, %3 : vector<8x1xi32>
    %cst_160 = arith.constant 0.000000e+00 : f32
    %684 = vector.shape_cast %680 : vector<8x1xi1> to vector<8x1xi1>
    %685 = vector.broadcast %684 : vector<8x1xi1> to vector<8x32xi1>
    %686 = vector.broadcast %cst_160 : f32 to vector<8x32xf32>
    %687 = arith.select %685, %647, %686 : vector<8x32xi1>, vector<8x32xf32>
    %688 = arith.index_cast %c6_i32 : i32 to index
    %c0_161 = arith.constant 0 : index
    %c0_162 = arith.constant 0 : index
    %689 = vector.load %arg12[%688, %c0_161, %c0_162] : memref<8x8x32xf32, #tpu.memory_space<vmem>>, vector<1x8x32xf32>
    %690 = vector.shape_cast %689 : vector<1x8x32xf32> to vector<8x32xf32>
    %691 = vector.shape_cast %687 : vector<8x32xf32> to vector<1x8x32xf32>
    tpu.vector_store %arg12[%688, %c0_161, %c0_162], %691 {strides = array<i32>} : memref<8x8x32xf32, #tpu.memory_space<vmem>>, vector<1x8x32xf32>,
    %cst_163 = arith.constant 0.000000e+00 : f32
    %692 = vector.shape_cast %683 : vector<8x1xi1> to vector<8x1xi1>
    %693 = vector.broadcast %692 : vector<8x1xi1> to vector<8x32xi1>
    %694 = vector.broadcast %cst_163 : f32 to vector<8x32xf32>
    %695 = arith.select %693, %677, %694 : vector<8x32xi1>, vector<8x32xf32>
    %696 = arith.index_cast %609 : i32 to index
    %c0_164 = arith.constant 0 : index
    %c0_165 = arith.constant 0 : index
    %697 = vector.load %arg13[%696, %c0_164, %c0_165] : memref<8x8x32xf32, #tpu.memory_space<vmem>>, vector<1x8x32xf32>
    %698 = vector.shape_cast %697 : vector<1x8x32xf32> to vector<8x32xf32>
    %699 = vector.shape_cast %695 : vector<8x32xf32> to vector<1x8x32xf32>
    tpu.vector_store %arg13[%696, %c0_164, %c0_165], %699 {strides = array<i32>} : memref<8x8x32xf32, #tpu.memory_space<vmem>>, vector<1x8x32xf32>,
    %700 = vector.shape_cast %680 : vector<8x1xi1> to vector<8x1xi1>
    %701 = vector.broadcast %700 : vector<8x1xi1> to vector<8x32xi1>
    %702 = arith.select %701, %647, %605 : vector<8x32xi1>, vector<8x32xf32>
    %703 = vector.shape_cast %683 : vector<8x1xi1> to vector<8x1xi1>
    %704 = vector.broadcast %703 : vector<8x1xi1> to vector<8x32xi1>
    %705 = arith.select %704, %677, %608 : vector<8x32xi1>, vector<8x32xf32>
    %c7_i32_166 = arith.constant 7 : i32
    %c7_i32_167 = arith.constant 7 : i32
    %706 = arith.subi %c7_i32_167, %c7_i32_166 : i32
    %c8_i32_168 = arith.constant 8 : i32
    %707 = arith.muli %c7_i32_166, %c8_i32_168 : i32
    %708 = tpu.assume_multiple %707, 8 : i32
    %c8_i32_169 = arith.constant 8 : i32
    %709 = arith.muli %706, %c8_i32_169 : i32
    %710 = tpu.assume_multiple %709, 8 : i32
    %711 = arith.index_cast %708 : i32 to index
    %c0_170 = arith.constant 0 : index
    %712 = vector.load %arg17[%711, %c0_170] : memref<64x96xf32, #tpu.memory_space<vmem>>, vector<8x96xf32>
    %713 = arith.index_cast %710 : i32 to index
    %c0_171 = arith.constant 0 : index
    %714 = vector.load %arg18[%713, %c0_171] : memref<64x96xf32, #tpu.memory_space<vmem>>, vector<8x96xf32>
    %715 = arith.truncf %702 : vector<8x32xf32> to vector<8x32xbf16>
    %cst_172 = arith.constant dense<0.000000e+00> : vector<8x96xf32>
    %716 = tpu.matmul %715, %18, %cst_172 {dimension_numbers = #tpu.dot_dimension_numbers<[1], [0], [0], [1], [0, 0, 1, 1], [], []>} : vector<8x32xbf16>, vector<32x96xbf16>, vector<8x96xf32> -> vector<8x96xf32>
    %717 = vector.extract_strided_slice %712 {offsets = [0, 0], sizes = [8, 32], strides = [1, 1]} : vector<8x96xf32> to vector<8x32xf32>
    %718 = vector.extract_strided_slice %716 {offsets = [0, 0], sizes = [8, 32], strides = [1, 1]} : vector<8x96xf32> to vector<8x32xf32>
    %719 = arith.addf %717, %718 : vector<8x32xf32>
    %720 = arith.negf %719 : vector<8x32xf32>
    %721 = math.exp %720 : vector<8x32xf32>
    %cst_173 = arith.constant 1.000000e+00 : f32
    %722 = vector.broadcast %cst_173 : f32 to vector<8x32xf32>
    %723 = arith.addf %722, %721 : vector<8x32xf32>
    %724 = arith.divf %722, %723 : vector<8x32xf32>
    %725 = vector.extract_strided_slice %712 {offsets = [0, 32], sizes = [8, 32], strides = [1, 1]} : vector<8x96xf32> to vector<8x32xf32>
    %726 = vector.extract_strided_slice %716 {offsets = [0, 32], sizes = [8, 32], strides = [1, 1]} : vector<8x96xf32> to vector<8x32xf32>
    %727 = arith.addf %725, %726 : vector<8x32xf32>
    %728 = arith.negf %727 : vector<8x32xf32>
    %729 = math.exp %728 : vector<8x32xf32>
    %cst_174 = arith.constant 1.000000e+00 : f32
    %730 = vector.broadcast %cst_174 : f32 to vector<8x32xf32>
    %731 = arith.addf %730, %729 : vector<8x32xf32>
    %732 = arith.divf %730, %731 : vector<8x32xf32>
    %733 = vector.extract_strided_slice %712 {offsets = [0, 64], sizes = [8, 32], strides = [1, 1]} : vector<8x96xf32> to vector<8x32xf32>
    %734 = vector.extract_strided_slice %716 {offsets = [0, 64], sizes = [8, 32], strides = [1, 1]} : vector<8x96xf32> to vector<8x32xf32>
    %735 = vector.broadcast %20 : vector<1x32xf32> to vector<8x32xf32>
    %736 = arith.addf %734, %735 : vector<8x32xf32>
    %737 = arith.mulf %724, %736 : vector<8x32xf32>
    %738 = arith.addf %733, %737 : vector<8x32xf32>
    %739 = math.tanh %738 : vector<8x32xf32>
    %cst_175 = arith.constant 1.000000e+00 : f32
    %740 = vector.broadcast %cst_175 : f32 to vector<8x32xf32>
    %741 = arith.subf %740, %732 : vector<8x32xf32>
    %742 = arith.mulf %741, %739 : vector<8x32xf32>
    %743 = arith.mulf %732, %702 : vector<8x32xf32>
    %744 = arith.addf %742, %743 : vector<8x32xf32>
    %745 = arith.truncf %705 : vector<8x32xf32> to vector<8x32xbf16>
    %cst_176 = arith.constant dense<0.000000e+00> : vector<8x96xf32>
    %746 = tpu.matmul %745, %19, %cst_176 {dimension_numbers = #tpu.dot_dimension_numbers<[1], [0], [0], [1], [0, 0, 1, 1], [], []>} : vector<8x32xbf16>, vector<32x96xbf16>, vector<8x96xf32> -> vector<8x96xf32>
    %747 = vector.extract_strided_slice %714 {offsets = [0, 0], sizes = [8, 32], strides = [1, 1]} : vector<8x96xf32> to vector<8x32xf32>
    %748 = vector.extract_strided_slice %746 {offsets = [0, 0], sizes = [8, 32], strides = [1, 1]} : vector<8x96xf32> to vector<8x32xf32>
    %749 = arith.addf %747, %748 : vector<8x32xf32>
    %750 = arith.negf %749 : vector<8x32xf32>
    %751 = math.exp %750 : vector<8x32xf32>
    %cst_177 = arith.constant 1.000000e+00 : f32
    %752 = vector.broadcast %cst_177 : f32 to vector<8x32xf32>
    %753 = arith.addf %752, %751 : vector<8x32xf32>
    %754 = arith.divf %752, %753 : vector<8x32xf32>
    %755 = vector.extract_strided_slice %714 {offsets = [0, 32], sizes = [8, 32], strides = [1, 1]} : vector<8x96xf32> to vector<8x32xf32>
    %756 = vector.extract_strided_slice %746 {offsets = [0, 32], sizes = [8, 32], strides = [1, 1]} : vector<8x96xf32> to vector<8x32xf32>
    %757 = arith.addf %755, %756 : vector<8x32xf32>
    %758 = arith.negf %757 : vector<8x32xf32>
    %759 = math.exp %758 : vector<8x32xf32>
    %cst_178 = arith.constant 1.000000e+00 : f32
    %760 = vector.broadcast %cst_178 : f32 to vector<8x32xf32>
    %761 = arith.addf %760, %759 : vector<8x32xf32>
    %762 = arith.divf %760, %761 : vector<8x32xf32>
    %763 = vector.extract_strided_slice %714 {offsets = [0, 64], sizes = [8, 32], strides = [1, 1]} : vector<8x96xf32> to vector<8x32xf32>
    %764 = vector.extract_strided_slice %746 {offsets = [0, 64], sizes = [8, 32], strides = [1, 1]} : vector<8x96xf32> to vector<8x32xf32>
    %765 = vector.broadcast %21 : vector<1x32xf32> to vector<8x32xf32>
    %766 = arith.addf %764, %765 : vector<8x32xf32>
    %767 = arith.mulf %754, %766 : vector<8x32xf32>
    %768 = arith.addf %763, %767 : vector<8x32xf32>
    %769 = math.tanh %768 : vector<8x32xf32>
    %cst_179 = arith.constant 1.000000e+00 : f32
    %770 = vector.broadcast %cst_179 : f32 to vector<8x32xf32>
    %771 = arith.subf %770, %762 : vector<8x32xf32>
    %772 = arith.mulf %771, %769 : vector<8x32xf32>
    %773 = arith.mulf %762, %705 : vector<8x32xf32>
    %774 = arith.addf %772, %773 : vector<8x32xf32>
    %775 = arith.addi %22, %c7_i32_166 : i32
    %776 = vector.broadcast %775 : i32 to vector<8x1xi32>
    %777 = arith.cmpi slt, %776, %3 : vector<8x1xi32>
    %778 = arith.addi %24, %706 : i32
    %779 = vector.broadcast %778 : i32 to vector<8x1xi32>
    %780 = arith.cmpi slt, %779, %3 : vector<8x1xi32>
    %cst_180 = arith.constant 0.000000e+00 : f32
    %781 = vector.shape_cast %777 : vector<8x1xi1> to vector<8x1xi1>
    %782 = vector.broadcast %781 : vector<8x1xi1> to vector<8x32xi1>
    %783 = vector.broadcast %cst_180 : f32 to vector<8x32xf32>
    %784 = arith.select %782, %744, %783 : vector<8x32xi1>, vector<8x32xf32>
    %785 = arith.index_cast %c7_i32_166 : i32 to index
    %c0_181 = arith.constant 0 : index
    %c0_182 = arith.constant 0 : index
    %786 = vector.load %arg12[%785, %c0_181, %c0_182] : memref<8x8x32xf32, #tpu.memory_space<vmem>>, vector<1x8x32xf32>
    %787 = vector.shape_cast %786 : vector<1x8x32xf32> to vector<8x32xf32>
    %788 = vector.shape_cast %784 : vector<8x32xf32> to vector<1x8x32xf32>
    tpu.vector_store %arg12[%785, %c0_181, %c0_182], %788 {strides = array<i32>} : memref<8x8x32xf32, #tpu.memory_space<vmem>>, vector<1x8x32xf32>,
    %cst_183 = arith.constant 0.000000e+00 : f32
    %789 = vector.shape_cast %780 : vector<8x1xi1> to vector<8x1xi1>
    %790 = vector.broadcast %789 : vector<8x1xi1> to vector<8x32xi1>
    %791 = vector.broadcast %cst_183 : f32 to vector<8x32xf32>
    %792 = arith.select %790, %774, %791 : vector<8x32xi1>, vector<8x32xf32>
    %793 = arith.index_cast %706 : i32 to index
    %c0_184 = arith.constant 0 : index
    %c0_185 = arith.constant 0 : index
    %794 = vector.load %arg13[%793, %c0_184, %c0_185] : memref<8x8x32xf32, #tpu.memory_space<vmem>>, vector<1x8x32xf32>
    %795 = vector.shape_cast %794 : vector<1x8x32xf32> to vector<8x32xf32>
    %796 = vector.shape_cast %792 : vector<8x32xf32> to vector<1x8x32xf32>
    tpu.vector_store %arg13[%793, %c0_184, %c0_185], %796 {strides = array<i32>} : memref<8x8x32xf32, #tpu.memory_space<vmem>>, vector<1x8x32xf32>,
    %797 = vector.shape_cast %777 : vector<8x1xi1> to vector<8x1xi1>
    %798 = vector.broadcast %797 : vector<8x1xi1> to vector<8x32xi1>
    %799 = arith.select %798, %744, %702 : vector<8x32xi1>, vector<8x32xf32>
    %800 = vector.shape_cast %780 : vector<8x1xi1> to vector<8x1xi1>
    %801 = vector.broadcast %800 : vector<8x1xi1> to vector<8x32xi1>
    %802 = arith.select %801, %774, %705 : vector<8x32xi1>, vector<8x32xf32>
    %c8_i32_186 = arith.constant 8 : i32
    %c0_187 = arith.constant 0 : index
    %c0_188 = arith.constant 0 : index
    %803 = vector.load %arg15[%c0_187, %c0_188] : memref<8x32xf32, #tpu.memory_space<vmem>>, vector<8x32xf32>
    tpu.vector_store %arg15[%c0_187, %c0_188], %799 {strides = array<i32>} : memref<8x32xf32, #tpu.memory_space<vmem>>, vector<8x32xf32>,
    %c0_189 = arith.constant 0 : index
    %c0_190 = arith.constant 0 : index
    %804 = vector.load %arg16[%c0_189, %c0_190] : memref<8x32xf32, #tpu.memory_space<vmem>>, vector<8x32xf32>
    tpu.vector_store %arg16[%c0_189, %c0_190], %802 {strides = array<i32>} : memref<8x32xf32, #tpu.memory_space<vmem>>, vector<8x32xf32>,
    %c1_i32_191 = arith.constant 1 : i32
    %805 = arith.cmpi eq, %arg0, %c1_i32_191 : i32
    %806 = arith.extui %805 : i1 to i32
    %c0_i32_192 = arith.constant 0 : i32
    %807 = arith.cmpi ne, %806, %c0_i32_192 : i32
    scf.if %807 {
      %c0_193 = arith.constant 0 : index
      %c0_194 = arith.constant 0 : index
      %808 = vector.load %arg14[%c0_193, %c0_194] : memref<8x64xf32, #tpu.memory_space<vmem>>, vector<8x32xf32>
      tpu.vector_store %arg14[%c0_193, %c0_194], %799 {strides = array<i32>} : memref<8x64xf32, #tpu.memory_space<vmem>>, vector<8x32xf32>,
      %c0_195 = arith.constant 0 : index
      %c32 = arith.constant 32 : index
      %809 = vector.load %arg14[%c0_195, %c32] : memref<8x64xf32, #tpu.memory_space<vmem>>, vector<8x32xf32>
      tpu.vector_store %arg14[%c0_195, %c32], %802 {strides = array<i32>} : memref<8x64xf32, #tpu.memory_space<vmem>>, vector<8x32xf32>,
    } else {
    }
    return
  }
  func.func @transform_0(%arg0: i32) -> (i32, i32) {
    %c0_i32 = arith.constant 0 : i32
    %c0_i32_0 = arith.constant 0 : i32
    return %arg0, %c0_i32 : i32, i32
  }
  func.func @transform_1(%arg0: i32) -> (i32, i32) {
    %c1_i32 = arith.constant 1 : i32
    %0 = arith.subi %c1_i32, %arg0 : i32
    %c0_i32 = arith.constant 0 : i32
    %c0_i32_0 = arith.constant 0 : i32
    return %0, %c0_i32 : i32, i32
  }
  func.func @transform_2(%arg0: i32) -> (i32, i32) {
    %c0_i32 = arith.constant 0 : i32
    %c0_i32_0 = arith.constant 0 : i32
    %c0_i32_1 = arith.constant 0 : i32
    return %c0_i32, %c0_i32_0 : i32, i32
  }
  func.func @transform_3(%arg0: i32) -> (i32, i32) {
    %c0_i32 = arith.constant 0 : i32
    %c0_i32_0 = arith.constant 0 : i32
    %c0_i32_1 = arith.constant 0 : i32
    return %c0_i32, %c0_i32_0 : i32, i32
  }
  func.func @transform_4(%arg0: i32) -> (i32, i32) {
    %c0_i32 = arith.constant 0 : i32
    %c0_i32_0 = arith.constant 0 : i32
    %c0_i32_1 = arith.constant 0 : i32
    return %c0_i32, %c0_i32_0 : i32, i32
  }
  func.func @transform_5(%arg0: i32) -> (i32, i32) {
    %c0_i32 = arith.constant 0 : i32
    %c0_i32_0 = arith.constant 0 : i32
    %c0_i32_1 = arith.constant 0 : i32
    return %c0_i32, %c0_i32_0 : i32, i32
  }
  func.func @transform_6(%arg0: i32) -> (i32, i32) {
    %c0_i32 = arith.constant 0 : i32
    %c0_i32_0 = arith.constant 0 : i32
    %c0_i32_1 = arith.constant 0 : i32
    return %c0_i32, %c0_i32_0 : i32, i32
  }
  func.func @transform_7(%arg0: i32) -> (i32, i32) {
    %c0_i32 = arith.constant 0 : i32
    %c0_i32_0 = arith.constant 0 : i32
    %c0_i32_1 = arith.constant 0 : i32
    return %c0_i32, %c0_i32_0 : i32, i32
  }
  func.func @transform_8(%arg0: i32) -> (i32, i32) {
    %c0_i32 = arith.constant 0 : i32
    %c0_i32_0 = arith.constant 0 : i32
    %c0_i32_1 = arith.constant 0 : i32
    return %c0_i32, %c0_i32_0 : i32, i32
  }
  func.func @transform_9(%arg0: i32) -> (i32, i32) {
    %c0_i32 = arith.constant 0 : i32
    %c0_i32_0 = arith.constant 0 : i32
    %c0_i32_1 = arith.constant 0 : i32
    return %c0_i32, %c0_i32_0 : i32, i32
  }
  func.func @transform_10(%arg0: i32) -> (i32, i32) {
    %c0_i32 = arith.constant 0 : i32
    %c0_i32_0 = arith.constant 0 : i32
    %c0_i32_1 = arith.constant 0 : i32
    return %c0_i32, %c0_i32_0 : i32, i32
  }
  func.func @transform_11(%arg0: i32) -> (i32, i32, i32) {
    %c0_i32 = arith.constant 0 : i32
    %c0_i32_0 = arith.constant 0 : i32
    %c0_i32_1 = arith.constant 0 : i32
    return %arg0, %c0_i32, %c0_i32_0 : i32, i32, i32
  }
  func.func @transform_12(%arg0: i32) -> (i32, i32, i32) {
    %c1_i32 = arith.constant 1 : i32
    %0 = arith.subi %c1_i32, %arg0 : i32
    %c0_i32 = arith.constant 0 : i32
    %c0_i32_0 = arith.constant 0 : i32
    %c0_i32_1 = arith.constant 0 : i32
    return %0, %c0_i32, %c0_i32_0 : i32, i32, i32
  }
  func.func @transform_13(%arg0: i32) -> (i32, i32) {
    %c0_i32 = arith.constant 0 : i32
    %c0_i32_0 = arith.constant 0 : i32
    %c0_i32_1 = arith.constant 0 : i32
    return %c0_i32, %c0_i32_0 : i32, i32
  }
}

</mosaic_0001>

<bundles_post_ra>
// kernel: tpu_custom_call.1
= control target key start
LH: loop header
LB: loop body
LE: loop exit
PB: predicated region body
PF: predicated region fallthrough
CT: control target
= control target key end

     0   :  { %s3990_s0 = inlined_call_operand.vmem [shape: bf16[128,32], index: 0, kind: input, shape index: {}]   ;;  %s3991_s1 = inlined_call_operand.vmem [shape: bf16[128,32], index: 1, kind: input, shape index: {}]   ;;  %s3992_s2 = inlined_call_operand.vmem [shape: s32[8,1], index: 2, kind: input, shape index: {}]   ;;  %s3993_s3 = inlined_call_operand.vmem [shape: bf16[32,96], index: 3, kind: input, shape index: {}]   ;;  %s3994_s4 = inlined_call_operand.vmem [shape: bf16[32,96], index: 4, kind: input, shape index: {}]   ;;  %s3995_s5 = inlined_call_operand.vmem [shape: bf16[32,96], index: 5, kind: input, shape index: {}]   ;;  %s3996_s6 = inlined_call_operand.vmem [shape: bf16[32,96], index: 6, kind: input, shape index: {}]   ;;  %s3997_s7 = inlined_call_operand.vmem [shape: f32[1,96], index: 7, kind: input, shape index: {}]   ;;  %s3998_s8 = inlined_call_operand.vmem [shape: f32[1,96], index: 8, kind: input, shape index: {}]   ;;  %s3999_s9 = inlined_call_operand.vmem [shape: f32[1,32], index: 9, kind: input, shape index: {}]   ;;  %s4000_s10 = inlined_call_operand.vmem [shape: f32[1,32], index: 10, kind: input, shape index: {}]   ;;  %s4001_s11 = inlined_call_operand.hbm [shape: f32[16,8,32], index: 11, kind: output, shape index: {0}]   ;;  %s4002_s12 = inlined_call_operand.hbm [shape: f32[16,8,32], index: 12, kind: output, shape index: {1}]   ;;  %s4003_s13 = inlined_call_operand.hbm [shape: f32[8,64], index: 13, kind: output, shape index: {2}]  }
   0x1   :  { %4021 = sst [smem:[#allocation25_spill]] %s4001_s11 }
   0x2   :  { %4022 = sst [smem:[#allocation26_spill]] %s4003_s13 }
   0x3   :  { %19 = vsyncpa [#allocation7], 0 }
   0x4   :  { %21 = vsyncpa [#allocation7 + $0x1], 0 }
   0x5   :  { %22 = vsyncpa [#allocation9], 0 }
   0x6   :  { %24 = vsyncpa [#allocation9 + $0x1], 0  ;;  %s3210_s25 = smov 0   ;;  %s3212_s26 = smov 0  }
   0x7   :  { %s3214_s27 = smov 0   ;;  %s3216_s28 = smov 0  }
   0x8   :  { %s3218_s29 = smov 0   ;;  %s3220_s30 = smov 0  }
   0x9   :  { %s3222_s14 = smov 0  }
   0xa LB: > { %4023 = sst [smem:[#allocation14_spill]] %s3106_s26  ;;  %s3246_s15 = sadd.s32 4294967295, %s3126_s14   ;;  %s3126_s14 = sphi %s3222_s14, %s4053_s14   ;;  %s3122_s30 = sphi %s3220_s30, %s4058_s30   ;;  %s3118_s29 = sphi %s3218_s29, %s4060_s29   ;;  %s3114_s28 = sphi %s3216_s28, %s4059_s28   ;;  %s3110_s27 = sphi %s3214_s27, %s4056_s27   ;;  %s3106_s26 = sphi %s3212_s26, %s4055_s26   ;;  %s3102_s25 = sphi %s3210_s25, %s4054_s25  }
   0xb   : > { %4024 = sst [smem:[#allocation15_spill]] %s3110_s27  ;;  %s4004_s16 = sadd.s32 4294967294, %s3126_s14  }
   0xc   : > { %4025 = sst [smem:[#allocation16_spill]] %s3114_s28  ;;  %s3250_s17 = sadd.s32 1, %s3126_s14  }
   0xd   : > { %4026 = sst [smem:[#allocation17_spill]] %s3122_s30  ;;  %s280_s18 = sadd.s32 1, %s3122_s30 }
   0xe   : > { %4027 = sst [smem:[#allocation18_spill]] %s3126_s14  ;;  %s277_s19 = ssub.s32 %s3126_s14, %s3250_s17 }
   0xf   : > { %4028 = sst [smem:[#allocation19_spill]] %s3250_s17  ;;  %p290_p0 = scmp.ne.s32.totalorder %s3122_s30, %s3118_s29 }
  0x10   : > { %p278_p1 = scmp.eq.s32.totalorder %s277_s19, 0  ;;  %p4020_p2 = scmp.eq.s32.totalorder %s3246_s15, 1 }
  0x11   : > { %p296_p3 = scmp.ne.s32.totalorder %s3118_s29, %s3114_s28  ;;  %p3262_p4 = scmp.eq.s32.totalorder %s4004_s16, 1 }
  0x12   : > { %s3267_s21 = scalar_select %p278_p1, %s3122_s30, %s280_s18  }
  0x13   : > { %p3271_p5 = por %p4020_p2, %p290_p0  ;;  %p3277_p6 = por %p3262_p4, %p296_p3 }
  0x14   : > { %4030 = sst [smem:[#allocation20_spill]] %s3267_s21  ;;  %s303_s24 = ssub.s32 1, %s3126_s14 }
  0x15   : > { %s4031_s22 = scalar_select %p3271_p5, 1, 0 }
  0x16   : > { %s4033_s23 = scalar_select %p3277_p6, 1, 0 }
  0x17   : > { %4032 = sst [smem:[#allocation21_spill]] %s4031_s22  ;;  %s304_s19 = ssub.s32 1, %s3250_s17 }
  0x18   : > { %4034 = sst [smem:[#allocation22_spill]] %s4033_s23  ;;  %s305_s16 = ssub.s32 %s303_s24, %s304_s19 }
  0x19   : > { %s308_s28 = sadd.s32 1, %s3110_s27  ;;  %p306_p7 = scmp.eq.s32.totalorder %s305_s16, 0 }
  0x1a   : > { %p318_p8 = scmp.ne.s32.totalorder %s3110_s27, %s3106_s26  ;;  %p324_p9 = scmp.ne.s32.totalorder %s3106_s26, %s3102_s25 }
  0x1b   : > { %p2472_p10 = scmp.ge.s32.totalorder %s3126_s14, 1  ;;  %p411_p13 = scmp.lt.s32.totalorder %s3126_s14, 3 }
  0x1c   : > { %s3290_s18 = scalar_select %p306_p7, %s3110_s27, %s308_s28  }
  0x1d   : > { %p3294_p11 = por %p318_p8, %p4020_p2  ;;  %p3300_p12 = por %p324_p9, %p3262_p4 }
  0x1e   : > { %4035 = sst [smem:[#allocation23_spill]] %s3290_s18  ;;  %p412_p0 = pnand %p2472_p10, %p411_p13 }
  0x1f   : > { %s4037_s30 = scalar_select %p3300_p12, 1, 0 }
  0x20   : > { %415 = sbr.rel (%p412_p0) target bundleno = 5597 (0x15dd), region = 64  ;;  %s4013_s25 = sand.u32 (!%p412_p0), 1, %s3118_s29  }
  0x21   : > { %4038 = sst [smem:[#allocation24_spill]] %s4037_s30  ;;  %s461_s28 = sand.u32 (!%p412_p0), 1, %s3106_s26  }
  0x22   : > { %s2473_s16 = sshll.u32 (!%p412_p0), %s4013_s25, 6  ;;  %s2474_s24 = sshll.u32 (!%p412_p0), %s461_s28, 6 }
  0x23   : > { %s3310_s19 = sshll.u32 (!%p412_p0), %s3246_s15, 3  ;;  %s4019_s20 = ssub.s32 (!%p412_p0), 1, %s3246_s15 }
  0x24   : > { %p467_p1 = scmp.lt.s32.totalorder (!%p412_p0), %s3310_s19, 15  ;;  %s3316_s18 = sshll.u32 (!%p412_p0), %s4019_s20, 3 }
  0x25   : > { %p474_p3 = scmp.lt.s32.totalorder %s3316_s18, 15  ;;  %s3331_s22 = scalar_lea.vmem [#allocation6], %s2473_s16 }
  0x26   : > { %s468_s27 = scalar_select %p467_p1, %s3310_s19, 15 }
  0x27   : > { %s475_s17 = scalar_select %p474_p3, %s3316_s18, 15 }
  0x28   : > { %s2476_s30 = sshll.u32 %s468_s27, 2  ;;  %s3333_s20 = scalar_lea.vmem [#allocation8], %s2474_s24 }
  0x29   : > { %s3324_s25 = scalar_lea.vmem %s3990_s0, %s2476_s30  ;;  %s2478_s28 = sshll.u32 %s475_s17, 2 }
  0x2a   : > { %s3329_s11 = scalar_lea.vmem %s3991_s1, %s2478_s28  ;;  %p2479_p4 = scmp.ne.s32.totalorder %s3246_s15, 0 }
  0x2c   : > { %487 = sbr.rel (%p2479_p4) target bundleno = 51 (0x33), region = 68 }
  0x31   : > { %vm488_vm0 = vcmask 261120   ;;  %v3128_v0 = vmov 0.0  }
  0x32   : > { %489 = vst.msk [vmem:[#allocation2] sm:$0xff] %vm488_vm0, %v3128_v0  ;;  %490 = vst.msk [vmem:[#allocation3] sm:$0xff] %vm488_vm0, %v3128_v0 }
  0x33 PF: > { %v2867_v1 = vld [vmem:[%s3993_s3 + $0x8] sm:$0xff]   ;;  %v2869_v3 = vld [vmem:[%s3993_s3] sm:$0xff]   ;;  %vm543_vm1 = vcmask 261120   ;;  %v3129_v9 = vmov 0.0   ;;  %v2877_v12 = vld [vmem:[%s3324_s25 + $0x10] sm:$0xff]   ;;  %vm3131_vm2 = vmmov 0  }
  0x34   : > { %v2868_v2 = vld [vmem:[%s3994_s4 + $0x8] sm:$0xff]   ;;  %2629 = vmatprep.subr.bf16.mxu0 %v2867_v1  ;;  %v2870_v4 = vld [vmem:[%s3994_s4] sm:$0xff]   ;;  %v2878_v13 = vld [vmem:[%s3329_s11 + $0x10] sm:$0xff]   ;;  %vm621_vm3 = vcmask 785408   ;;  %v3132_v50 = vmov 0   ;;  %s976_s17 = sadd.s32 7, %s3316_s18 }
  0x35   : > { %2641 = vmatprep.subr.bf16.mxu1 %v2868_v2  ;;  %2630 = vmatpush3.bf16.msra.mxu0 %v2867_v1  ;;  %v2871_v5 = vld [vmem:[%s3324_s25] sm:$0xff]   ;;  %v2873_v7 = vld [vmem:[%s3324_s25 + $0x8] sm:$0xff]   ;;  %v2879_v14 = vld [vmem:[%s3324_s25 + $0x18] sm:$0xff]   ;;  %s3133_s25 = smov 32   ;;  %s3134_s23 = smov 96  }
  0x36   : > { %2642 = vmatpush3.bf16.msra.mxu1 %v2868_v2  ;;  %2631 = vmatprep.subr.bf16.mxu0 %v2869_v3  ;;  %v2872_v6 = vld [vmem:[%s3329_s11] sm:$0xff]   ;;  %v2874_v8 = vld [vmem:[%s3329_s11 + $0x8] sm:$0xff]   ;;  %v2880_v15 = vld [vmem:[%s3329_s11 + $0x18] sm:$0xff]   ;;  %s3130_s11 = smov 64   ;;  %s1156_s16 = sadd.s32 1, %s3310_s19 }
  0x37   : > { %2643 = vmatprep.subr.bf16.mxu1 %v2870_v4  ;;  %2633 = vmatprep.mubr.msk.bf16.mxu0 %vm543_vm1, %v2871_v5  ;;  %v3358_v10 = vld [vmem:[%s3995_s5 + $0x8] sm:$0xff]   ;;  %v3380_v16 = vld [vmem:[%s3995_s5] sm:$0xff]   ;;  %s1159_s24 = sadd.s32 6, %s3316_s18  ;;  %s1340_s28 = sadd.s32 2, %s3310_s19 }
  0x38   : > { %2645 = vmatprep.mubr.msk.bf16.mxu1 %vm543_vm1, %v2872_v6  ;;  %v3364_v11 = vld [vmem:[%s3996_s6 + $0x8] sm:$0xff]   ;;  %v3386_v17 = vld [vmem:[%s3996_s6] sm:$0xff]   ;;  %2865 = vset.pattern.permute.xlu0 %v3132_v50  ;;  %s1343_s26 = sadd.s32 5, %s3316_s18  ;;  %s1524_s27 = sadd.s32 3, %s3310_s19 }
  0x39   : > { %2632 = vmatpush3.bf16.msra.mxu0 %v2869_v3  ;;  %v2508_v18 = vld [vmem:[%s3999_s9] ss:$0 sm:$0xff]  ;;  %v3406_v21 = vld [vmem:[#allocation3] sm:$0xff]  ;;  %2866 = vset.pattern.permute.xlu1 %v3132_v50  ;;  %s1527_s13 = sadd.s32 4, %s3316_s18  ;;  %s1708_s30 = sadd.s32 4, %s3310_s19 }
  0x3a   : > { %2644 = vmatpush3.bf16.msra.mxu1 %v2870_v4  ;;  %2653 = vmatprep.subr.bf16.mxu0 %v3129_v9  ;;  %v2513_v19 = vld [vmem:[%s4000_s10] ss:$0 sm:$0xff]  ;;  %v879_v23 = vpack.c.bf16 %v3406_v21, %v3406_v21  ;;  %s1711_s14 = sadd.s32 3, %s3316_s18  ;;  %p2556_p7 = scmp.ne.s32.totalorder %s3246_s15, 1 }
  0x3b   : > { %2661 = vmatprep.subr.bf16.mxu1 %v3129_v9  ;;  %852 = vrot.lane.b32.xlu0 %v2508_v18, %s3130_s11  ;;  %v3402_v20 = vld [vmem:[#allocation2] sm:$0xff] }
  0x3c   : > { %2634 = vmatmul.mubr.msk.bf16.vlgmr.msra.gmra.mxu0 %vm543_vm1, %v2873_v7  ;;  %v784_v22 = vpack.c.bf16 %v3402_v20, %v3402_v20  ;;  %v2480_v24 = vld [vmem:[%s3997_s7] ss:$0 sm:$0xff] }
  0x3d   : > { %2646 = vmatmul.mubr.msk.bf16.vlgmr.msra.gmra.mxu1 %vm543_vm1, %v2874_v8  ;;  %2654 = vmatpush3.bf16.msra.mxu0 %v3358_v10  ;;  %v2491_v25 = vld [vmem:[%s3998_s8] ss:$0 sm:$0xff] }
  0x3e   : > { %2662 = vmatpush3.bf16.msra.mxu1 %v3364_v11  ;;  %2637 = vmatprep.mubr.msk.bf16.mxu0 %vm543_vm1, %v2877_v12 }
  0x3f   : > { %2649 = vmatprep.mubr.msk.bf16.mxu1 %vm543_vm1, %v2878_v13  ;;  %2655 = vmatprep.subr.bf16.mxu0 %v3129_v9 }
  0x40   : > { %2663 = vmatprep.subr.bf16.mxu1 %v3129_v9  ;;  %947 = vrot.lane.b32.xlu0 %v2513_v19, %s3130_s11 }
  0x41   : > { %2656 = vmatpush3.bf16.msra.mxu0 %v3380_v16 }
  0x42   : > { %2664 = vmatpush3.bf16.msra.mxu1 %v3386_v17  ;;  %2669 = vmatprep.subr.bf16.mxu0 %v3129_v9 }
  0x43   : > { %2677 = vmatprep.subr.bf16.mxu1 %v3129_v9 }
  0x44   : > { %2638 = vmatmul.mubr.msk.bf16.gmra.mxu0 %vm543_vm1, %v2879_v14 }
  0x45   : > { %2650 = vmatmul.mubr.msk.bf16.gmra.mxu1 %vm543_vm1, %v2880_v15  ;;  %2657 = vmatprep.mubr.msk.bf16.mxu0 %vm3131_vm2, %v3129_v9 }
  0x46   : > { %2665 = vmatprep.mubr.msk.bf16.mxu1 %vm3131_vm2, %v3129_v9 }
  0x4c   : > { %2658 = vmatmul.mubr.msk.bf16.vlgmr.msra.gmra.mxu0 %vm543_vm1, %v784_v22 }
  0x4d   : > { %2666 = vmatmul.mubr.msk.bf16.vlgmr.msra.gmra.mxu1 %vm543_vm1, %v879_v23  ;;  %2670 = vmatpush3.bf16.msra.mxu0 %v3358_v10 }
  0x4e   : > { %2671 = vmatprep.subr.bf16.mxu0 %v3129_v9  ;;  %2678 = vmatpush3.bf16.msra.mxu1 %v3364_v11 }
  0x4f   : > { %2673 = vmatprep.mubr.msk.bf16.mxu0 %vm3131_vm2, %v3129_v9  ;;  %2679 = vmatprep.subr.bf16.mxu1 %v3129_v9 }
  0x50   : > { %2681 = vmatprep.mubr.msk.bf16.mxu1 %vm3131_vm2, %v3129_v9 }
  0x51   : > { %2672 = vmatpush3.bf16.msra.mxu0 %v3380_v16 }
  0x52   : > { %2680 = vmatpush3.bf16.msra.mxu1 %v3386_v17  ;;  %2685 = vmatprep.subr.bf16.mxu0 %v3129_v9 }
  0x53   : > { %2693 = vmatprep.subr.bf16.mxu1 %v3129_v9 }
  0xad   : > { %v3442_v47 = vpop.permute.xlu0 %852 }
  0xb2   : > { %v3452_v61 = vpop.permute.xlu0 %947 }
  0xfc   : > { %v2635_v26 = vpop.f32.mrf.mxu0 }
  0xfd   : > { %v599_v27 = vadd.f32 %v2635_v26, %v2480_v24  ;;  %v2647_v28 = vpop.f32.mrf.mxu1 }
  0xfe   : > { %v736_v29 = vadd.f32 %v2647_v28, %v2491_v25  ;;  %v590_v30 = vpop.f32.mrf.mxu0 }
  0xff   : > { %624 = vst.msk [vmem:[#allocation4 + $0x10] sm:$0xff] %vm621_vm3, %v599_v27  ;;  %v591_v31 = vadd.f32 %v2480_v24, %v590_v30  ;;  %v727_v32 = vpop.f32.mrf.mxu1 }
 0x100   : > { %760 = vst.msk [vmem:[#allocation5 + $0x10] sm:$0xff] %vm621_vm3, %v736_v29  ;;  %v728_v33 = vadd.f32 %v2491_v25, %v727_v32  ;;  %v2636_v34 = vpop.f32.mrf.mxu0  ;;  %v977_v29 = vstv %s976_s17  ;;  %s2076_s17 = sadd.s32 6, %s3310_s19 }
 0x101   : > { %622 = vst.msk [vmem:[#allocation4] sm:$0xff] %vm621_vm3, %v591_v31  ;;  %v602_v35 = vadd.f32 %v2636_v34, %v2480_v24  ;;  %v2648_v36 = vpop.f32.mrf.mxu1 }
 0x102   : > { %758 = vst.msk [vmem:[#allocation5] sm:$0xff] %vm621_vm3, %v728_v33  ;;  %v739_v37 = vadd.f32 %v2648_v36, %v2491_v25  ;;  %v593_v38 = vpop.f32.mrf.mxu0 }
 0x103   : > { %625 = vst.msk [vmem:[#allocation4 + $0x18] sm:$0xff] %vm621_vm3, %v602_v35  ;;  %v594_v39 = vadd.f32 %v2480_v24, %v593_v38  ;;  %v730_v40 = vpop.f32.mrf.mxu1 }
 0x104   : > { %761 = vst.msk [vmem:[#allocation5 + $0x18] sm:$0xff] %vm621_vm3, %v739_v37  ;;  %v731_v41 = vadd.f32 %v2491_v25, %v730_v40  ;;  %v2639_v42 = vpop.f32.mrf.mxu0 }
 0x105   : > { %623 = vst.msk [vmem:[#allocation4 + $0x8] sm:$0xff] %vm621_vm3, %v594_v39  ;;  %v615_v43 = vadd.f32 %v2639_v42, %v2480_v24  ;;  %v2651_v44 = vpop.f32.mrf.mxu1 }
 0x106   : > { %759 = vst.msk [vmem:[#allocation5 + $0x8] sm:$0xff] %vm621_vm3, %v731_v41  ;;  %v752_v45 = vadd.f32 %v2651_v44, %v2491_v25  ;;  %v606_v46 = vpop.f32.mrf.mxu0 }
 0x107   : > { %628 = vst.msk [vmem:[#allocation4 + $0x30] sm:$0xff] %vm621_vm3, %v615_v43  ;;  %v607_v48 = vadd.f32 %v2480_v24, %v606_v46  ;;  %v743_v49 = vpop.f32.mrf.mxu1 }
 0x108   : > { %764 = vst.msk [vmem:[#allocation5 + $0x30] sm:$0xff] %vm621_vm3, %v752_v45  ;;  %v744_v51 = vadd.f32 %v2491_v25, %v743_v49  ;;  %v2640_v52 = vpop.f32.mrf.mxu0  ;;  %v781_v7 = vld [vmem:[#allocation4] sm:$0xff] }
 0x109   : > { %626 = vst.msk [vmem:[#allocation4 + $0x20] sm:$0xff] %vm621_vm3, %v607_v48  ;;  %v618_v53 = vadd.f32 %v2640_v52, %v2480_v24  ;;  %v2652_v54 = vpop.f32.mrf.mxu1 }
 0x10a   : > { %762 = vst.msk [vmem:[#allocation5 + $0x20] sm:$0xff] %vm621_vm3, %v744_v51  ;;  %v755_v55 = vadd.f32 %v2652_v54, %v2491_v25  ;;  %v609_v56 = vpop.f32.mrf.mxu0 }
 0x10b   : > { %629 = vst.msk [vmem:[#allocation4 + $0x38] sm:$0xff] %vm621_vm3, %v618_v53  ;;  %v610_v57 = vadd.f32 %v2480_v24, %v609_v56  ;;  %v746_v58 = vpop.f32.mrf.mxu1  ;;  %v3463_v24 = vld [vmem:[%s3992_s2] sm:$0xff] }
 0x10c   : > { %765 = vst.msk [vmem:[#allocation5 + $0x38] sm:$0xff] %vm621_vm3, %v755_v55  ;;  %v747_v59 = vadd.f32 %v2491_v25, %v746_v58  ;;  %v834_v60 = vpop.f32.mrf.mxu0  ;;  %v974_v25 = vstv %s3310_s19  ;;  %vm978_vm5 = vcmp.lt.s32.totalorder %v977_v29, %v3463_v24 }
 0x10d   : > { %627 = vst.msk [vmem:[#allocation4 + $0x28] sm:$0xff] %vm621_vm3, %v610_v57  ;;  %v929_v62 = vpop.f32.mrf.mxu1  ;;  %v855_v63 = vadd.f32 %v3442_v47, %v834_v60  ;;  %v840_v8 = vadd.f32 %v834_v60, %v781_v7  ;;  %vm975_vm4 = vcmp.lt.s32.totalorder %v974_v25, %v3463_v24  ;;  %v990_v34 = vsel %vm978_vm5, 1, %v3132_v50 }
 0x10e   : > { %763 = vst.msk [vmem:[#allocation5 + $0x28] sm:$0xff] %vm621_vm3, %v747_v59  ;;  %v2659_v0 = vpop.f32.mrf.mxu0  ;;  %v950_v2 = vadd.f32 %v3452_v61, %v929_v62  ;;  %v979_v32 = vsel %vm975_vm4, 1, %v3132_v50 }
 0x10f   : > { %v2667_v1 = vpop.f32.mrf.mxu1  ;;  %857 = vrot.lane.b32.xlu1 %v855_v63, %s3130_s11  ;;  %v2507_v13 = vmul.f32 -1.442695, %v840_v8 }
 0x110   : > { %v837_v3 = vpop.f32.mrf.mxu0 }
 0x111   : > { %v932_v4 = vpop.f32.mrf.mxu1  ;;  %2883 = vpow2.f32 %v2507_v13  ;;  %v1005_v13 = vld [vmem:[#allocation4 + $0x8] sm:$0xff] }
 0x112   : > { %v2660_v5 = vpop.f32.mrf.mxu0 }
 0x113   : > { %v2668_v6 = vpop.f32.mrf.mxu1  ;;  %952 = vrot.lane.b32.xlu1 %v950_v2, %s3130_s11  ;;  %v783_v12 = vld [vmem:[#allocation5 + $0x38] sm:$0xff] }
 0x114   : > { %v935_v14 = vadd.f32 %v929_v62, %v783_v12 }
 0x116   : > { %v2512_v15 = vmul.f32 -1.442695, %v935_v14 }
 0x118   : > { %2885 = vpow2.f32 %v2512_v15  ;;  %v1007_v15 = vld [vmem:[#allocation5 + $0x30] sm:$0xff] }
 0x11e   : > { %v2884_v18 = vpop.eup %2883 }
 0x11f   : > { %v844_v19 = vadd.f32 1.0, %v2884_v18 }
 0x121   : > { %2887 = vrcp.f32 %v844_v19 }
 0x125   : > { %v2886_v22 = vpop.eup %2885 }
 0x126   : > { %v939_v23 = vadd.f32 1.0, %v2886_v22 }
 0x128   : > { %2889 = vrcp.f32 %v939_v23 }
 0x12e   : > { %v2888_v26 = vpop.eup %2887 }
 0x135   : > { %v2890_v30 = vpop.eup %2889 }
 0x136   : > { %v962_v49 = vsub.f32 1.0, %v2890_v30 }
 0x181   : > { %v858_v27 = vpop.permute.xlu1 %857 }
 0x182   : > { %v860_v28 = vmul.f32 %v2888_v26, %v858_v27 }
 0x184   : > { %862 = vrot.lane.b32.xlu0 %v860_v28, %s3130_s11  ;;  %v1157_v28 = vstv %s1156_s16 }
 0x185   : > { %v953_v31 = vpop.permute.xlu1 %952  ;;  %vm1158_vm8 = vcmp.lt.s32.totalorder %v1157_v28, %v3463_v24 }
 0x186   : > { %v955_v33 = vmul.f32 %v2890_v30, %v953_v31 }
 0x188   : > { %957 = vrot.lane.b32.xlu1 %v955_v33, %s3130_s11  ;;  %981 = vperm.xlu0 %2865, %v979_v32   ;;  %v1160_v32 = vstv %s1159_s24 }
 0x189   : > { %vm1161_vm9 = vcmp.lt.s32.totalorder %v1160_v32, %v3463_v24 }
 0x18c   : > { %874 = vrot.lane.b32.xlu0 %v3402_v20, %s3133_s25  ;;  %992 = vperm.xlu1 %2866, %v990_v34   ;;  %v867_v20 = vsub.f32 1.0, %v2888_v26 }
 0x190   : > { %969 = vrot.lane.b32.xlu0 %v3406_v21, %s3133_s25  ;;  %s2079_s25 = sadd.s32 1, %s3316_s18 }
 0x1f6   : > { %v863_v35 = vpop.permute.xlu0 %862 }
 0x1f7   : > { %v865_v36 = vadd.f32 %v863_v35, %v781_v7  ;;  %v1162_v35 = vsel %vm1158_vm8, 1, %v3132_v50 }
 0x1f9   : > { %2891 = vtanh.f32 %v865_v36 }
 0x1fa   : > { %v958_v37 = vpop.permute.xlu1 %957 }
 0x1fb   : > { %v960_v38 = vadd.f32 %v958_v37, %v783_v12  ;;  %v1174_v37 = vsel %vm1161_vm9, 1, %v3132_v50 }
 0x1fd   : > { %2893 = vtanh.f32 %v960_v38 }
 0x203   : > { %v982_v41 = vpop.permute.xlu0 %981 }
 0x204   : > { %vm983_vm6 = vcmp.eq.s32.totalorder %v982_v41, 1 }
 0x206   : > { %v2892_v39 = vpop.eup %2891 }
 0x207   : > { %869 = vrot.lane.b32.xlu1 %v2892_v39, %s3134_s23  ;;  %v993_v42 = vpop.permute.xlu1 %992  ;;  %v875_v43 = vpop.permute.xlu0 %874 }
 0x208   : > { %v877_v45 = vmul.f32 %v2888_v26, %v875_v43  ;;  %vm994_vm7 = vcmp.eq.s32.totalorder %v993_v42, 1 }
 0x20a   : > { %v2894_v40 = vpop.eup %2893 }
 0x20b   : > { %964 = vrot.lane.b32.xlu1 %v2894_v40, %s3134_s23  ;;  %v970_v46 = vpop.permute.xlu0 %969 }
 0x20c   : > { %v972_v52 = vmul.f32 %v2890_v30, %v970_v46 }
 0x279   : > { %v870_v44 = vpop.permute.xlu1 %869 }
 0x27a   : > { %v872_v21 = vmul.f32 %v870_v44, %v867_v20 }
 0x27c   : > { %v878_v48 = vadd.f32 %v877_v45, %v872_v21 }
 0x27d   : > { %v965_v51 = vpop.permute.xlu1 %964 }
 0x27e   : > { %v967_v53 = vmul.f32 %v965_v51, %v962_v49  ;;  %v3477_v54 = vsel %vm983_vm6, %v878_v48, %v875_v43  ;;  %v3479_v55 = vsel %vm983_vm6, %v878_v48, 0.0 }
 0x27f   : > { %v1008_v56 = vpack.c.bf16 %v3477_v54, %v3477_v54 }
 0x280   : > { %v973_v57 = vadd.f32 %v972_v52, %v967_v53 }
 0x281   : > { %1010 = vrot.lane.b32.xlu1 %v1008_v56, %s3134_s23 }
 0x282   : > { %v3484_v58 = vsel %vm994_vm7, %v973_v57, %v970_v46  ;;  %v3486_v59 = vsel %vm994_vm7, %v973_v57, 0.0 }
 0x283   : > { %v1082_v60 = vpack.c.bf16 %v3484_v58, %v3484_v58 }
 0x285   : > { %1084 = vrot.lane.b32.xlu0 %v1082_v60, %s3134_s23 }
 0x2f3   : > { %v1011_v62 = vpop.permute.xlu1 %1010 }
 0x2f4   : > { %2674 = vmatmul.mubr.msk.bf16.vlgmr.msra.gmra.mxu0 %vm543_vm1, %v1011_v62 }
 0x2f5   : > { %2686 = vmatpush3.bf16.msra.mxu0 %v3358_v10  ;;  %2689 = vmatprep.mubr.msk.bf16.mxu0 %vm3131_vm2, %v3129_v9 }
 0x2f6   : > { %2687 = vmatprep.subr.bf16.mxu0 %v3129_v9 }
 0x2f7   : > { %v1085_v63 = vpop.permute.xlu0 %1084 }
 0x2f8   : > { %2682 = vmatmul.mubr.msk.bf16.vlgmr.msra.gmra.mxu1 %vm543_vm1, %v1085_v63 }
 0x2f9   : > { %2688 = vmatpush3.bf16.msra.mxu0 %v3380_v16  ;;  %2694 = vmatpush3.bf16.msra.mxu1 %v3364_v11 }
 0x2fa   : > { %2695 = vmatprep.subr.bf16.mxu1 %v3129_v9  ;;  %2697 = vmatprep.mubr.msk.bf16.mxu1 %vm3131_vm2, %v3129_v9 }
 0x2fb   : > { %2701 = vmatprep.subr.bf16.mxu0 %v3129_v9 }
 0x2fd   : > { %2696 = vmatpush3.bf16.msra.mxu1 %v3386_v17 }
 0x2fe   : > { %2709 = vmatprep.subr.bf16.mxu1 %v3129_v9 }
 0x3b4   : > { %v1049_v0 = vpop.f32.mrf.mxu0 }
 0x3b5   : > { %v1062_v1 = vadd.f32 %v1049_v0, %v3442_v47  ;;  %v1055_v14 = vadd.f32 %v1049_v0, %v1005_v13 }
 0x3b6   : > { %v2675_v2 = vpop.f32.mrf.mxu0 }
 0x3b7   : > { %1064 = vrot.lane.b32.xlu1 %v1062_v1, %s3130_s11  ;;  %v2516_v18 = vmul.f32 -1.442695, %v1055_v14 }
 0x3b8   : > { %v1052_v3 = vpop.f32.mrf.mxu0  ;;  %v1123_v4 = vpop.f32.mrf.mxu1 }
 0x3b9   : > { %v1136_v5 = vadd.f32 %v1123_v4, %v3452_v61  ;;  %v1129_v19 = vadd.f32 %v1123_v4, %v1007_v15  ;;  %2895 = vpow2.f32 %v2516_v18  ;;  %v1189_v18 = vld [vmem:[#allocation4 + $0x10] sm:$0xff] }
 0x3ba   : > { %v2676_v6 = vpop.f32.mrf.mxu0  ;;  %v2683_v7 = vpop.f32.mrf.mxu1 }
 0x3bb   : > { %1138 = vrot.lane.b32.xlu0 %v1136_v5, %s3130_s11  ;;  %v2518_v22 = vmul.f32 -1.442695, %v1129_v19 }
 0x3bc   : > { %v1126_v8 = vpop.f32.mrf.mxu1 }
 0x3bd   : > { %2897 = vpow2.f32 %v2518_v22  ;;  %v1191_v22 = vld [vmem:[#allocation5 + $0x28] sm:$0xff] }
 0x3be   : > { %v2684_v12 = vpop.f32.mrf.mxu1 }
 0x3c6   : > { %v2896_v23 = vpop.eup %2895 }
 0x3c7   : > { %v1059_v25 = vadd.f32 1.0, %v2896_v23 }
 0x3c9   : > { %2899 = vrcp.f32 %v1059_v25 }
 0x3ca   : > { %v2898_v26 = vpop.eup %2897 }
 0x3cb   : > { %v1133_v27 = vadd.f32 1.0, %v2898_v26 }
 0x3cd   : > { %2901 = vrcp.f32 %v1133_v27 }
 0x3d6   : > { %v2900_v29 = vpop.eup %2899 }
 0x3d7   : > { %v1074_v44 = vsub.f32 1.0, %v2900_v29  ;;  %v1080_v46 = vmul.f32 %v2900_v29, %v3477_v54 }
 0x3da   : > { %v2902_v33 = vpop.eup %2901 }
 0x3db   : > { %v1148_v51 = vsub.f32 1.0, %v2902_v33  ;;  %v1154_v53 = vmul.f32 %v2902_v33, %v3484_v58 }
 0x429   : > { %v1065_v30 = vpop.permute.xlu1 %1064 }
 0x42a   : > { %v1067_v31 = vmul.f32 %v2900_v29, %v1065_v30 }
 0x42c   : > { %1069 = vrot.lane.b32.xlu1 %v1067_v31, %s3130_s11  ;;  %v1341_v31 = vstv %s1340_s28  ;;  %s2259_s28 = sadd.s32 7, %s3310_s19 }
 0x42d   : > { %v1139_v34 = vpop.permute.xlu0 %1138  ;;  %vm1342_vm12 = vcmp.lt.s32.totalorder %v1341_v31, %v3463_v24 }
 0x42e   : > { %v1141_v36 = vmul.f32 %v2902_v33, %v1139_v34 }
 0x430   : > { %1164 = vperm.xlu1 %2866, %v1162_v35   ;;  %1143 = vrot.lane.b32.xlu0 %v1141_v36, %s3130_s11  ;;  %v1344_v35 = vstv %s1343_s26 }
 0x431   : > { %vm1345_vm13 = vcmp.lt.s32.totalorder %v1344_v35, %v3463_v24 }
 0x434   : > { %1176 = vperm.xlu0 %2865, %v1174_v37  }
 0x49e   : > { %v1070_v38 = vpop.permute.xlu1 %1069 }
 0x49f   : > { %v1072_v39 = vadd.f32 %v1070_v38, %v1005_v13  ;;  %v1346_v38 = vsel %vm1342_vm12, 1, %v3132_v50 }
 0x4a1   : > { %2903 = vtanh.f32 %v1072_v39 }
 0x4a2   : > { %v1144_v40 = vpop.permute.xlu0 %1143 }
 0x4a3   : > { %v1146_v41 = vadd.f32 %v1144_v40, %v1007_v15  ;;  %v1358_v40 = vsel %vm1345_vm13, 1, %v3132_v50 }
 0x4a5   : > { %2905 = vtanh.f32 %v1146_v41 }
 0x4ab   : > { %v1165_v20 = vpop.permute.xlu1 %1164 }
 0x4ac   : > { %vm1166_vm10 = vcmp.eq.s32.totalorder %v1165_v20, 1 }
 0x4ae   : > { %v2904_v42 = vpop.eup %2903 }
 0x4af   : > { %1076 = vrot.lane.b32.xlu1 %v2904_v42, %s3134_s23  ;;  %v1177_v45 = vpop.permute.xlu0 %1176 }
 0x4b0   : > { %vm1178_vm11 = vcmp.eq.s32.totalorder %v1177_v45, 1 }
 0x4b2   : > { %v2906_v43 = vpop.eup %2905 }
 0x4b3   : > { %1150 = vrot.lane.b32.xlu0 %v2906_v43, %s3134_s23 }
 0x521   : > { %v1077_v21 = vpop.permute.xlu1 %1076 }
 0x522   : > { %v1079_v48 = vmul.f32 %v1077_v21, %v1074_v44 }
 0x524   : > { %v1081_v49 = vadd.f32 %v1080_v46, %v1079_v48 }
 0x525   : > { %v1151_v52 = vpop.permute.xlu0 %1150 }
 0x526   : > { %v1153_v56 = vmul.f32 %v1151_v52, %v1148_v51  ;;  %v3522_v57 = vsel %vm1166_vm10, %v1081_v49, %v3477_v54  ;;  %v3524_v60 = vsel %vm1166_vm10, %v1081_v49, 0.0 }
 0x527   : > { %v1192_v62 = vpack.c.bf16 %v3522_v57, %v3522_v57 }
 0x528   : > { %v1155_v63 = vadd.f32 %v1154_v53, %v1153_v56 }
 0x529   : > { %1194 = vrot.lane.b32.xlu1 %v1192_v62, %s3134_s23 }
 0x52a   : > { %v3530_v0 = vsel %vm1178_vm11, %v1155_v63, %v3484_v58  ;;  %v3532_v1 = vsel %vm1178_vm11, %v1155_v63, 0.0 }
 0x52b   : > { %v1266_v2 = vpack.c.bf16 %v3530_v0, %v3530_v0 }
 0x52d   : > { %1268 = vrot.lane.b32.xlu0 %v1266_v2, %s3134_s23 }
 0x59b   : > { %v1195_v54 = vpop.permute.xlu1 %1194 }
 0x59c   : > { %2690 = vmatmul.mubr.msk.bf16.vlgmr.msra.gmra.mxu0 %vm543_vm1, %v1195_v54 }
 0x59d   : > { %2702 = vmatpush3.bf16.msra.mxu0 %v3358_v10  ;;  %2705 = vmatprep.mubr.msk.bf16.mxu0 %vm3131_vm2, %v3129_v9 }
 0x59e   : > { %2703 = vmatprep.subr.bf16.mxu0 %v3129_v9 }
 0x59f   : > { %v1269_v3 = vpop.permute.xlu0 %1268 }
 0x5a0   : > { %2698 = vmatmul.mubr.msk.bf16.vlgmr.msra.gmra.mxu1 %vm543_vm1, %v1269_v3 }
 0x5a1   : > { %2704 = vmatpush3.bf16.msra.mxu0 %v3380_v16  ;;  %2710 = vmatpush3.bf16.msra.mxu1 %v3364_v11 }
 0x5a2   : > { %2711 = vmatprep.subr.bf16.mxu1 %v3129_v9  ;;  %2713 = vmatprep.mubr.msk.bf16.mxu1 %vm3131_vm2, %v3129_v9 }
 0x5a3   : > { %2717 = vmatprep.subr.bf16.mxu0 %v3129_v9 }
 0x5a5   : > { %2712 = vmatpush3.bf16.msra.mxu1 %v3386_v17 }
 0x5a6   : > { %2725 = vmatprep.subr.bf16.mxu1 %v3129_v9 }
 0x65c   : > { %v1233_v58 = vpop.f32.mrf.mxu0 }
 0x65d   : > { %v1246_v4 = vadd.f32 %v1233_v58, %v3442_v47  ;;  %v1239_v19 = vadd.f32 %v1233_v58, %v1189_v18 }
 0x65e   : > { %v2691_v5 = vpop.f32.mrf.mxu0 }
 0x65f   : > { %1248 = vrot.lane.b32.xlu1 %v1246_v4, %s3130_s11  ;;  %v2522_v23 = vmul.f32 -1.442695, %v1239_v19 }
 0x660   : > { %v1236_v6 = vpop.f32.mrf.mxu0  ;;  %v1307_v7 = vpop.f32.mrf.mxu1 }
 0x661   : > { %v1320_v8 = vadd.f32 %v1307_v7, %v3452_v61  ;;  %v1313_v25 = vadd.f32 %v1307_v7, %v1191_v22  ;;  %2907 = vpow2.f32 %v2522_v23 }
 0x662   : > { %v2692_v12 = vpop.f32.mrf.mxu0  ;;  %v2699_v13 = vpop.f32.mrf.mxu1 }
 0x663   : > { %1322 = vrot.lane.b32.xlu0 %v1320_v8, %s3130_s11  ;;  %v2524_v26 = vmul.f32 -1.442695, %v1313_v25 }
 0x664   : > { %v1310_v14 = vpop.f32.mrf.mxu1 }
 0x665   : > { %2909 = vpow2.f32 %v2524_v26  ;;  %v1373_v26 = vld [vmem:[#allocation4 + $0x18] sm:$0xff] }
 0x666   : > { %v2700_v15 = vpop.f32.mrf.mxu1 }
 0x66e   : > { %v2908_v27 = vpop.eup %2907 }
 0x66f   : > { %v1243_v28 = vadd.f32 1.0, %v2908_v27 }
 0x671   : > { %2911 = vrcp.f32 %v1243_v28  ;;  %v1375_v28 = vld [vmem:[#allocation5 + $0x20] sm:$0xff] }
 0x672   : > { %v2910_v29 = vpop.eup %2909 }
 0x673   : > { %v1317_v30 = vadd.f32 1.0, %v2910_v29 }
 0x675   : > { %2913 = vrcp.f32 %v1317_v30 }
 0x67e   : > { %v2912_v32 = vpop.eup %2911 }
 0x67f   : > { %v1258_v46 = vsub.f32 1.0, %v2912_v32  ;;  %v1264_v51 = vmul.f32 %v2912_v32, %v3522_v57 }
 0x682   : > { %v2914_v36 = vpop.eup %2913 }
 0x683   : > { %v1332_v56 = vsub.f32 1.0, %v2914_v36  ;;  %v1338_v63 = vmul.f32 %v2914_v36, %v3530_v0 }
 0x6d1   : > { %v1249_v33 = vpop.permute.xlu1 %1248 }
 0x6d2   : > { %v1251_v34 = vmul.f32 %v2912_v32, %v1249_v33 }
 0x6d4   : > { %1253 = vrot.lane.b32.xlu1 %v1251_v34, %s3130_s11 }
 0x6d5   : > { %v1323_v37 = vpop.permute.xlu0 %1322 }
 0x6d6   : > { %v1325_v39 = vmul.f32 %v2914_v36, %v1323_v37  ;;  %v1525_v36 = vstv %s1524_s27 }
 0x6d7   : > { %vm1526_vm0 = vcmp.lt.s32.totalorder %v1525_v36, %v3463_v24 }
 0x6d8   : > { %1348 = vperm.xlu1 %2866, %v1346_v38   ;;  %1327 = vrot.lane.b32.xlu0 %v1325_v39, %s3130_s11 }
 0x6dc   : > { %1360 = vperm.xlu0 %2865, %v1358_v40   ;;  %v1528_v40 = vstv %s1527_s13 }
 0x6dd   : > { %vm1529_vm3 = vcmp.lt.s32.totalorder %v1528_v40, %v3463_v24 }
 0x746   : > { %v1254_v41 = vpop.permute.xlu1 %1253 }
 0x747   : > { %v1256_v42 = vadd.f32 %v1254_v41, %v1189_v18 }
 0x749   : > { %2915 = vtanh.f32 %v1256_v42 }
 0x74a   : > { %v1328_v43 = vpop.permute.xlu0 %1327 }
 0x74b   : > { %v1330_v20 = vadd.f32 %v1328_v43, %v1191_v22  ;;  %v1530_v43 = vsel %vm1526_vm0, 1, %v3132_v50 }
 0x74d   : > { %2917 = vtanh.f32 %v1330_v20 }
 0x753   : > { %v1349_v21 = vpop.permute.xlu1 %1348 }
 0x754   : > { %vm1350_vm14 = vcmp.eq.s32.totalorder %v1349_v21, 1 }
 0x756   : > { %v2916_v44 = vpop.eup %2915 }
 0x757   : > { %1260 = vrot.lane.b32.xlu1 %v2916_v44, %s3134_s23  ;;  %v1361_v48 = vpop.permute.xlu0 %1360  ;;  %v1542_v44 = vsel %vm1529_vm3, 1, %v3132_v50 }
 0x758   : > { %vm1362_vm15 = vcmp.eq.s32.totalorder %v1361_v48, 1 }
 0x75a   : > { %v2918_v45 = vpop.eup %2917 }
 0x75b   : > { %1334 = vrot.lane.b32.xlu0 %v2918_v45, %s3134_s23 }
 0x7c9   : > { %v1261_v49 = vpop.permute.xlu1 %1260 }
 0x7ca   : > { %v1263_v52 = vmul.f32 %v1261_v49, %v1258_v46 }
 0x7cc   : > { %v1265_v53 = vadd.f32 %v1264_v51, %v1263_v52 }
 0x7cd   : > { %v1335_v62 = vpop.permute.xlu0 %1334 }
 0x7ce   : > { %v1337_v2 = vmul.f32 %v1335_v62, %v1332_v56  ;;  %v3568_v54 = vsel %vm1350_vm14, %v1265_v53, %v3522_v57  ;;  %v3570_v3 = vsel %vm1350_vm14, %v1265_v53, 0.0 }
 0x7cf   : > { %v1376_v58 = vpack.c.bf16 %v3568_v54, %v3568_v54 }
 0x7d0   : > { %v1339_v4 = vadd.f32 %v1338_v63, %v1337_v2 }
 0x7d1   : > { %1378 = vrot.lane.b32.xlu1 %v1376_v58, %s3134_s23 }
 0x7d2   : > { %v3576_v5 = vsel %vm1362_vm15, %v1339_v4, %v3530_v0  ;;  %v3578_v6 = vsel %vm1362_vm15, %v1339_v4, 0.0 }
 0x7d3   : > { %v1450_v7 = vpack.c.bf16 %v3576_v5, %v3576_v5 }
 0x7d5   : > { %1452 = vrot.lane.b32.xlu0 %v1450_v7, %s3134_s23 }
 0x843   : > { %v1379_v57 = vpop.permute.xlu1 %1378 }
 0x844   : > { %2706 = vmatmul.mubr.msk.bf16.vlgmr.msra.gmra.mxu0 %vm543_vm1, %v1379_v57 }
 0x845   : > { %2718 = vmatpush3.bf16.msra.mxu0 %v3358_v10  ;;  %2721 = vmatprep.mubr.msk.bf16.mxu0 %vm3131_vm2, %v3129_v9 }
 0x846   : > { %2719 = vmatprep.subr.bf16.mxu0 %v3129_v9 }
 0x847   : > { %v1453_v8 = vpop.permute.xlu0 %1452 }
 0x848   : > { %2714 = vmatmul.mubr.msk.bf16.vlgmr.msra.gmra.mxu1 %vm543_vm1, %v1453_v8 }
 0x849   : > { %2720 = vmatpush3.bf16.msra.mxu0 %v3380_v16  ;;  %2726 = vmatpush3.bf16.msra.mxu1 %v3364_v11 }
 0x84a   : > { %2727 = vmatprep.subr.bf16.mxu1 %v3129_v9  ;;  %2729 = vmatprep.mubr.msk.bf16.mxu1 %vm3131_vm2, %v3129_v9 }
 0x84b   : > { %2733 = vmatprep.subr.bf16.mxu0 %v3129_v9 }
 0x84d   : > { %2728 = vmatpush3.bf16.msra.mxu1 %v3386_v17 }
 0x84e   : > { %2741 = vmatprep.subr.bf16.mxu1 %v3129_v9 }
 0x904   : > { %v1417_v0 = vpop.f32.mrf.mxu0 }
 0x905   : > { %v1430_v12 = vadd.f32 %v1417_v0, %v3442_v47  ;;  %v1423_v27 = vadd.f32 %v1417_v0, %v1373_v26 }
 0x906   : > { %v2707_v13 = vpop.f32.mrf.mxu0 }
 0x907   : > { %1432 = vrot.lane.b32.xlu1 %v1430_v12, %s3130_s11  ;;  %v2528_v29 = vmul.f32 -1.442695, %v1423_v27 }
 0x908   : > { %v1420_v14 = vpop.f32.mrf.mxu0  ;;  %v1491_v15 = vpop.f32.mrf.mxu1 }
 0x909   : > { %v1504_v18 = vadd.f32 %v1491_v15, %v3452_v61  ;;  %v1497_v30 = vadd.f32 %v1491_v15, %v1375_v28  ;;  %2919 = vpow2.f32 %v2528_v29 }
 0x90a   : > { %v2708_v19 = vpop.f32.mrf.mxu0  ;;  %v2715_v22 = vpop.f32.mrf.mxu1 }
 0x90b   : > { %1506 = vrot.lane.b32.xlu0 %v1504_v18, %s3130_s11  ;;  %v2530_v31 = vmul.f32 -1.442695, %v1497_v30 }
 0x90c   : > { %v1494_v23 = vpop.f32.mrf.mxu1 }
 0x90d   : > { %2921 = vpow2.f32 %v2530_v31  ;;  %v1559_v31 = vld [vmem:[#allocation5 + $0x18] sm:$0xff] }
 0x90e   : > { %v2716_v25 = vpop.f32.mrf.mxu1 }
 0x916   : > { %v2920_v32 = vpop.eup %2919 }
 0x917   : > { %v1427_v33 = vadd.f32 1.0, %v2920_v32 }
 0x919   : > { %2923 = vrcp.f32 %v1427_v33 }
 0x91a   : > { %v2922_v34 = vpop.eup %2921 }
 0x91b   : > { %v1501_v35 = vadd.f32 1.0, %v2922_v34 }
 0x91d   : > { %2925 = vrcp.f32 %v1501_v35 }
 0x926   : > { %v2924_v37 = vpop.eup %2923 }
 0x927   : > { %v1442_v53 = vsub.f32 1.0, %v2924_v37  ;;  %v1448_v63 = vmul.f32 %v2924_v37, %v3568_v54 }
 0x92a   : > { %v2926_v41 = vpop.eup %2925 }
 0x92b   : > { %v1516_v4 = vsub.f32 1.0, %v2926_v41  ;;  %v1522_v57 = vmul.f32 %v2926_v41, %v3576_v5 }
 0x979   : > { %v1433_v38 = vpop.permute.xlu1 %1432 }
 0x97a   : > { %v1435_v39 = vmul.f32 %v2924_v37, %v1433_v38 }
 0x97c   : > { %1437 = vrot.lane.b32.xlu1 %v1435_v39, %s3130_s11  ;;  %v1709_v39 = vstv %s1708_s30  ;;  %s1892_s30 = sadd.s32 5, %s3310_s19 }
 0x97d   : > { %v1507_v42 = vpop.permute.xlu0 %1506  ;;  %vm1710_vm6 = vcmp.lt.s32.totalorder %v1709_v39, %v3463_v24 }
 0x97e   : > { %v1509_v20 = vmul.f32 %v2926_v41, %v1507_v42 }
 0x980   : > { %1532 = vperm.xlu1 %2866, %v1530_v43   ;;  %1511 = vrot.lane.b32.xlu0 %v1509_v20, %s3130_s11  ;;  %v1712_v43 = vstv %s1711_s14  ;;  %s1895_s14 = sadd.s32 2, %s3316_s18 }
 0x981   : > { %vm1713_vm7 = vcmp.lt.s32.totalorder %v1712_v43, %v3463_v24 }
 0x984   : > { %1544 = vperm.xlu0 %2865, %v1542_v44  }
 0x9ee   : > { %v1438_v45 = vpop.permute.xlu1 %1437 }
 0x9ef   : > { %v1440_v21 = vadd.f32 %v1438_v45, %v1373_v26  ;;  %v1714_v45 = vsel %vm1710_vm6, 1, %v3132_v50 }
 0x9f1   : > { %2927 = vtanh.f32 %v1440_v21 }
 0x9f2   : > { %v1512_v46 = vpop.permute.xlu0 %1511 }
 0x9f3   : > { %v1514_v48 = vadd.f32 %v1512_v46, %v1375_v28  ;;  %v1726_v46 = vsel %vm1713_vm7, 1, %v3132_v50 }
 0x9f5   : > { %2929 = vtanh.f32 %v1514_v48 }
 0x9fb   : > { %v1533_v52 = vpop.permute.xlu1 %1532 }
 0x9fc   : > { %vm1534_vm4 = vcmp.eq.s32.totalorder %v1533_v52, 1 }
 0x9fe   : > { %v2928_v49 = vpop.eup %2927 }
 0x9ff   : > { %1444 = vrot.lane.b32.xlu1 %v2928_v49, %s3134_s23  ;;  %v1545_v56 = vpop.permute.xlu0 %1544 }
 0xa00   : > { %vm1546_vm5 = vcmp.eq.s32.totalorder %v1545_v56, 1 }
 0xa02   : > { %v2930_v51 = vpop.eup %2929 }
 0xa03   : > { %1518 = vrot.lane.b32.xlu0 %v2930_v51, %s3134_s23 }
 0xa71   : > { %v1445_v62 = vpop.permute.xlu1 %1444 }
 0xa72   : > { %v1447_v2 = vmul.f32 %v1445_v62, %v1442_v53 }
 0xa74   : > { %v1449_v58 = vadd.f32 %v1448_v63, %v1447_v2 }
 0xa75   : > { %v1519_v7 = vpop.permute.xlu0 %1518 }
 0xa76   : > { %v1521_v8 = vmul.f32 %v1519_v7, %v1516_v4  ;;  %v3614_v0 = vsel %vm1534_vm4, %v1449_v58, %v3568_v54  ;;  %v3616_v12 = vsel %vm1534_vm4, %v1449_v58, 0.0 }
 0xa77   : > { %v1560_v13 = vpack.c.bf16 %v3614_v0, %v3614_v0 }
 0xa78   : > { %v1523_v14 = vadd.f32 %v1522_v57, %v1521_v8 }
 0xa79   : > { %1562 = vrot.lane.b32.xlu1 %v1560_v13, %s3134_s23 }
 0xa7a   : > { %v3622_v15 = vsel %vm1546_vm5, %v1523_v14, %v3576_v5  ;;  %v3624_v18 = vsel %vm1546_vm5, %v1523_v14, 0.0 }
 0xa7b   : > { %v1634_v19 = vpack.c.bf16 %v3622_v15, %v3622_v15 }
 0xa7d   : > { %1636 = vrot.lane.b32.xlu0 %v1634_v19, %s3134_s23 }
 0xaeb   : > { %v1563_v54 = vpop.permute.xlu1 %1562 }
 0xaec   : > { %2722 = vmatmul.mubr.msk.bf16.vlgmr.msra.gmra.mxu0 %vm543_vm1, %v1563_v54 }
 0xaed   : > { %2734 = vmatpush3.bf16.msra.mxu0 %v3358_v10  ;;  %2737 = vmatprep.mubr.msk.bf16.mxu0 %vm3131_vm2, %v3129_v9 }
 0xaee   : > { %2735 = vmatprep.subr.bf16.mxu0 %v3129_v9 }
 0xaef   : > { %v1637_v22 = vpop.permute.xlu0 %1636 }
 0xaf0   : > { %2730 = vmatmul.mubr.msk.bf16.vlgmr.msra.gmra.mxu1 %vm543_vm1, %v1637_v22 }
 0xaf1   : > { %2736 = vmatpush3.bf16.msra.mxu0 %v3380_v16  ;;  %2742 = vmatpush3.bf16.msra.mxu1 %v3364_v11 }
 0xaf2   : > { %2743 = vmatprep.subr.bf16.mxu1 %v3129_v9  ;;  %2745 = vmatprep.mubr.msk.bf16.mxu1 %vm3131_vm2, %v3129_v9 }
 0xaf3   : > { %2749 = vmatprep.subr.bf16.mxu0 %v3129_v9 }
 0xaf5   : > { %2744 = vmatpush3.bf16.msra.mxu1 %v3386_v17  ;;  %v1557_v17 = vld [vmem:[#allocation4 + $0x20] sm:$0xff] }
 0xaf6   : > { %2757 = vmatprep.subr.bf16.mxu1 %v3129_v9 }
 0xbac   : > { %v1601_v10 = vpop.f32.mrf.mxu0 }
 0xbad   : > { %v1614_v5 = vadd.f32 %v1601_v10, %v3442_v47  ;;  %v1607_v30 = vadd.f32 %v1601_v10, %v1557_v17 }
 0xbae   : > { %v2723_v23 = vpop.f32.mrf.mxu0 }
 0xbaf   : > { %1616 = vrot.lane.b32.xlu1 %v1614_v5, %s3130_s11  ;;  %v2534_v32 = vmul.f32 -1.442695, %v1607_v30 }
 0xbb0   : > { %v1604_v16 = vpop.f32.mrf.mxu0  ;;  %v1675_v25 = vpop.f32.mrf.mxu1 }
 0xbb1   : > { %v1688_v11 = vadd.f32 %v1675_v25, %v3452_v61  ;;  %v1681_v33 = vadd.f32 %v1675_v25, %v1559_v31  ;;  %2931 = vpow2.f32 %v2534_v32 }
 0xbb2   : > { %v2724_v26 = vpop.f32.mrf.mxu0  ;;  %v2731_v27 = vpop.f32.mrf.mxu1 }
 0xbb3   : > { %1690 = vrot.lane.b32.xlu0 %v1688_v11, %s3130_s11  ;;  %v2536_v34 = vmul.f32 -1.442695, %v1681_v33  ;;  %v3679_v11 = vld [vmem:[%s3995_s5 + $0x8] sm:$0xff]   ;;  %v3689_v26 = vld [vmem:[%s3995_s5] sm:$0xff]  }
 0xbb4   : > { %v1678_v28 = vpop.f32.mrf.mxu1  ;;  %v3695_v27 = vld [vmem:[%s3996_s6 + $0x8] sm:$0xff]  }
 0xbb5   : > { %2933 = vpow2.f32 %v2536_v34  ;;  %v3705_v28 = vld [vmem:[%s3996_s6] sm:$0xff]  }
 0xbb6   : > { %v2732_v29 = vpop.f32.mrf.mxu1 }
 0xbbe   : > { %v2932_v35 = vpop.eup %2931 }
 0xbbf   : > { %v1611_v36 = vadd.f32 1.0, %v2932_v35 }
 0xbc1   : > { %2935 = vrcp.f32 %v1611_v36 }
 0xbc2   : > { %v2934_v37 = vpop.eup %2933 }
 0xbc3   : > { %v1685_v38 = vadd.f32 1.0, %v2934_v37 }
 0xbc5   : > { %2937 = vrcp.f32 %v1685_v38  ;;  %v1741_v38 = vld [vmem:[#allocation4 + $0x28] sm:$0xff] }
 0xbce   : > { %v2936_v40 = vpop.eup %2935 }
 0xbcf   : > { %v1626_v63 = vsub.f32 1.0, %v2936_v40  ;;  %v1632_v4 = vmul.f32 %v2936_v40, %v3614_v0 }
 0xbd2   : > { %v2938_v20 = vpop.eup %2937 }
 0xbd3   : > { %v1700_v8 = vsub.f32 1.0, %v2938_v20  ;;  %v1706_v14 = vmul.f32 %v2938_v20, %v3622_v15 }
 0xc21   : > { %v1617_v41 = vpop.permute.xlu1 %1616 }
 0xc22   : > { %v1619_v42 = vmul.f32 %v2936_v40, %v1617_v41  ;;  %v1743_v40 = vld [vmem:[#allocation5 + $0x10] sm:$0xff] }
 0xc24   : > { %1621 = vrot.lane.b32.xlu1 %v1619_v42, %s3130_s11 }
 0xc25   : > { %v1691_v44 = vpop.permute.xlu0 %1690 }
 0xc26   : > { %v1693_v21 = vmul.f32 %v2938_v20, %v1691_v44 }
 0xc28   : > { %1716 = vperm.xlu1 %2866, %v1714_v45   ;;  %1695 = vrot.lane.b32.xlu0 %v1693_v21, %s3130_s11 }
 0xc2c   : > { %1728 = vperm.xlu0 %2865, %v1726_v46   ;;  %v1893_v46 = vstv %s1892_s30 }
 0xc2d   : > { %vm1894_vm10 = vcmp.lt.s32.totalorder %v1893_v46, %v3463_v24 }
 0xc96   : > { %v1622_v48 = vpop.permute.xlu1 %1621 }
 0xc97   : > { %v1624_v49 = vadd.f32 %v1622_v48, %v1557_v17 }
 0xc99   : > { %2939 = vtanh.f32 %v1624_v49 }
 0xc9a   : > { %v1696_v51 = vpop.permute.xlu0 %1695 }
 0xc9b   : > { %v1698_v52 = vadd.f32 %v1696_v51, %v1559_v31 }
 0xc9d   : > { %2941 = vtanh.f32 %v1698_v52  ;;  %v1896_v52 = vstv %s1895_s14 }
 0xc9e   : > { %vm1897_vm11 = vcmp.lt.s32.totalorder %v1896_v52, %v3463_v24 }
 0xca3   : > { %v1717_v62 = vpop.permute.xlu1 %1716 }
 0xca4   : > { %vm1718_vm8 = vcmp.eq.s32.totalorder %v1717_v62, 1  ;;  %v1898_v62 = vsel %vm1894_vm10, 1, %v3132_v50 }
 0xca6   : > { %v2940_v53 = vpop.eup %2939 }
 0xca7   : > { %1628 = vrot.lane.b32.xlu1 %v2940_v53, %s3134_s23  ;;  %v1729_v2 = vpop.permute.xlu0 %1728 }
 0xca8   : > { %vm1730_vm9 = vcmp.eq.s32.totalorder %v1729_v2, 1  ;;  %v1910_v2 = vsel %vm1897_vm11, 1, %v3132_v50 }
 0xcaa   : > { %v2942_v56 = vpop.eup %2941 }
 0xcab   : > { %1702 = vrot.lane.b32.xlu0 %v2942_v56, %s3134_s23 }
 0xd19   : > { %v1629_v58 = vpop.permute.xlu1 %1628 }
 0xd1a   : > { %v1631_v7 = vmul.f32 %v1629_v58, %v1626_v63 }
 0xd1c   : > { %v1633_v57 = vadd.f32 %v1632_v4, %v1631_v7 }
 0xd1d   : > { %v1703_v13 = vpop.permute.xlu0 %1702 }
 0xd1e   : > { %v1705_v19 = vmul.f32 %v1703_v13, %v1700_v8  ;;  %v3660_v54 = vsel %vm1718_vm8, %v1633_v57, %v3614_v0  ;;  %v3662_v22 = vsel %vm1718_vm8, %v1633_v57, 0.0 }
 0xd1f   : > { %v1744_v10 = vpack.c.bf16 %v3660_v54, %v3660_v54 }
 0xd20   : > { %v1707_v5 = vadd.f32 %v1706_v14, %v1705_v19 }
 0xd21   : > { %1746 = vrot.lane.b32.xlu1 %v1744_v10, %s3134_s23 }
 0xd22   : > { %v3668_v23 = vsel %vm1730_vm9, %v1707_v5, %v3622_v15  ;;  %v3670_v16 = vsel %vm1730_vm9, %v1707_v5, 0.0 }
 0xd23   : > { %v1818_v25 = vpack.c.bf16 %v3668_v23, %v3668_v23 }
 0xd25   : > { %1820 = vrot.lane.b32.xlu0 %v1818_v25, %s3134_s23 }
 0xd93   : > { %v1747_v0 = vpop.permute.xlu1 %1746 }
 0xd94   : > { %2738 = vmatmul.mubr.msk.bf16.vlgmr.msra.gmra.mxu0 %vm543_vm1, %v1747_v0 }
 0xd95   : > { %2750 = vmatpush3.bf16.msra.mxu0 %v3679_v11  ;;  %2753 = vmatprep.mubr.msk.bf16.mxu0 %vm3131_vm2, %v3129_v9 }
 0xd96   : > { %2751 = vmatprep.subr.bf16.mxu0 %v3129_v9 }
 0xd97   : > { %v1821_v15 = vpop.permute.xlu0 %1820 }
 0xd98   : > { %2746 = vmatmul.mubr.msk.bf16.vlgmr.msra.gmra.mxu1 %vm543_vm1, %v1821_v15 }
 0xd99   : > { %2752 = vmatpush3.bf16.msra.mxu0 %v3689_v26  ;;  %2758 = vmatpush3.bf16.msra.mxu1 %v3695_v27 }
 0xd9a   : > { %2759 = vmatprep.subr.bf16.mxu1 %v3129_v9  ;;  %2761 = vmatprep.mubr.msk.bf16.mxu1 %vm3131_vm2, %v3129_v9 }
 0xd9b   : > { %2765 = vmatprep.subr.bf16.mxu0 %v3129_v9 }
 0xd9d   : > { %2760 = vmatpush3.bf16.msra.mxu1 %v3705_v28 }
 0xd9e   : > { %2773 = vmatprep.subr.bf16.mxu1 %v3129_v9 }
 0xe54   : > { %v1785_v29 = vpop.f32.mrf.mxu0 }
 0xe55   : > { %v1798_v17 = vadd.f32 %v1785_v29, %v3442_v47  ;;  %v1791_v39 = vadd.f32 %v1785_v29, %v1741_v38 }
 0xe56   : > { %v2739_v30 = vpop.f32.mrf.mxu0 }
 0xe57   : > { %1800 = vrot.lane.b32.xlu1 %v1798_v17, %s3130_s11  ;;  %v2540_v41 = vmul.f32 -1.442695, %v1791_v39 }
 0xe58   : > { %v1788_v31 = vpop.f32.mrf.mxu0  ;;  %v1859_v32 = vpop.f32.mrf.mxu1 }
 0xe59   : > { %v1872_v33 = vadd.f32 %v1859_v32, %v3452_v61  ;;  %v1865_v42 = vadd.f32 %v1859_v32, %v1743_v40  ;;  %2943 = vpow2.f32 %v2540_v41 }
 0xe5a   : > { %v2740_v34 = vpop.f32.mrf.mxu0  ;;  %v2747_v35 = vpop.f32.mrf.mxu1 }
 0xe5b   : > { %1874 = vrot.lane.b32.xlu0 %v1872_v33, %s3130_s11  ;;  %v2542_v43 = vmul.f32 -1.442695, %v1865_v42 }
 0xe5c   : > { %v1862_v36 = vpop.f32.mrf.mxu1 }
 0xe5d   : > { %2945 = vpow2.f32 %v2542_v43 }
 0xe5e   : > { %v2748_v37 = vpop.f32.mrf.mxu1 }
 0xe66   : > { %v2944_v20 = vpop.eup %2943 }
 0xe67   : > { %v1795_v44 = vadd.f32 1.0, %v2944_v20 }
 0xe69   : > { %2947 = vrcp.f32 %v1795_v44  ;;  %v1927_v44 = vld [vmem:[#allocation5 + $0x8] sm:$0xff] }
 0xe6a   : > { %v2946_v45 = vpop.eup %2945 }
 0xe6b   : > { %v1869_v21 = vadd.f32 1.0, %v2946_v45 }
 0xe6d   : > { %2949 = vrcp.f32 %v1869_v21 }
 0xe76   : > { %v2948_v48 = vpop.eup %2947 }
 0xe77   : > { %v1810_v24 = vsub.f32 1.0, %v2948_v48  ;;  %v1816_v5 = vmul.f32 %v2948_v48, %v3660_v54 }
 0xe7a   : > { %v2950_v53 = vpop.eup %2949 }
 0xe7b   : > { %v1884_v15 = vsub.f32 1.0, %v2950_v53  ;;  %v1890_v17 = vmul.f32 %v2950_v53, %v3668_v23 }
 0xec9   : > { %v1801_v49 = vpop.permute.xlu1 %1800 }
 0xeca   : > { %v1803_v51 = vmul.f32 %v2948_v48, %v1801_v49 }
 0xecc   : > { %1805 = vrot.lane.b32.xlu1 %v1803_v51, %s3130_s11 }
 0xecd   : > { %v1875_v56 = vpop.permute.xlu0 %1874 }
 0xece   : > { %v1877_v63 = vmul.f32 %v2950_v53, %v1875_v56  ;;  %v2077_v53 = vstv %s2076_s17 }
 0xed0   : > { %1900 = vperm.xlu1 %2866, %v1898_v62   ;;  %1879 = vrot.lane.b32.xlu0 %v1877_v63, %s3130_s11 }
 0xed4   : > { %1912 = vperm.xlu0 %2865, %v1910_v2   ;;  %v3762_v2 = vld [vmem:[%s3992_s2] sm:$0xff] }
 0xf3e   : > { %v1806_v58 = vpop.permute.xlu1 %1805 }
 0xf3f   : > { %v1808_v4 = vadd.f32 %v1806_v58, %v1741_v38  ;;  %v2080_v58 = vstv %s2079_s25 }
 0xf40   : > { %vm2081_vm14 = vcmp.lt.s32.totalorder %v2080_v58, %v3762_v2 }
 0xf41   : > { %2951 = vtanh.f32 %v1808_v4 }
 0xf42   : > { %v1880_v7 = vpop.permute.xlu0 %1879 }
 0xf43   : > { %v1882_v57 = vadd.f32 %v1880_v7, %v1743_v40 }
 0xf45   : > { %2953 = vtanh.f32 %v1882_v57 }
 0xf4b   : > { %v1901_v14 = vpop.permute.xlu1 %1900 }
 0xf4c   : > { %vm1902_vm12 = vcmp.eq.s32.totalorder %v1901_v14, 1 }
 0xf4e   : > { %v2952_v8 = vpop.eup %2951 }
 0xf4f   : > { %1812 = vrot.lane.b32.xlu1 %v2952_v8, %s3134_s23  ;;  %v1913_v19 = vpop.permute.xlu0 %1912 }
 0xf50   : > { %vm1914_vm13 = vcmp.eq.s32.totalorder %v1913_v19, 1 }
 0xf52   : > { %v2954_v13 = vpop.eup %2953 }
 0xf53   : > { %1886 = vrot.lane.b32.xlu0 %v2954_v13, %s3134_s23  ;;  %v2094_v13 = vsel %vm2081_vm14, 1, %v3132_v50 }
 0xfc1   : > { %v1813_v10 = vpop.permute.xlu1 %1812 }
 0xfc2   : > { %v1815_v25 = vmul.f32 %v1813_v10, %v1810_v24 }
 0xfc4   : > { %v1817_v0 = vadd.f32 %v1816_v5, %v1815_v25 }
 0xfc5   : > { %v1887_v29 = vpop.permute.xlu0 %1886 }
 0xfc6   : > { %v1889_v30 = vmul.f32 %v1887_v29, %v1884_v15  ;;  %v3726_v31 = vsel %vm1902_vm12, %v1817_v0, %v3660_v54  ;;  %v3728_v32 = vsel %vm1902_vm12, %v1817_v0, 0.0 }
 0xfc7   : > { %v1928_v33 = vpack.c.bf16 %v3726_v31, %v3726_v31 }
 0xfc8   : > { %v1891_v34 = vadd.f32 %v1890_v17, %v1889_v30 }
 0xfc9   : > { %1930 = vrot.lane.b32.xlu1 %v1928_v33, %s3134_s23 }
 0xfca   : > { %v3734_v35 = vsel %vm1914_vm13, %v1891_v34, %v3668_v23  ;;  %v3736_v36 = vsel %vm1914_vm13, %v1891_v34, 0.0 }
 0xfcb   : > { %v2002_v37 = vpack.c.bf16 %v3734_v35, %v3734_v35 }
 0xfcd   : > { %2004 = vrot.lane.b32.xlu0 %v2002_v37, %s3134_s23 }
0x103b   : > { %v1931_v54 = vpop.permute.xlu1 %1930 }
0x103c   : > { %2754 = vmatmul.mubr.msk.bf16.vlgmr.msra.gmra.mxu0 %vm543_vm1, %v1931_v54 }
0x103d   : > { %2766 = vmatpush3.bf16.msra.mxu0 %v3679_v11  ;;  %2769 = vmatprep.mubr.msk.bf16.mxu0 %vm3131_vm2, %v3129_v9 }
0x103e   : > { %2767 = vmatprep.subr.bf16.mxu0 %v3129_v9 }
0x103f   : > { %v2005_v38 = vpop.permute.xlu0 %2004 }
0x1040   : > { %2762 = vmatmul.mubr.msk.bf16.vlgmr.msra.gmra.mxu1 %vm543_vm1, %v2005_v38 }
0x1041   : > { %2768 = vmatpush3.bf16.msra.mxu0 %v3689_v26  ;;  %2774 = vmatpush3.bf16.msra.mxu1 %v3695_v27 }
0x1042   : > { %2775 = vmatprep.subr.bf16.mxu1 %v3129_v9  ;;  %2777 = vmatprep.mubr.msk.bf16.mxu1 %vm3131_vm2, %v3129_v9  ;;  %v1925_v9 = vld [vmem:[#allocation4 + $0x30] sm:$0xff]  ;;  %vm2078_vm2 = vcmp.lt.s32.totalorder %v2077_v53, %v3762_v2  ;;  %v2110_v53 = vld [vmem:[#allocation5] sm:$0xff] }
0x1043   : > { %v2082_v57 = vsel %vm2078_vm2, 1, %v3132_v50 }
0x1045   : > { %2776 = vmatpush3.bf16.msra.mxu1 %v3705_v28 }
0x10fc   : > { %v1969_v23 = vpop.f32.mrf.mxu0 }
0x10fd   : > { %v1982_v11 = vadd.f32 %v1969_v23, %v3442_v47  ;;  %v1975_v28 = vadd.f32 %v1969_v23, %v1925_v9 }
0x10fe   : > { %v2755_v39 = vpop.f32.mrf.mxu0 }
0x10ff   : > { %1984 = vrot.lane.b32.xlu1 %v1982_v11, %s3130_s11  ;;  %v2546_v45 = vmul.f32 -1.442695, %v1975_v28 }
0x1100   : > { %v1972_v40 = vpop.f32.mrf.mxu0  ;;  %v2043_v41 = vpop.f32.mrf.mxu1 }
0x1101   : > { %v2056_v42 = vadd.f32 %v2043_v41, %v3452_v61  ;;  %v2049_v21 = vadd.f32 %v2043_v41, %v1927_v44  ;;  %2955 = vpow2.f32 %v2546_v45 }
0x1102   : > { %v2756_v26 = vpop.f32.mrf.mxu0  ;;  %v2763_v43 = vpop.f32.mrf.mxu1 }
0x1103   : > { %2058 = vrot.lane.b32.xlu0 %v2056_v42, %s3130_s11  ;;  %v2548_v46 = vmul.f32 -1.442695, %v2049_v21 }
0x1104   : > { %v2046_v27 = vpop.f32.mrf.mxu1 }
0x1105   : > { %2957 = vpow2.f32 %v2548_v46 }
0x1106   : > { %v2764_v20 = vpop.f32.mrf.mxu1 }
0x110e   : > { %v2956_v48 = vpop.eup %2955 }
0x110f   : > { %v1979_v49 = vadd.f32 1.0, %v2956_v48 }
0x1111   : > { %2959 = vrcp.f32 %v1979_v49 }
0x1112   : > { %v2958_v51 = vpop.eup %2957 }
0x1113   : > { %v2053_v52 = vadd.f32 1.0, %v2958_v51  ;;  %v2109_v51 = vld [vmem:[#allocation4 + $0x38] sm:$0xff] }
0x1115   : > { %2961 = vrcp.f32 %v2053_v52 }
0x111e   : > { %v2960_v56 = vpop.eup %2959 }
0x111f   : > { %v1994_v15 = vsub.f32 1.0, %v2960_v56  ;;  %v2000_v30 = vmul.f32 %v2960_v56, %v3726_v31 }
0x1122   : > { %v2962_v4 = vpop.eup %2961 }
0x1123   : > { %v2068_v37 = vsub.f32 1.0, %v2962_v4  ;;  %v2074_v38 = vmul.f32 %v2962_v4, %v3734_v35 }
0x1171   : > { %v1985_v62 = vpop.permute.xlu1 %1984 }
0x1172   : > { %v1987_v63 = vmul.f32 %v2960_v56, %v1985_v62 }
0x1174   : > { %1989 = vrot.lane.b32.xlu1 %v1987_v63, %s3130_s11 }
0x1175   : > { %v2059_v7 = vpop.permute.xlu0 %2058 }
0x1176   : > { %v2061_v8 = vmul.f32 %v2962_v4, %v2059_v7  ;;  %v2260_v7 = vstv %s2259_s28 }
0x1177   : > { %vm2261_vm3 = vcmp.lt.s32.totalorder %v2260_v7, %v3762_v2 }
0x1178   : > { %2084 = vperm.xlu1 %2866, %v2082_v57   ;;  %2063 = vrot.lane.b32.xlu0 %v2061_v8, %s3130_s11 }
0x117c   : > { %2096 = vperm.xlu0 %2865, %v2094_v13  }
0x11e6   : > { %v1990_v14 = vpop.permute.xlu1 %1989 }
0x11e7   : > { %v1992_v24 = vadd.f32 %v1990_v14, %v1925_v9  ;;  %v2262_v14 = vstv %s3316_s18 }
0x11e8   : > { %vm2263_vm4 = vcmp.lt.s32.totalorder %v2262_v14, %v3762_v2 }
0x11e9   : > { %2963 = vtanh.f32 %v1992_v24 }
0x11ea   : > { %v2064_v19 = vpop.permute.xlu0 %2063 }
0x11eb   : > { %v2066_v10 = vadd.f32 %v2064_v19, %v1927_v44 }
0x11ed   : > { %2965 = vtanh.f32 %v2066_v10  ;;  %v2264_v10 = vsel %vm2261_vm3, 1, %v3132_v50 }
0x11f3   : > { %v2085_v0 = vpop.permute.xlu1 %2084 }
0x11f4   : > { %vm2086_vm15 = vcmp.eq.s32.totalorder %v2085_v0, 1 }
0x11f6   : > { %v2964_v5 = vpop.eup %2963 }
0x11f7   : > { %1996 = vrot.lane.b32.xlu1 %v2964_v5, %s3134_s23  ;;  %v2097_v29 = vpop.permute.xlu0 %2096 }
0x11f8   : > { %vm2098_vm0 = vcmp.eq.s32.totalorder %v2097_v29, 1 }
0x11fa   : > { %v2966_v25 = vpop.eup %2965 }
0x11fb   : > { %2070 = vrot.lane.b32.xlu0 %v2966_v25, %s3134_s23  ;;  %v2276_v25 = vsel %vm2263_vm4, 1, %v3132_v50 }
0x1269   : > { %v1997_v17 = vpop.permute.xlu1 %1996 }
0x126a   : > { %v1999_v33 = vmul.f32 %v1997_v17, %v1994_v15 }
0x126c   : > { %v2001_v34 = vadd.f32 %v2000_v30, %v1999_v33 }
0x126d   : > { %v2071_v54 = vpop.permute.xlu0 %2070 }
0x126e   : > { %v2073_v23 = vmul.f32 %v2071_v54, %v2068_v37  ;;  %v3775_v11 = vsel %vm2086_vm15, %v2001_v34, %v3726_v31  ;;  %v3777_v39 = vsel %vm2086_vm15, %v2001_v34, 0.0 }
0x126f   : > { %v2111_v40 = vpack.c.bf16 %v3775_v11, %v3775_v11 }
0x1270   : > { %v2075_v41 = vadd.f32 %v2074_v38, %v2073_v23 }
0x1271   : > { %2113 = vrot.lane.b32.xlu1 %v2111_v40, %s3134_s23 }
0x1272   : > { %v3783_v42 = vsel %vm2098_vm0, %v2075_v41, %v3734_v35  ;;  %v3785_v26 = vsel %vm2098_vm0, %v2075_v41, 0.0 }
0x1273   : > { %v2185_v43 = vpack.c.bf16 %v3783_v42, %v3783_v42 }
0x1275   : > { %2187 = vrot.lane.b32.xlu0 %v2185_v43, %s3134_s23 }
0x12e3   : > { %v2114_v31 = vpop.permute.xlu1 %2113 }
0x12e4   : > { %2770 = vmatmul.mubr.msk.bf16.vlgmr.msra.gmra.mxu0 %vm543_vm1, %v2114_v31 }
0x12e7   : > { %v2188_v27 = vpop.permute.xlu0 %2187 }
0x12e8   : > { %2778 = vmatmul.mubr.msk.bf16.vlgmr.msra.gmra.mxu1 %vm543_vm1, %v2188_v27 }
0x13a4   : > { %v2152_v20 = vpop.f32.mrf.mxu0 }
0x13a5   : > { %v2165_v9 = vadd.f32 %v2152_v20, %v3442_v47  ;;  %v2158_v52 = vadd.f32 %v2152_v20, %v2109_v51 }
0x13a6   : > { %v2771_v28 = vpop.f32.mrf.mxu0 }
0x13a7   : > { %2167 = vrot.lane.b32.xlu1 %v2165_v9, %s3130_s11  ;;  %v2552_v56 = vmul.f32 -1.442695, %v2158_v52 }
0x13a8   : > { %v2155_v35 = vpop.f32.mrf.mxu0  ;;  %v2226_v44 = vpop.f32.mrf.mxu1 }
0x13a9   : > { %v2239_v45 = vadd.f32 %v2226_v44, %v3452_v61  ;;  %v2232_v62 = vadd.f32 %v2226_v44, %v2110_v53  ;;  %2967 = vpow2.f32 %v2552_v56 }
0x13aa   : > { %v2772_v21 = vpop.f32.mrf.mxu0  ;;  %v2779_v46 = vpop.f32.mrf.mxu1 }
0x13ab   : > { %2241 = vrot.lane.b32.xlu0 %v2239_v45, %s3130_s11  ;;  %v2554_v47 = vmul.f32 -1.442695, %v2232_v62 }
0x13ac   : > { %v2229_v48 = vpop.f32.mrf.mxu1 }
0x13ad   : > { %2969 = vpow2.f32 %v2554_v47 }
0x13ae   : > { %v2780_v49 = vpop.f32.mrf.mxu1 }
0x13b6   : > { %v2968_v63 = vpop.eup %2967 }
0x13b7   : > { %v2162_v58 = vadd.f32 1.0, %v2968_v63 }
0x13b9   : > { %2971 = vrcp.f32 %v2162_v58 }
0x13ba   : > { %v2970_v4 = vpop.eup %2969 }
0x13bb   : > { %v2236_v61 = vadd.f32 1.0, %v2970_v4 }
0x13bd   : > { %2973 = vrcp.f32 %v2236_v61 }
0x13c6   : > { %v2972_v57 = vpop.eup %2971 }
0x13ca   : > { %v2974_v24 = vpop.eup %2973 }
0x1419   : > { %v2168_v8 = vpop.permute.xlu1 %2167 }
0x141a   : > { %v2170_v13 = vmul.f32 %v2972_v57, %v2168_v8 }
0x141c   : > { %2172 = vrot.lane.b32.xlu1 %v2170_v13, %s3130_s11 }
0x141d   : > { %v2242_v19 = vpop.permute.xlu0 %2241 }
0x141e   : > { %v2244_v5 = vmul.f32 %v2974_v24, %v2242_v19 }
0x1420   : > { %2266 = vperm.xlu1 %2866, %v2264_v10   ;;  %2246 = vrot.lane.b32.xlu0 %v2244_v5, %s3130_s11 }
0x1424   : > { %2278 = vperm.xlu0 %2865, %v2276_v25  }
0x148e   : > { %v2173_v0 = vpop.permute.xlu1 %2172 }
0x148f   : > { %v2175_v15 = vadd.f32 %v2173_v0, %v2109_v51 }
0x1491   : > { %2975 = vtanh.f32 %v2175_v15 }
0x1492   : > { %v2247_v29 = vpop.permute.xlu0 %2246 }
0x1493   : > { %v2249_v17 = vadd.f32 %v2247_v29, %v2110_v53 }
0x1495   : > { %2977 = vtanh.f32 %v2249_v17 }
0x149b   : > { %v2267_v50 = vpop.permute.xlu1 %2266 }
0x149c   : > { %vm2268_vm5 = vcmp.eq.s32.totalorder %v2267_v50, 1 }
0x149e   : > { %v2976_v30 = vpop.eup %2975 }
0x149f   : > { %2179 = vrot.lane.b32.xlu1 %v2976_v30, %s3134_s23 }
0x14a2   : > { %v2978_v33 = vpop.eup %2977 }
0x14a3   : > { %986 = vrot.lane.b32.xlu1 %v3479_v55, %s3134_s23  ;;  %2253 = vrot.lane.b32.xlu0 %v2978_v33, %s3134_s23  ;;  %v2177_v55 = vsub.f32 1.0, %v2972_v57 }
0x14a7   : > { %1169 = vrot.lane.b32.xlu1 %v3524_v60, %s3134_s23  ;;  %997 = vrot.lane.b32.xlu0 %v3486_v59, %s3134_s23  ;;  %v2279_v59 = vpop.permute.xlu0 %2278 }
0x14a8   : > { %vm2280_vm6 = vcmp.eq.s32.totalorder %v2279_v59, 1 }
0x14ab   : > { %1353 = vrot.lane.b32.xlu1 %v3570_v3, %s3134_s23  ;;  %1181 = vrot.lane.b32.xlu0 %v3532_v1, %s3134_s23  ;;  %v2183_v1 = vmul.f32 %v2972_v57, %v3775_v11 }
0x14af   : > { %1537 = vrot.lane.b32.xlu1 %v3616_v12, %s3134_s23  ;;  %1365 = vrot.lane.b32.xlu0 %v3578_v6, %s3134_s23  ;;  %v2251_v12 = vsub.f32 1.0, %v2974_v24 }
0x14b3   : > { %1721 = vrot.lane.b32.xlu1 %v3662_v22, %s3134_s23  ;;  %1549 = vrot.lane.b32.xlu0 %v3624_v18, %s3134_s23 }
0x14b7   : > { %1905 = vrot.lane.b32.xlu1 %v3728_v32, %s3134_s23  ;;  %1733 = vrot.lane.b32.xlu0 %v3670_v16, %s3134_s23  ;;  %v2257_v16 = vmul.f32 %v2974_v24, %v3783_v42 }
0x14bb   : > { %2089 = vrot.lane.b32.xlu1 %v3777_v39, %s3134_s23  ;;  %1917 = vrot.lane.b32.xlu0 %v3736_v36, %s3134_s23 }
0x14bf   : > { %2101 = vrot.lane.b32.xlu0 %v3785_v26, %s3134_s23 }
0x1511   : > { %v2180_v60 = vpop.permute.xlu1 %2179 }
0x1512   : > { %v2182_v3 = vmul.f32 %v2180_v60, %v2177_v55 }
0x1514   : > { %v2184_v6 = vadd.f32 %v2183_v1, %v2182_v3 }
0x1515   : > { %v987_v18 = vpop.permute.xlu1 %986  ;;  %v2254_v22 = vpop.permute.xlu0 %2253 }
0x1516   : > { %989 = vst.msk [vmem:[%s3331_s22] sm:$0xff] %vm543_vm1, %v987_v18  ;;  %v2256_v32 = vmul.f32 %v2254_v22, %v2251_v12  ;;  %v2269_v36 = vsel %vm2268_vm5, %v2184_v6, 0.0  ;;  %v2287_v54 = vsel %vm2268_vm5, %v2184_v6, %v3775_v11 }
0x1517   : > { %2271 = vrot.lane.b32.xlu1 %v2269_v36, %s3134_s23 }
0x1518   : > { %v2258_v2 = vadd.f32 %v2257_v16, %v2256_v32 }
0x1519   : > { %v1170_v34 = vpop.permute.xlu1 %1169  ;;  %v998_v37 = vpop.permute.xlu0 %997 }
0x151a   : > { %2519 = vst.msk [vmem:[%s3331_s22 + $0x8] sm:$0xff] %vm543_vm1, %v1170_v34  ;;  %2514 = vst.msk [vmem:[%s3333_s20 + $0x38] sm:$0xff] %vm543_vm1, %v998_v37  ;;  %v2281_v38 = vsel %vm2280_vm6, %v2258_v2, 0.0  ;;  %v2288_v40 = vsel %vm2280_vm6, %v2258_v2, %v3783_v42 }
0x151b   : > { %2290 = vrot.lane.b32.xlu1 %v2287_v54, %s3134_s23  ;;  %2283 = vrot.lane.b32.xlu0 %v2281_v38, %s3134_s23 }
0x151d   : > { %v1354_v23 = vpop.permute.xlu1 %1353  ;;  %v1182_v39 = vpop.permute.xlu0 %1181 }
0x151e   : > { %2525 = vst.msk [vmem:[%s3331_s22 + $0x10] sm:$0xff] %vm543_vm1, %v1354_v23  ;;  %2520 = vst.msk [vmem:[%s3333_s20 + $0x30] sm:$0xff] %vm543_vm1, %v1182_v39 }
0x151f   : > { %2295 = vrot.lane.b32.xlu0 %v2288_v40, %s3134_s23 }
0x1521   : > { %v1538_v11 = vpop.permute.xlu1 %1537  ;;  %v1366_v41 = vpop.permute.xlu0 %1365 }
0x1522   : > { %2531 = vst.msk [vmem:[%s3331_s22 + $0x18] sm:$0xff] %vm543_vm1, %v1538_v11  ;;  %2526 = vst.msk [vmem:[%s3333_s20 + $0x28] sm:$0xff] %vm543_vm1, %v1366_v41 }
0x1525   : > { %v1722_v26 = vpop.permute.xlu1 %1721  ;;  %v1550_v43 = vpop.permute.xlu0 %1549 }
0x1526   : > { %2537 = vst.msk [vmem:[%s3331_s22 + $0x20] sm:$0xff] %vm543_vm1, %v1722_v26  ;;  %2532 = vst.msk [vmem:[%s3333_s20 + $0x20] sm:$0xff] %vm543_vm1, %v1550_v43 }
0x1529   : > { %v1906_v42 = vpop.permute.xlu1 %1905  ;;  %v1734_v31 = vpop.permute.xlu0 %1733 }
0x152a   : > { %2543 = vst.msk [vmem:[%s3331_s22 + $0x28] sm:$0xff] %vm543_vm1, %v1906_v42  ;;  %2538 = vst.msk [vmem:[%s3333_s20 + $0x18] sm:$0xff] %vm543_vm1, %v1734_v31 }
0x152d   : > { %v2090_v27 = vpop.permute.xlu1 %2089  ;;  %v1918_v20 = vpop.permute.xlu0 %1917 }
0x152e   : > { %2549 = vst.msk [vmem:[%s3331_s22 + $0x30] sm:$0xff] %vm543_vm1, %v2090_v27  ;;  %2544 = vst.msk [vmem:[%s3333_s20 + $0x10] sm:$0xff] %vm543_vm1, %v1918_v20 }
0x1531   : > { %v2102_v9 = vpop.permute.xlu0 %2101 }
0x1532   : > { %2550 = vst.msk [vmem:[%s3333_s20 + $0x8] sm:$0xff] %vm543_vm1, %v2102_v9 }
0x1589   : > { %v2272_v28 = vpop.permute.xlu1 %2271 }
0x158a   : > { %2555 = vst.msk [vmem:[%s3331_s22 + $0x38] sm:$0xff] %vm543_vm1, %v2272_v28 }
0x158d   : > { %v2291_v35 = vpop.permute.xlu1 %2290  ;;  %v2284_v44 = vpop.permute.xlu0 %2283 }
0x158e   : > { %2293 = vst.msk [vmem:[#allocation2] sm:$0xff] %vm543_vm1, %v2291_v35  ;;  %2286 = vst.msk [vmem:[%s3333_s20] sm:$0xff] %vm543_vm1, %v2284_v44  ;;  %2302 = sbr.rel (%p2556_p7) target bundleno = 5525 (0x1595), region = 72 }
0x1591   : > { %v2296_v45 = vpop.permute.xlu0 %2295 }
0x1592   : > { %2298 = vst.msk [vmem:[#allocation3] sm:$0xff] %vm543_vm1, %v2296_v45 }
0x1593   : > { %2303 = vst.msk [vmem:[#allocation10] sm:$0xff] %vm543_vm1, %v2291_v35  ;;  %vm2304_vm7 = vcmask 523520  }
0x1594   : > { %2305 = vst.msk [vmem:[#allocation10] sm:$0xff] %vm2304_vm7, %v2288_v40 }
0x1595 PF: > { %s2311_s18 = sand.u32 1, %s3246_s15   ;;  %s4039_s19 = ssub.s32 1, %s3246_s15 }
0x1596   : > { %s2568_s11 = sshll.u32 %s4039_s19, 10  ;;  %s2342_s23 = sshll.u32 %s3333_s20, 4  ;;  %s3887_s23 = int_to_ptr.vmem [resolvable:$true] %s2342_s23 }
0x1597   : > { %s3885_s13 = scalar_lea.hbm %s4002_s12, %s2568_s11  ;;  %s3889_s30 = scalar_lea.sflag [#allocation9], %s2311_s18 }
0x1598   : > { %s2984_s14 = scalar_lea.vmem %s3887_s23, 1024  ;;  %s3135_s17 = smov [#allocation8]  }
0x1599   : > { %p2985_p8 = scmp.ne.s32.totalorder %s3887_s23, %s2984_s14  ;;  %s2988_s25 = sshll.u32 %s3135_s17, 4  ;;  %s2989_s25 = int_to_ptr.vmem [resolvable:$false] %s2988_s25 }
0x159a   : > { %s2990_s20 = scalar_lea.vmem %s2989_s25, 2048  ;;  %p2991_p13 = scmp.lt.s32.totalorder %s3887_s23, %s2989_s25 }
0x159b   : > { %p2986_p9 = pnand %p2985_p8, %p3294_p11  ;;  %p2992_p0 = scmp.lt.s32.totalorder %s2990_s20, %s2984_s14 }
0x159d   : > { %p2987_p10 = pneg %p2986_p9  ;;  %p2993_p1 = por %p2992_p0, %p2991_p13 }
0x159f   : > { %p2994_p3 = pnand %p2993_p1, %p2987_p10 }
0x15a1   : > { %2997 = shalt.err (!%p2994_p3)
}
0x15a2   : > { %s2998_s16 = scalar_lea.hbm %s3885_s13, 1024  ;;  %s3002_s18 = scalar_lea.hbm %s4002_s12, 2048 }
0x15a3   : > { %p2999_p4 = scmp.ne.s32.totalorder %s3885_s13, %s2998_s16  ;;  %p3003_p8 = scmp.lt.s32.totalorder %s3885_s13, %s4002_s12 }
0x15a4   : > { %p3004_p9 = scmp.lt.s32.totalorder %s3002_s18, %s2998_s16 }
0x15a5   : > { %p3000_p7 = pnand %p2999_p4, %p3294_p11 }
0x15a6   : > { %p3005_p10 = por %p3004_p9, %p3003_p8 }
0x15a7   : > { %p3001_p2 = pneg %p3000_p7 }
0x15a9   : > { %p3006_p13 = pnand %p3005_p10, %p3001_p2 }
0x15ab   : > { %3009 = shalt.err (!%p3006_p13)
}
0x15ac   : > { %s3136_s26 = smov 128   ;;  %s3137_s14 = smov 8  }
0x15ad   : > { %2782 = dma.vmem_to_hbm [thread:$0]  (%p3294_p11), %s3887_s23, 1024, %s3885_s13, %s3889_s30, %s3136_s26, %s3136_s26, %s3137_s14  }
0x15ae   : > { %s2567_s17 = sshll.u32 %s3246_s15, 10  ;;  %s4041_s16 = sld [smem:[#allocation25_spill]] }
0x15af   : > { %s2325_s28 = sshll.u32 %s3331_s22, 4  ;;  %s4042_s18 = sand.u32 1, %s3118_s29   ;;  %s3922_s28 = int_to_ptr.vmem [resolvable:$true] %s2325_s28 }
0x15b0   : > { %s2307_s19 = scalar_lea.sflag [#allocation7], %s4042_s18  ;;  %s3010_s11 = scalar_lea.vmem %s3922_s28, 1024 }
0x15b1   : > { %p3011_p2 = scmp.ne.s32.totalorder %s3922_s28, %s3010_s11  ;;  %s3138_s21 = smov [#allocation6]  }
0x15b2   : > { %s3014_s23 = sshll.u32 %s3138_s21, 4  ;;  %s3015_s23 = int_to_ptr.vmem [resolvable:$false] %s3014_s23 }
0x15b3   : > { %p3012_p0 = pnand %p3011_p2, %p3271_p5  ;;  %s3016_s13 = scalar_lea.vmem %s3015_s23, 2048 }
0x15b4   : > { %s3919_s24 = scalar_lea.hbm %s4041_s16, %s2567_s17  ;;  %p3017_p11 = scmp.lt.s32.totalorder %s3922_s28, %s3015_s23 }
0x15b5   : > { %p3013_p1 = pneg %p3012_p0  ;;  %p3018_p3 = scmp.lt.s32.totalorder %s3016_s13, %s3010_s11 }
0x15b7   : > { %p3019_p4 = por %p3018_p3, %p3017_p11 }
0x15b9   : > { %p3020_p7 = pnand %p3019_p4, %p3013_p1 }
0x15bb   : > { %3023 = shalt.err (!%p3020_p7)
}
0x15bc   : > { %s3024_s22 = scalar_lea.hbm %s3919_s24, 1024  ;;  %s3028_s25 = scalar_lea.hbm %s4041_s16, 2048 }
0x15bd   : > { %p3025_p8 = scmp.ne.s32.totalorder %s3919_s24, %s3024_s22  ;;  %p3029_p13 = scmp.lt.s32.totalorder %s3919_s24, %s4041_s16 }
0x15be   : > { %p3030_p2 = scmp.lt.s32.totalorder %s3028_s25, %s3024_s22 }
0x15bf   : > { %p3026_p9 = pnand %p3025_p8, %p3271_p5 }
0x15c0   : > { %p3031_p0 = por %p3030_p2, %p3029_p13 }
0x15c1   : > { %p3027_p10 = pneg %p3026_p9 }
0x15c3   : > { %p3032_p1 = pnand %p3031_p0, %p3027_p10 }
0x15c5   : > { %3035 = shalt.err (!%p3032_p1)
}
0x15c6   : > { %2781 = dma.vmem_to_hbm [thread:$0]  (%p3271_p5), %s3922_s28, 1024, %s3919_s24, %s2307_s19, %s3136_s26, %s3136_s26, %s3137_s14  }
0x15c7   : > { %s3139_s11 = smov [#allocation10]   ;;  %p4043_p3 = scmp.eq.s32.totalorder %s3246_s15, 1 }
0x15c8   : > { %s2356_s21 = sshll.u32 %s3139_s11, 4  ;;  %s2357_s21 = int_to_ptr.vmem [resolvable:$true] %s2356_s21 }
0x15c9   : > { %s3036_s23 = scalar_lea.vmem %s2357_s21, 128  ;;  %p3043_p8 = scmp.lt.s32.totalorder %s2357_s21, %s2357_s21 }
0x15ca   : > { %p3037_p11 = scmp.ne.s32.totalorder %s2357_s21, %s3036_s23  ;;  %p3044_p9 = scmp.lt.s32.totalorder %s3036_s23, %s3036_s23 }
0x15cc   : > { %p3038_p4 = pnand %p3037_p11, %p4043_p3  ;;  %p3045_p10 = por %p3044_p9, %p3043_p8 }
0x15ce   : > { %p3039_p7 = pneg %p3038_p4 }
0x15d0   : > { %p3046_p13 = pnand %p3045_p10, %p3039_p7 }
0x15d2   : > { %3049 = shalt.err (!%p3046_p13)
}
0x15d3   : > { %p4044_p2 = pmov %p4043_p3  ;;  %s4045_s22 = sld [smem:[#allocation26_spill]] }
0x15d5   : > { %p4046_p5 = pmov %p4044_p2 }
0x15d9   : > { %2784 = dma.vmem_to_hbm [thread:$0]  (%p4044_p2), %s2357_s21, 128, %s4045_s22, [#allocation9]  }
0x15da   : > { %3089 = dma.done.wait (%p4046_p5), [#allocation9], 128   ;;  %p4047_p0 = pmov %p4044_p2 }
0x15dc   : > { %3091 = vsyncadd (%p4047_p0), [#allocation9], 4294967168 }
0x15dd PF: > { %s4048_s26 = sld [smem:[#allocation18_spill]] }
0x15de   : > { %s4049_s14 = sld [smem:[#allocation16_spill]] }
0x15e3   : > { %p2798_p1 = scmp.ge.s32.totalorder %s4048_s26, 2 }
0x15e4   : > { %s2372_s28 = sand.u32 1, %s4049_s14  }
0x15e5   : > { %p2790_p11 = pnand %p2798_p1, %p3277_p6  ;;  %s2373_s19 = scalar_lea.sflag [#allocation7], %s2372_s28 }
0x15e7   : > { %p2791_p3 = pneg %p2790_p11 }
0x15e9   : > { %3093 = dma.done.wait (%p2791_p3), %s2373_s19, 1024  }
0x15ea   : > { %3095 = vsyncadd (%p2791_p3), %s2373_s19, 4294966272  ;;  %s4051_s30 = sadd.s32 4294967294, %s4048_s26   ;;  %p2793_p4 = pnand %p2798_p1, %p3300_p12 }
0x15eb   : > { %s2381_s25 = sand.u32 1, %s4051_s30  }
0x15ec   : > { %p2794_p7 = pneg %p2793_p4  ;;  %s2382_s15 = scalar_lea.sflag [#allocation9], %s2381_s25 }
0x15ee   : > { %3097 = dma.done.wait (%p2794_p7), %s2382_s15, 1024  }
0x15ef   : > { %3099 = vsyncadd (%p2794_p7), %s2382_s15, 4294966272  ;;  %s4053_s14 = sld [smem:[#allocation19_spill]]  ;;  %s4059_s28 = smov %s3118_s29 }
0x15f0   : > { %s4054_s25 = sld [smem:[#allocation14_spill]] }
0x15f1   : > { %s4055_s26 = sld [smem:[#allocation15_spill]] }
0x15f2   : > { %s4056_s27 = sld [smem:[#allocation23_spill]] }
0x15f3   : > { %s4057_s20 = sld [smem:[#allocation17_spill]] }
0x15f4   : > { %s4058_s30 = sld [smem:[#allocation20_spill]] }
0x15f5   : > { %p27_p6 = scmp.ge.s32.totalorder %s4053_s14, 4  }
0x15f7   :  { %29 = sbr.rel (!%p27_p6) target bundleno = 10 (0xa), region = 163 }
0x15f9   : > { %s4060_s29 = smov %s4057_s20 }
0x15fc   :  { %2387 = vsyncpa [#allocation7], 1 }
0x15fd   :  { %2389 = vsyncpa [#allocation7 + $0x1], 1 }
0x15fe   :  { %2390 = vsyncpa [#allocation9], 1 }
0x15ff   :  { %2392 = vsyncpa [#allocation9 + $0x1], 1 }

</bundles_post_ra>
